<compile_context>
chip_gen: v6e
topology: v6e:2x2x1
jax: 0.10.0
libtpu: 0.0.40
codegen_flags: <defaults>
</compile_context>

<pallas_src>
import jax
import jax.numpy as jnp
from jax.experimental import pallas as pl
from jax.experimental.pallas import tpu as pltpu


def _round_up(x, m):
    return (x + m - 1) // m * m


# ---------------------------------------------------------------------------
# Fused kernel
# ---------------------------------------------------------------------------
def make_gamenet_kernel(N, H, W, cin, nfilters, nblocks):
    """Builds the fused forward kernel for a fixed GameNet configuration."""
    M = N * H * W
    F = nfilters

    def conv3x3(a, w_taps):
        """3x3 SAME conv as 9 shifted-tap matmuls with f32 accumulation.

        a:      (N, H, W, Cin) f32 activation.
        w_taps: list of 9 (Cin, Cout) bf16 weights, tap index t = 3*dy + dx.
        Returns (N*H*W, Cout) f32.
        """
        c = a.shape[-1]
        zrow = jnp.zeros((N, 1, W, c), a.dtype)
        zcol = jnp.zeros((N, H, 1, c), a.dtype)
        # hsh[dy][n, y] = a[n, y + dy - 1]  (zero outside) -- major-axis concat
        hsh = (jnp.concatenate([zrow, a[:, :H - 1]], axis=1),
               a,
               jnp.concatenate([a[:, 1:], zrow], axis=1))
        acc = None
        for dy in range(3):
            ah = hsh[dy]
            # wsh[dx][n, :, x] = ah[n, :, x + dx - 1]  (zero outside, sublane)
            wsh = (jnp.concatenate([zcol, ah[:, :, :W - 1]], axis=2),
                   ah,
                   jnp.concatenate([ah[:, :, 1:], zcol], axis=2))
            for dx in range(3):
                lhs = wsh[dx].reshape(M, c).astype(jnp.bfloat16)
                d = jnp.dot(lhs, w_taps[3 * dy + dx],
                            preferred_element_type=jnp.float32)
                acc = d if acc is None else acc + d
        return acc

    def kernel(x_ref, w_in_ref, b_in_ref, scale_ref, shift_ref, w_blk_ref,
               w_head_ref, b_head_ref, out_ref):
        # ----- InputBlock: conv3x3(x) + bias --------------------------------
        w_in = [w_in_ref[t] for t in range(9)]
        y = conv3x3(x_ref[...], w_in)
        act = (y + b_in_ref[...]).reshape(N, H, W, F)        # f32 tower state

        scales = scale_ref[...]                              # (2*nblocks, F)
        shifts = shift_ref[...]

        def bnconv(x_nhwf, layer):
            # folded BatchNorm (inference) + ReLU, then 3x3 conv (bias=False)
            sc = scales[layer:layer + 1, :].reshape(1, 1, 1, F)
            sh = shifts[layer:layer + 1, :].reshape(1, 1, 1, F)
            a = jnp.maximum(x_nhwf * sc + sh, 0.0)
            w = [w_blk_ref[9 * layer + t] for t in range(9)]
            return conv3x3(a, w)

        # TODO(synk): switch to lax.fori_loop / a grid axis for large nblocks.
        for b in range(nblocks):                             # static unroll
            h = bnconv(act, 2 * b).reshape(N, H, W, F)
            act = act + bnconv(h, 2 * b + 1).reshape(N, H, W, F)

        # ----- fused 1x1 heads: one lane-dense (M, c_pad) matmul ------------
        out = jnp.dot(act.reshape(M, F).astype(jnp.bfloat16), w_head_ref[...],
                      preferred_element_type=jnp.float32) + b_head_ref[...]
        out_ref[...] = out.astype(out_ref.dtype)

    return kernel


# ---------------------------------------------------------------------------
# Wrapper: host-side packing + single pallas_call
# ---------------------------------------------------------------------------
def gamenet_forward_pallas(params, x_nchw):
    x = jnp.transpose(x_nchw, (0, 2, 3, 1)).astype(jnp.float32)  # NCHW->NHWC
    N, H, W, cin = x.shape
    w_in = params["input"]["w"]                                   # (3,3,cin,F)
    F = w_in.shape[-1]
    nblocks = len(params["blocks"])
    M = N * H * W

    # Host-side packing (tiny, traced once under jit): tap-major bf16 conv
    # weights, stacked BN scale/shift, merged + lane-padded bf16 head weights.
    w_in_taps = w_in.reshape(9, cin, F).astype(jnp.bfloat16)      # t = 3dy+dx
    b_in = params["input"]["b"].reshape(1, F).astype(jnp.float32)

    scales, shifts, w_blks = [], [], []
    for blk in params["blocks"]:
        for name in ("conv1", "conv2"):
            scales.append(blk[name]["scale"])
            shifts.append(blk[name]["shift"])
            w_blks.append(blk[name]["w"].reshape(9, F, F))
    scale_all = jnp.stack(scales, axis=0).astype(jnp.float32)     # (2B, F)
    shift_all = jnp.stack(shifts, axis=0).astype(jnp.float32)     # (2B, F)
    w_blk_all = jnp.concatenate(w_blks, 0).astype(jnp.bfloat16)   # (2B*9,F,F)

    head_names = list(params["heads"].keys())
    head_ch = [params["heads"][k]["w"].shape[-1] for k in head_names]
    c_total = sum(head_ch)
    c_pad = _round_up(max(c_total, 1), 128)                       # lane-dense
    w_head = jnp.concatenate([params["heads"][k]["w"] for k in head_names], 1)
    b_head = jnp.concatenate([params["heads"][k]["b"] for k in head_names], 0)
    w_head = jnp.pad(w_head, ((0, 0), (0, c_pad - c_total)))
    w_head = w_head.astype(jnp.bfloat16)
    b_head = jnp.pad(b_head, (0, c_pad - c_total)).reshape(1, c_pad)
    b_head = b_head.astype(jnp.float32)

    kernel = make_gamenet_kernel(N, H, W, cin, F, nblocks)
    vmem_spec = pl.BlockSpec(memory_space=pltpu.MemorySpace.VMEM)
    out_flat = pl.pallas_call(
        kernel,
        out_shape=jax.ShapeDtypeStruct((M, c_pad), jnp.float32),
        in_specs=[vmem_spec] * 8,
        out_specs=vmem_spec,
        compiler_params=pltpu.CompilerParams(
            vmem_limit_bytes=32 * 1024 * 1024),
    )(x, w_in_taps, b_in, scale_all, shift_all, w_blk_all, w_head, b_head)

    out = out_flat.reshape(N, H, W, c_pad)
    results = {}
    off = 0
    for k, c in zip(head_names, head_ch):
        results[k] = jnp.transpose(out[..., off:off + c], (0, 3, 1, 2))  # NCHW
        off += c
    return results


# ---------------------------------------------------------------------------
# Parameter construction (deterministic, mirrors GameNet.__init__ shapes)
# ---------------------------------------------------------------------------
def _fold_bn(gamma, beta, running_mean, running_var, eps=1e-5):
    scale = gamma / jnp.sqrt(running_var + eps)
    shift = beta - running_mean * scale
    return scale, shift


def init_params(key, input_channels, nfilters, nblocks, head_channels):
    keys = iter(jax.random.split(key, 64))

    def randn(shape, s=0.1):
        return (s * jax.random.normal(next(keys), shape)).astype(jnp.float32)

    params = {}
    # InputBlock: Conv2d(input_channels -> nfilters, 3x3, padding=1, bias=True)
    params["input"] = {
        "w": randn((3, 3, input_channels, nfilters)),
        "b": randn((nfilters,)),
    }
    # ResNet blocks: 2 x BNConv(nfilters, 3x3, bias=False) each
    blocks = []
    for _ in range(nblocks):
        blk = {}
        for name in ("conv1", "conv2"):
            gamma = 1.0 + randn((nfilters,))
            beta = randn((nfilters,))
            rmean = jnp.zeros((nfilters,), jnp.float32)   # fresh BN buffers
            rvar = jnp.ones((nfilters,), jnp.float32)
            scale, shift = _fold_bn(gamma, beta, rmean, rvar)
            blk[name] = {
                "scale": scale,
                "shift": shift,
                "w": randn((3, 3, nfilters, nfilters)),
            }
        blocks.append(blk)
    params["blocks"] = blocks
    # Heads: dict of 1x1 convs (nfilters -> head_channels[k]), bias=True
    params["heads"] = {
        k: {"w": randn((nfilters, c)), "b": randn((c,))}
        for k, c in head_channels.items()
    }
    return params


# ---------------------------------------------------------------------------
# Pure-JAX f32 reference (lax.conv) for correctness check
# ---------------------------------------------------------------------------
def gamenet_forward_ref(params, x_nchw):
    dn = ("NHWC", "HWIO", "NHWC")
    x = jnp.transpose(x_nchw, (0, 2, 3, 1)).astype(jnp.float32)

    def conv3(x, w):
        return jax.lax.conv_general_dilated(x, w, (1, 1), "SAME",
                                            dimension_numbers=dn)

    out = conv3(x, params["input"]["w"]) + params["input"]["b"]
    for blk in params["blocks"]:
        h = conv3(jnp.maximum(out * blk["conv1"]["scale"]
                              + blk["conv1"]["shift"], 0.0), blk["conv1"]["w"])
        out = out + conv3(jnp.maximum(h * blk["conv2"]["scale"]
                                      + blk["conv2"]["shift"], 0.0),
                          blk["conv2"]["w"])
    results = {}
    for k, hp in params["heads"].items():
        y = jnp.einsum("nhwc,cd->nhwd", out, hp["w"]) + hp["b"]
        results[k] = jnp.transpose(y, (0, 3, 1, 2))
    return results


# ---------------------------------------------------------------------------
if __name__ == "__main__":
    # Small GameNet config: 4 input planes, 32 filters, 2 residual blocks,
    # heads = {"policy": 1x1 conv -> 2ch, "value": 1x1 conv -> 1ch}
    N, C_IN, H, W = 2, 4, 8, 8
    NFILTERS, NBLOCKS = 32, 2
    HEAD_CHANNELS = {"policy": 2, "value": 1}

    key = jax.random.PRNGKey(0)
    kp, kx = jax.random.split(key)
    params = init_params(kp, C_IN, NFILTERS, NBLOCKS, HEAD_CHANNELS)
    x = jax.random.normal(kx, (N, C_IN, H, W), dtype=jnp.float32)  # NCHW input

    fwd = jax.jit(gamenet_forward_pallas)
    out = fwd(params, x)
    out = jax.tree_util.tree_map(jax.block_until_ready, out)

    ref = gamenet_forward_ref(params, x)
    for k in HEAD_CHANNELS:
        assert out[k].shape == (N, HEAD_CHANNELS[k], H, W), out[k].shape
        err = float(jnp.max(jnp.abs(out[k] - ref[k])))
        # bf16 matmul operands over a 5-conv chain: relaxed vs. the f32 ref.
        assert err < 5e-2, f"head {k}: max abs err {err}"

    print("KERNEL_OK")
</pallas_src>

<mosaic_0001>
module attributes {stable_mosaic.version = 11 : i64} {
  func.func @kernel(%arg0: memref<2x8x8x4xf32, #tpu.memory_space<vmem>>, %arg1: memref<9x4x32xbf16, #tpu.memory_space<vmem>>, %arg2: memref<1x32xf32, #tpu.memory_space<vmem>>, %arg3: memref<4x32xf32, #tpu.memory_space<vmem>>, %arg4: memref<4x32xf32, #tpu.memory_space<vmem>>, %arg5: memref<36x32x32xbf16, #tpu.memory_space<vmem>>, %arg6: memref<32x128xbf16, #tpu.memory_space<vmem>>, %arg7: memref<1x128xf32, #tpu.memory_space<vmem>>, %arg8: memref<128x128xf32, #tpu.memory_space<vmem>>) attributes {dimension_semantics = [], scalar_prefetch = 0 : i64, scratch_operands = 0 : i64, tpu.core_type = #tpu.core_type<tc>} {
    %c0 = arith.constant 0 : index
    %c0_0 = arith.constant 0 : index
    %c0_1 = arith.constant 0 : index
    %0 = vector.load %arg1[%c0, %c0_0, %c0_1] : memref<9x4x32xbf16, #tpu.memory_space<vmem>>, vector<1x4x32xbf16>
    %1 = vector.shape_cast %0 : vector<1x4x32xbf16> to vector<4x32xbf16>
    %c1 = arith.constant 1 : index
    %c0_2 = arith.constant 0 : index
    %c0_3 = arith.constant 0 : index
    %2 = vector.load %arg1[%c1, %c0_2, %c0_3] : memref<9x4x32xbf16, #tpu.memory_space<vmem>>, vector<1x4x32xbf16>
    %3 = vector.shape_cast %2 : vector<1x4x32xbf16> to vector<4x32xbf16>
    %c2 = arith.constant 2 : index
    %c0_4 = arith.constant 0 : index
    %c0_5 = arith.constant 0 : index
    %4 = vector.load %arg1[%c2, %c0_4, %c0_5] : memref<9x4x32xbf16, #tpu.memory_space<vmem>>, vector<1x4x32xbf16>
    %5 = vector.shape_cast %4 : vector<1x4x32xbf16> to vector<4x32xbf16>
    %c3 = arith.constant 3 : index
    %c0_6 = arith.constant 0 : index
    %c0_7 = arith.constant 0 : index
    %6 = vector.load %arg1[%c3, %c0_6, %c0_7] : memref<9x4x32xbf16, #tpu.memory_space<vmem>>, vector<1x4x32xbf16>
    %7 = vector.shape_cast %6 : vector<1x4x32xbf16> to vector<4x32xbf16>
    %c4 = arith.constant 4 : index
    %c0_8 = arith.constant 0 : index
    %c0_9 = arith.constant 0 : index
    %8 = vector.load %arg1[%c4, %c0_8, %c0_9] : memref<9x4x32xbf16, #tpu.memory_space<vmem>>, vector<1x4x32xbf16>
    %9 = vector.shape_cast %8 : vector<1x4x32xbf16> to vector<4x32xbf16>
    %c5 = arith.constant 5 : index
    %c0_10 = arith.constant 0 : index
    %c0_11 = arith.constant 0 : index
    %10 = vector.load %arg1[%c5, %c0_10, %c0_11] : memref<9x4x32xbf16, #tpu.memory_space<vmem>>, vector<1x4x32xbf16>
    %11 = vector.shape_cast %10 : vector<1x4x32xbf16> to vector<4x32xbf16>
    %c6 = arith.constant 6 : index
    %c0_12 = arith.constant 0 : index
    %c0_13 = arith.constant 0 : index
    %12 = vector.load %arg1[%c6, %c0_12, %c0_13] : memref<9x4x32xbf16, #tpu.memory_space<vmem>>, vector<1x4x32xbf16>
    %13 = vector.shape_cast %12 : vector<1x4x32xbf16> to vector<4x32xbf16>
    %c7 = arith.constant 7 : index
    %c0_14 = arith.constant 0 : index
    %c0_15 = arith.constant 0 : index
    %14 = vector.load %arg1[%c7, %c0_14, %c0_15] : memref<9x4x32xbf16, #tpu.memory_space<vmem>>, vector<1x4x32xbf16>
    %15 = vector.shape_cast %14 : vector<1x4x32xbf16> to vector<4x32xbf16>
    %c8 = arith.constant 8 : index
    %c0_16 = arith.constant 0 : index
    %c0_17 = arith.constant 0 : index
    %16 = vector.load %arg1[%c8, %c0_16, %c0_17] : memref<9x4x32xbf16, #tpu.memory_space<vmem>>, vector<1x4x32xbf16>
    %17 = vector.shape_cast %16 : vector<1x4x32xbf16> to vector<4x32xbf16>
    %c0_18 = arith.constant 0 : index
    %c0_19 = arith.constant 0 : index
    %c0_20 = arith.constant 0 : index
    %c0_21 = arith.constant 0 : index
    %18 = vector.load %arg0[%c0_18, %c0_19, %c0_20, %c0_21] : memref<2x8x8x4xf32, #tpu.memory_space<vmem>>, vector<2x8x8x4xf32>
    %cst = arith.constant 0.000000e+00 : f32
    %19 = vector.broadcast %cst : f32 to vector<2x1x8x4xf32>
    %cst_22 = arith.constant 0.000000e+00 : f32
    %20 = vector.broadcast %cst_22 : f32 to vector<2x8x1x4xf32>
    %21 = vector.extract_strided_slice %18 {offsets = [0, 0, 0, 0], sizes = [2, 7, 8, 4], strides = [1, 1, 1, 1]} : vector<2x8x8x4xf32> to vector<2x7x8x4xf32>
    %22 = tpu.concatenate %19, %21 in 1 : vector<2x1x8x4xf32>, vector<2x7x8x4xf32> -> vector<2x8x8x4xf32>
    %23 = vector.extract_strided_slice %18 {offsets = [0, 1, 0, 0], sizes = [2, 7, 8, 4], strides = [1, 1, 1, 1]} : vector<2x8x8x4xf32> to vector<2x7x8x4xf32>
    %24 = tpu.concatenate %23, %19 in 1 : vector<2x7x8x4xf32>, vector<2x1x8x4xf32> -> vector<2x8x8x4xf32>
    %25 = vector.extract_strided_slice %22 {offsets = [0, 0, 0, 0], sizes = [2, 8, 7, 4], strides = [1, 1, 1, 1]} : vector<2x8x8x4xf32> to vector<2x8x7x4xf32>
    %26 = tpu.concatenate %20, %25 in 2 : vector<2x8x1x4xf32>, vector<2x8x7x4xf32> -> vector<2x8x8x4xf32>
    %27 = vector.extract_strided_slice %22 {offsets = [0, 0, 1, 0], sizes = [2, 8, 7, 4], strides = [1, 1, 1, 1]} : vector<2x8x8x4xf32> to vector<2x8x7x4xf32>
    %28 = tpu.concatenate %27, %20 in 2 : vector<2x8x7x4xf32>, vector<2x8x1x4xf32> -> vector<2x8x8x4xf32>
    %29 = vector.shape_cast %26 : vector<2x8x8x4xf32> to vector<128x4xf32>
    %30 = arith.truncf %29 : vector<128x4xf32> to vector<128x4xbf16>
    %cst_23 = arith.constant dense<0.000000e+00> : vector<128x32xf32>
    %31 = tpu.matmul %30, %1, %cst_23 {dimension_numbers = #tpu.dot_dimension_numbers<[1], [0], [0], [1], [0, 0, 1, 1], [], []>} : vector<128x4xbf16>, vector<4x32xbf16>, vector<128x32xf32> -> vector<128x32xf32>
    %32 = vector.shape_cast %22 : vector<2x8x8x4xf32> to vector<128x4xf32>
    %33 = arith.truncf %32 : vector<128x4xf32> to vector<128x4xbf16>
    %cst_24 = arith.constant dense<0.000000e+00> : vector<128x32xf32>
    %34 = tpu.matmul %33, %3, %cst_24 {dimension_numbers = #tpu.dot_dimension_numbers<[1], [0], [0], [1], [0, 0, 1, 1], [], []>} : vector<128x4xbf16>, vector<4x32xbf16>, vector<128x32xf32> -> vector<128x32xf32>
    %35 = arith.addf %31, %34 : vector<128x32xf32>
    %36 = vector.shape_cast %28 : vector<2x8x8x4xf32> to vector<128x4xf32>
    %37 = arith.truncf %36 : vector<128x4xf32> to vector<128x4xbf16>
    %cst_25 = arith.constant dense<0.000000e+00> : vector<128x32xf32>
    %38 = tpu.matmul %37, %5, %cst_25 {dimension_numbers = #tpu.dot_dimension_numbers<[1], [0], [0], [1], [0, 0, 1, 1], [], []>} : vector<128x4xbf16>, vector<4x32xbf16>, vector<128x32xf32> -> vector<128x32xf32>
    %39 = arith.addf %35, %38 : vector<128x32xf32>
    %40 = vector.extract_strided_slice %18 {offsets = [0, 0, 0, 0], sizes = [2, 8, 7, 4], strides = [1, 1, 1, 1]} : vector<2x8x8x4xf32> to vector<2x8x7x4xf32>
    %41 = tpu.concatenate %20, %40 in 2 : vector<2x8x1x4xf32>, vector<2x8x7x4xf32> -> vector<2x8x8x4xf32>
    %42 = vector.extract_strided_slice %18 {offsets = [0, 0, 1, 0], sizes = [2, 8, 7, 4], strides = [1, 1, 1, 1]} : vector<2x8x8x4xf32> to vector<2x8x7x4xf32>
    %43 = tpu.concatenate %42, %20 in 2 : vector<2x8x7x4xf32>, vector<2x8x1x4xf32> -> vector<2x8x8x4xf32>
    %44 = vector.shape_cast %41 : vector<2x8x8x4xf32> to vector<128x4xf32>
    %45 = arith.truncf %44 : vector<128x4xf32> to vector<128x4xbf16>
    %cst_26 = arith.constant dense<0.000000e+00> : vector<128x32xf32>
    %46 = tpu.matmul %45, %7, %cst_26 {dimension_numbers = #tpu.dot_dimension_numbers<[1], [0], [0], [1], [0, 0, 1, 1], [], []>} : vector<128x4xbf16>, vector<4x32xbf16>, vector<128x32xf32> -> vector<128x32xf32>
    %47 = arith.addf %39, %46 : vector<128x32xf32>
    %48 = vector.shape_cast %18 : vector<2x8x8x4xf32> to vector<128x4xf32>
    %49 = arith.truncf %48 : vector<128x4xf32> to vector<128x4xbf16>
    %cst_27 = arith.constant dense<0.000000e+00> : vector<128x32xf32>
    %50 = tpu.matmul %49, %9, %cst_27 {dimension_numbers = #tpu.dot_dimension_numbers<[1], [0], [0], [1], [0, 0, 1, 1], [], []>} : vector<128x4xbf16>, vector<4x32xbf16>, vector<128x32xf32> -> vector<128x32xf32>
    %51 = arith.addf %47, %50 : vector<128x32xf32>
    %52 = vector.shape_cast %43 : vector<2x8x8x4xf32> to vector<128x4xf32>
    %53 = arith.truncf %52 : vector<128x4xf32> to vector<128x4xbf16>
    %cst_28 = arith.constant dense<0.000000e+00> : vector<128x32xf32>
    %54 = tpu.matmul %53, %11, %cst_28 {dimension_numbers = #tpu.dot_dimension_numbers<[1], [0], [0], [1], [0, 0, 1, 1], [], []>} : vector<128x4xbf16>, vector<4x32xbf16>, vector<128x32xf32> -> vector<128x32xf32>
    %55 = arith.addf %51, %54 : vector<128x32xf32>
    %56 = vector.extract_strided_slice %24 {offsets = [0, 0, 0, 0], sizes = [2, 8, 7, 4], strides = [1, 1, 1, 1]} : vector<2x8x8x4xf32> to vector<2x8x7x4xf32>
    %57 = tpu.concatenate %20, %56 in 2 : vector<2x8x1x4xf32>, vector<2x8x7x4xf32> -> vector<2x8x8x4xf32>
    %58 = vector.extract_strided_slice %24 {offsets = [0, 0, 1, 0], sizes = [2, 8, 7, 4], strides = [1, 1, 1, 1]} : vector<2x8x8x4xf32> to vector<2x8x7x4xf32>
    %59 = tpu.concatenate %58, %20 in 2 : vector<2x8x7x4xf32>, vector<2x8x1x4xf32> -> vector<2x8x8x4xf32>
    %60 = vector.shape_cast %57 : vector<2x8x8x4xf32> to vector<128x4xf32>
    %61 = arith.truncf %60 : vector<128x4xf32> to vector<128x4xbf16>
    %cst_29 = arith.constant dense<0.000000e+00> : vector<128x32xf32>
    %62 = tpu.matmul %61, %13, %cst_29 {dimension_numbers = #tpu.dot_dimension_numbers<[1], [0], [0], [1], [0, 0, 1, 1], [], []>} : vector<128x4xbf16>, vector<4x32xbf16>, vector<128x32xf32> -> vector<128x32xf32>
    %63 = arith.addf %55, %62 : vector<128x32xf32>
    %64 = vector.shape_cast %24 : vector<2x8x8x4xf32> to vector<128x4xf32>
    %65 = arith.truncf %64 : vector<128x4xf32> to vector<128x4xbf16>
    %cst_30 = arith.constant dense<0.000000e+00> : vector<128x32xf32>
    %66 = tpu.matmul %65, %15, %cst_30 {dimension_numbers = #tpu.dot_dimension_numbers<[1], [0], [0], [1], [0, 0, 1, 1], [], []>} : vector<128x4xbf16>, vector<4x32xbf16>, vector<128x32xf32> -> vector<128x32xf32>
    %67 = arith.addf %63, %66 : vector<128x32xf32>
    %68 = vector.shape_cast %59 : vector<2x8x8x4xf32> to vector<128x4xf32>
    %69 = arith.truncf %68 : vector<128x4xf32> to vector<128x4xbf16>
    %cst_31 = arith.constant dense<0.000000e+00> : vector<128x32xf32>
    %70 = tpu.matmul %69, %17, %cst_31 {dimension_numbers = #tpu.dot_dimension_numbers<[1], [0], [0], [1], [0, 0, 1, 1], [], []>} : vector<128x4xbf16>, vector<4x32xbf16>, vector<128x32xf32> -> vector<128x32xf32>
    %71 = arith.addf %67, %70 : vector<128x32xf32>
    %c0_32 = arith.constant 0 : index
    %c0_33 = arith.constant 0 : index
    %72 = vector.load %arg2[%c0_32, %c0_33] : memref<1x32xf32, #tpu.memory_space<vmem>>, vector<1x32xf32>
    %73 = vector.broadcast %72 : vector<1x32xf32> to vector<128x32xf32>
    %74 = arith.addf %71, %73 : vector<128x32xf32>
    %75 = vector.shape_cast %74 : vector<128x32xf32> to vector<2x8x8x32xf32>
    %c0_34 = arith.constant 0 : index
    %c0_35 = arith.constant 0 : index
    %76 = vector.load %arg3[%c0_34, %c0_35] : memref<4x32xf32, #tpu.memory_space<vmem>>, vector<4x32xf32>
    %c0_36 = arith.constant 0 : index
    %c0_37 = arith.constant 0 : index
    %77 = vector.load %arg4[%c0_36, %c0_37] : memref<4x32xf32, #tpu.memory_space<vmem>>, vector<4x32xf32>
    %78 = vector.extract_strided_slice %76 {offsets = [0, 0], sizes = [1, 32], strides = [1, 1]} : vector<4x32xf32> to vector<1x32xf32>
    %79 = vector.shape_cast %78 : vector<1x32xf32> to vector<1x1x1x32xf32>
    %80 = vector.extract_strided_slice %77 {offsets = [0, 0], sizes = [1, 32], strides = [1, 1]} : vector<4x32xf32> to vector<1x32xf32>
    %81 = vector.shape_cast %80 : vector<1x32xf32> to vector<1x1x1x32xf32>
    %82 = vector.broadcast %79 : vector<1x1x1x32xf32> to vector<2x8x8x32xf32>
    %83 = arith.mulf %75, %82 : vector<2x8x8x32xf32>
    %84 = vector.broadcast %81 : vector<1x1x1x32xf32> to vector<2x8x8x32xf32>
    %85 = arith.addf %83, %84 : vector<2x8x8x32xf32>
    %cst_38 = arith.constant 0.000000e+00 : f32
    %86 = vector.broadcast %cst_38 : f32 to vector<2x8x8x32xf32>
    %87 = arith.maximumf %85, %86 : vector<2x8x8x32xf32>
    %c0_39 = arith.constant 0 : index
    %c0_40 = arith.constant 0 : index
    %c0_41 = arith.constant 0 : index
    %88 = vector.load %arg5[%c0_39, %c0_40, %c0_41] : memref<36x32x32xbf16, #tpu.memory_space<vmem>>, vector<1x32x32xbf16>
    %89 = vector.shape_cast %88 : vector<1x32x32xbf16> to vector<32x32xbf16>
    %c1_42 = arith.constant 1 : index
    %c0_43 = arith.constant 0 : index
    %c0_44 = arith.constant 0 : index
    %90 = vector.load %arg5[%c1_42, %c0_43, %c0_44] : memref<36x32x32xbf16, #tpu.memory_space<vmem>>, vector<1x32x32xbf16>
    %91 = vector.shape_cast %90 : vector<1x32x32xbf16> to vector<32x32xbf16>
    %c2_45 = arith.constant 2 : index
    %c0_46 = arith.constant 0 : index
    %c0_47 = arith.constant 0 : index
    %92 = vector.load %arg5[%c2_45, %c0_46, %c0_47] : memref<36x32x32xbf16, #tpu.memory_space<vmem>>, vector<1x32x32xbf16>
    %93 = vector.shape_cast %92 : vector<1x32x32xbf16> to vector<32x32xbf16>
    %c3_48 = arith.constant 3 : index
    %c0_49 = arith.constant 0 : index
    %c0_50 = arith.constant 0 : index
    %94 = vector.load %arg5[%c3_48, %c0_49, %c0_50] : memref<36x32x32xbf16, #tpu.memory_space<vmem>>, vector<1x32x32xbf16>
    %95 = vector.shape_cast %94 : vector<1x32x32xbf16> to vector<32x32xbf16>
    %c4_51 = arith.constant 4 : index
    %c0_52 = arith.constant 0 : index
    %c0_53 = arith.constant 0 : index
    %96 = vector.load %arg5[%c4_51, %c0_52, %c0_53] : memref<36x32x32xbf16, #tpu.memory_space<vmem>>, vector<1x32x32xbf16>
    %97 = vector.shape_cast %96 : vector<1x32x32xbf16> to vector<32x32xbf16>
    %c5_54 = arith.constant 5 : index
    %c0_55 = arith.constant 0 : index
    %c0_56 = arith.constant 0 : index
    %98 = vector.load %arg5[%c5_54, %c0_55, %c0_56] : memref<36x32x32xbf16, #tpu.memory_space<vmem>>, vector<1x32x32xbf16>
    %99 = vector.shape_cast %98 : vector<1x32x32xbf16> to vector<32x32xbf16>
    %c6_57 = arith.constant 6 : index
    %c0_58 = arith.constant 0 : index
    %c0_59 = arith.constant 0 : index
    %100 = vector.load %arg5[%c6_57, %c0_58, %c0_59] : memref<36x32x32xbf16, #tpu.memory_space<vmem>>, vector<1x32x32xbf16>
    %101 = vector.shape_cast %100 : vector<1x32x32xbf16> to vector<32x32xbf16>
    %c7_60 = arith.constant 7 : index
    %c0_61 = arith.constant 0 : index
    %c0_62 = arith.constant 0 : index
    %102 = vector.load %arg5[%c7_60, %c0_61, %c0_62] : memref<36x32x32xbf16, #tpu.memory_space<vmem>>, vector<1x32x32xbf16>
    %103 = vector.shape_cast %102 : vector<1x32x32xbf16> to vector<32x32xbf16>
    %c8_63 = arith.constant 8 : index
    %c0_64 = arith.constant 0 : index
    %c0_65 = arith.constant 0 : index
    %104 = vector.load %arg5[%c8_63, %c0_64, %c0_65] : memref<36x32x32xbf16, #tpu.memory_space<vmem>>, vector<1x32x32xbf16>
    %105 = vector.shape_cast %104 : vector<1x32x32xbf16> to vector<32x32xbf16>
    %cst_66 = arith.constant 0.000000e+00 : f32
    %106 = vector.broadcast %cst_66 : f32 to vector<2x1x8x32xf32>
    %cst_67 = arith.constant 0.000000e+00 : f32
    %107 = vector.broadcast %cst_67 : f32 to vector<2x8x1x32xf32>
    %108 = vector.extract_strided_slice %87 {offsets = [0, 0, 0, 0], sizes = [2, 7, 8, 32], strides = [1, 1, 1, 1]} : vector<2x8x8x32xf32> to vector<2x7x8x32xf32>
    %109 = tpu.concatenate %106, %108 in 1 : vector<2x1x8x32xf32>, vector<2x7x8x32xf32> -> vector<2x8x8x32xf32>
    %110 = vector.extract_strided_slice %87 {offsets = [0, 1, 0, 0], sizes = [2, 7, 8, 32], strides = [1, 1, 1, 1]} : vector<2x8x8x32xf32> to vector<2x7x8x32xf32>
    %111 = tpu.concatenate %110, %106 in 1 : vector<2x7x8x32xf32>, vector<2x1x8x32xf32> -> vector<2x8x8x32xf32>
    %112 = vector.extract_strided_slice %109 {offsets = [0, 0, 0, 0], sizes = [2, 8, 7, 32], strides = [1, 1, 1, 1]} : vector<2x8x8x32xf32> to vector<2x8x7x32xf32>
    %113 = tpu.concatenate %107, %112 in 2 : vector<2x8x1x32xf32>, vector<2x8x7x32xf32> -> vector<2x8x8x32xf32>
    %114 = vector.extract_strided_slice %109 {offsets = [0, 0, 1, 0], sizes = [2, 8, 7, 32], strides = [1, 1, 1, 1]} : vector<2x8x8x32xf32> to vector<2x8x7x32xf32>
    %115 = tpu.concatenate %114, %107 in 2 : vector<2x8x7x32xf32>, vector<2x8x1x32xf32> -> vector<2x8x8x32xf32>
    %116 = vector.shape_cast %113 : vector<2x8x8x32xf32> to vector<128x32xf32>
    %117 = arith.truncf %116 : vector<128x32xf32> to vector<128x32xbf16>
    %cst_68 = arith.constant dense<0.000000e+00> : vector<128x32xf32>
    %118 = tpu.matmul %117, %89, %cst_68 {dimension_numbers = #tpu.dot_dimension_numbers<[1], [0], [0], [1], [0, 0, 1, 1], [], []>} : vector<128x32xbf16>, vector<32x32xbf16>, vector<128x32xf32> -> vector<128x32xf32>
    %119 = vector.shape_cast %109 : vector<2x8x8x32xf32> to vector<128x32xf32>
    %120 = arith.truncf %119 : vector<128x32xf32> to vector<128x32xbf16>
    %cst_69 = arith.constant dense<0.000000e+00> : vector<128x32xf32>
    %121 = tpu.matmul %120, %91, %cst_69 {dimension_numbers = #tpu.dot_dimension_numbers<[1], [0], [0], [1], [0, 0, 1, 1], [], []>} : vector<128x32xbf16>, vector<32x32xbf16>, vector<128x32xf32> -> vector<128x32xf32>
    %122 = arith.addf %118, %121 : vector<128x32xf32>
    %123 = vector.shape_cast %115 : vector<2x8x8x32xf32> to vector<128x32xf32>
    %124 = arith.truncf %123 : vector<128x32xf32> to vector<128x32xbf16>
    %cst_70 = arith.constant dense<0.000000e+00> : vector<128x32xf32>
    %125 = tpu.matmul %124, %93, %cst_70 {dimension_numbers = #tpu.dot_dimension_numbers<[1], [0], [0], [1], [0, 0, 1, 1], [], []>} : vector<128x32xbf16>, vector<32x32xbf16>, vector<128x32xf32> -> vector<128x32xf32>
    %126 = arith.addf %122, %125 : vector<128x32xf32>
    %127 = vector.extract_strided_slice %87 {offsets = [0, 0, 0, 0], sizes = [2, 8, 7, 32], strides = [1, 1, 1, 1]} : vector<2x8x8x32xf32> to vector<2x8x7x32xf32>
    %128 = tpu.concatenate %107, %127 in 2 : vector<2x8x1x32xf32>, vector<2x8x7x32xf32> -> vector<2x8x8x32xf32>
    %129 = vector.extract_strided_slice %87 {offsets = [0, 0, 1, 0], sizes = [2, 8, 7, 32], strides = [1, 1, 1, 1]} : vector<2x8x8x32xf32> to vector<2x8x7x32xf32>
    %130 = tpu.concatenate %129, %107 in 2 : vector<2x8x7x32xf32>, vector<2x8x1x32xf32> -> vector<2x8x8x32xf32>
    %131 = vector.shape_cast %128 : vector<2x8x8x32xf32> to vector<128x32xf32>
    %132 = arith.truncf %131 : vector<128x32xf32> to vector<128x32xbf16>
    %cst_71 = arith.constant dense<0.000000e+00> : vector<128x32xf32>
    %133 = tpu.matmul %132, %95, %cst_71 {dimension_numbers = #tpu.dot_dimension_numbers<[1], [0], [0], [1], [0, 0, 1, 1], [], []>} : vector<128x32xbf16>, vector<32x32xbf16>, vector<128x32xf32> -> vector<128x32xf32>
    %134 = arith.addf %126, %133 : vector<128x32xf32>
    %135 = vector.shape_cast %87 : vector<2x8x8x32xf32> to vector<128x32xf32>
    %136 = arith.truncf %135 : vector<128x32xf32> to vector<128x32xbf16>
    %cst_72 = arith.constant dense<0.000000e+00> : vector<128x32xf32>
    %137 = tpu.matmul %136, %97, %cst_72 {dimension_numbers = #tpu.dot_dimension_numbers<[1], [0], [0], [1], [0, 0, 1, 1], [], []>} : vector<128x32xbf16>, vector<32x32xbf16>, vector<128x32xf32> -> vector<128x32xf32>
    %138 = arith.addf %134, %137 : vector<128x32xf32>
    %139 = vector.shape_cast %130 : vector<2x8x8x32xf32> to vector<128x32xf32>
    %140 = arith.truncf %139 : vector<128x32xf32> to vector<128x32xbf16>
    %cst_73 = arith.constant dense<0.000000e+00> : vector<128x32xf32>
    %141 = tpu.matmul %140, %99, %cst_73 {dimension_numbers = #tpu.dot_dimension_numbers<[1], [0], [0], [1], [0, 0, 1, 1], [], []>} : vector<128x32xbf16>, vector<32x32xbf16>, vector<128x32xf32> -> vector<128x32xf32>
    %142 = arith.addf %138, %141 : vector<128x32xf32>
    %143 = vector.extract_strided_slice %111 {offsets = [0, 0, 0, 0], sizes = [2, 8, 7, 32], strides = [1, 1, 1, 1]} : vector<2x8x8x32xf32> to vector<2x8x7x32xf32>
    %144 = tpu.concatenate %107, %143 in 2 : vector<2x8x1x32xf32>, vector<2x8x7x32xf32> -> vector<2x8x8x32xf32>
    %145 = vector.extract_strided_slice %111 {offsets = [0, 0, 1, 0], sizes = [2, 8, 7, 32], strides = [1, 1, 1, 1]} : vector<2x8x8x32xf32> to vector<2x8x7x32xf32>
    %146 = tpu.concatenate %145, %107 in 2 : vector<2x8x7x32xf32>, vector<2x8x1x32xf32> -> vector<2x8x8x32xf32>
    %147 = vector.shape_cast %144 : vector<2x8x8x32xf32> to vector<128x32xf32>
    %148 = arith.truncf %147 : vector<128x32xf32> to vector<128x32xbf16>
    %cst_74 = arith.constant dense<0.000000e+00> : vector<128x32xf32>
    %149 = tpu.matmul %148, %101, %cst_74 {dimension_numbers = #tpu.dot_dimension_numbers<[1], [0], [0], [1], [0, 0, 1, 1], [], []>} : vector<128x32xbf16>, vector<32x32xbf16>, vector<128x32xf32> -> vector<128x32xf32>
    %150 = arith.addf %142, %149 : vector<128x32xf32>
    %151 = vector.shape_cast %111 : vector<2x8x8x32xf32> to vector<128x32xf32>
    %152 = arith.truncf %151 : vector<128x32xf32> to vector<128x32xbf16>
    %cst_75 = arith.constant dense<0.000000e+00> : vector<128x32xf32>
    %153 = tpu.matmul %152, %103, %cst_75 {dimension_numbers = #tpu.dot_dimension_numbers<[1], [0], [0], [1], [0, 0, 1, 1], [], []>} : vector<128x32xbf16>, vector<32x32xbf16>, vector<128x32xf32> -> vector<128x32xf32>
    %154 = arith.addf %150, %153 : vector<128x32xf32>
    %155 = vector.shape_cast %146 : vector<2x8x8x32xf32> to vector<128x32xf32>
    %156 = arith.truncf %155 : vector<128x32xf32> to vector<128x32xbf16>
    %cst_76 = arith.constant dense<0.000000e+00> : vector<128x32xf32>
    %157 = tpu.matmul %156, %105, %cst_76 {dimension_numbers = #tpu.dot_dimension_numbers<[1], [0], [0], [1], [0, 0, 1, 1], [], []>} : vector<128x32xbf16>, vector<32x32xbf16>, vector<128x32xf32> -> vector<128x32xf32>
    %158 = arith.addf %154, %157 : vector<128x32xf32>
    %159 = vector.shape_cast %158 : vector<128x32xf32> to vector<2x8x8x32xf32>
    %160 = vector.extract_strided_slice %76 {offsets = [1, 0], sizes = [1, 32], strides = [1, 1]} : vector<4x32xf32> to vector<1x32xf32>
    %161 = vector.shape_cast %160 : vector<1x32xf32> to vector<1x1x1x32xf32>
    %162 = vector.extract_strided_slice %77 {offsets = [1, 0], sizes = [1, 32], strides = [1, 1]} : vector<4x32xf32> to vector<1x32xf32>
    %163 = vector.shape_cast %162 : vector<1x32xf32> to vector<1x1x1x32xf32>
    %164 = vector.broadcast %161 : vector<1x1x1x32xf32> to vector<2x8x8x32xf32>
    %165 = arith.mulf %159, %164 : vector<2x8x8x32xf32>
    %166 = vector.broadcast %163 : vector<1x1x1x32xf32> to vector<2x8x8x32xf32>
    %167 = arith.addf %165, %166 : vector<2x8x8x32xf32>
    %cst_77 = arith.constant 0.000000e+00 : f32
    %168 = vector.broadcast %cst_77 : f32 to vector<2x8x8x32xf32>
    %169 = arith.maximumf %167, %168 : vector<2x8x8x32xf32>
    %c9 = arith.constant 9 : index
    %c0_78 = arith.constant 0 : index
    %c0_79 = arith.constant 0 : index
    %170 = vector.load %arg5[%c9, %c0_78, %c0_79] : memref<36x32x32xbf16, #tpu.memory_space<vmem>>, vector<1x32x32xbf16>
    %171 = vector.shape_cast %170 : vector<1x32x32xbf16> to vector<32x32xbf16>
    %c10 = arith.constant 10 : index
    %c0_80 = arith.constant 0 : index
    %c0_81 = arith.constant 0 : index
    %172 = vector.load %arg5[%c10, %c0_80, %c0_81] : memref<36x32x32xbf16, #tpu.memory_space<vmem>>, vector<1x32x32xbf16>
    %173 = vector.shape_cast %172 : vector<1x32x32xbf16> to vector<32x32xbf16>
    %c11 = arith.constant 11 : index
    %c0_82 = arith.constant 0 : index
    %c0_83 = arith.constant 0 : index
    %174 = vector.load %arg5[%c11, %c0_82, %c0_83] : memref<36x32x32xbf16, #tpu.memory_space<vmem>>, vector<1x32x32xbf16>
    %175 = vector.shape_cast %174 : vector<1x32x32xbf16> to vector<32x32xbf16>
    %c12 = arith.constant 12 : index
    %c0_84 = arith.constant 0 : index
    %c0_85 = arith.constant 0 : index
    %176 = vector.load %arg5[%c12, %c0_84, %c0_85] : memref<36x32x32xbf16, #tpu.memory_space<vmem>>, vector<1x32x32xbf16>
    %177 = vector.shape_cast %176 : vector<1x32x32xbf16> to vector<32x32xbf16>
    %c13 = arith.constant 13 : index
    %c0_86 = arith.constant 0 : index
    %c0_87 = arith.constant 0 : index
    %178 = vector.load %arg5[%c13, %c0_86, %c0_87] : memref<36x32x32xbf16, #tpu.memory_space<vmem>>, vector<1x32x32xbf16>
    %179 = vector.shape_cast %178 : vector<1x32x32xbf16> to vector<32x32xbf16>
    %c14 = arith.constant 14 : index
    %c0_88 = arith.constant 0 : index
    %c0_89 = arith.constant 0 : index
    %180 = vector.load %arg5[%c14, %c0_88, %c0_89] : memref<36x32x32xbf16, #tpu.memory_space<vmem>>, vector<1x32x32xbf16>
    %181 = vector.shape_cast %180 : vector<1x32x32xbf16> to vector<32x32xbf16>
    %c15 = arith.constant 15 : index
    %c0_90 = arith.constant 0 : index
    %c0_91 = arith.constant 0 : index
    %182 = vector.load %arg5[%c15, %c0_90, %c0_91] : memref<36x32x32xbf16, #tpu.memory_space<vmem>>, vector<1x32x32xbf16>
    %183 = vector.shape_cast %182 : vector<1x32x32xbf16> to vector<32x32xbf16>
    %c16 = arith.constant 16 : index
    %c0_92 = arith.constant 0 : index
    %c0_93 = arith.constant 0 : index
    %184 = vector.load %arg5[%c16, %c0_92, %c0_93] : memref<36x32x32xbf16, #tpu.memory_space<vmem>>, vector<1x32x32xbf16>
    %185 = vector.shape_cast %184 : vector<1x32x32xbf16> to vector<32x32xbf16>
    %c17 = arith.constant 17 : index
    %c0_94 = arith.constant 0 : index
    %c0_95 = arith.constant 0 : index
    %186 = vector.load %arg5[%c17, %c0_94, %c0_95] : memref<36x32x32xbf16, #tpu.memory_space<vmem>>, vector<1x32x32xbf16>
    %187 = vector.shape_cast %186 : vector<1x32x32xbf16> to vector<32x32xbf16>
    %cst_96 = arith.constant 0.000000e+00 : f32
    %188 = vector.broadcast %cst_96 : f32 to vector<2x1x8x32xf32>
    %cst_97 = arith.constant 0.000000e+00 : f32
    %189 = vector.broadcast %cst_97 : f32 to vector<2x8x1x32xf32>
    %190 = vector.extract_strided_slice %169 {offsets = [0, 0, 0, 0], sizes = [2, 7, 8, 32], strides = [1, 1, 1, 1]} : vector<2x8x8x32xf32> to vector<2x7x8x32xf32>
    %191 = tpu.concatenate %188, %190 in 1 : vector<2x1x8x32xf32>, vector<2x7x8x32xf32> -> vector<2x8x8x32xf32>
    %192 = vector.extract_strided_slice %169 {offsets = [0, 1, 0, 0], sizes = [2, 7, 8, 32], strides = [1, 1, 1, 1]} : vector<2x8x8x32xf32> to vector<2x7x8x32xf32>
    %193 = tpu.concatenate %192, %188 in 1 : vector<2x7x8x32xf32>, vector<2x1x8x32xf32> -> vector<2x8x8x32xf32>
    %194 = vector.extract_strided_slice %191 {offsets = [0, 0, 0, 0], sizes = [2, 8, 7, 32], strides = [1, 1, 1, 1]} : vector<2x8x8x32xf32> to vector<2x8x7x32xf32>
    %195 = tpu.concatenate %189, %194 in 2 : vector<2x8x1x32xf32>, vector<2x8x7x32xf32> -> vector<2x8x8x32xf32>
    %196 = vector.extract_strided_slice %191 {offsets = [0, 0, 1, 0], sizes = [2, 8, 7, 32], strides = [1, 1, 1, 1]} : vector<2x8x8x32xf32> to vector<2x8x7x32xf32>
    %197 = tpu.concatenate %196, %189 in 2 : vector<2x8x7x32xf32>, vector<2x8x1x32xf32> -> vector<2x8x8x32xf32>
    %198 = vector.shape_cast %195 : vector<2x8x8x32xf32> to vector<128x32xf32>
    %199 = arith.truncf %198 : vector<128x32xf32> to vector<128x32xbf16>
    %cst_98 = arith.constant dense<0.000000e+00> : vector<128x32xf32>
    %200 = tpu.matmul %199, %171, %cst_98 {dimension_numbers = #tpu.dot_dimension_numbers<[1], [0], [0], [1], [0, 0, 1, 1], [], []>} : vector<128x32xbf16>, vector<32x32xbf16>, vector<128x32xf32> -> vector<128x32xf32>
    %201 = vector.shape_cast %191 : vector<2x8x8x32xf32> to vector<128x32xf32>
    %202 = arith.truncf %201 : vector<128x32xf32> to vector<128x32xbf16>
    %cst_99 = arith.constant dense<0.000000e+00> : vector<128x32xf32>
    %203 = tpu.matmul %202, %173, %cst_99 {dimension_numbers = #tpu.dot_dimension_numbers<[1], [0], [0], [1], [0, 0, 1, 1], [], []>} : vector<128x32xbf16>, vector<32x32xbf16>, vector<128x32xf32> -> vector<128x32xf32>
    %204 = arith.addf %200, %203 : vector<128x32xf32>
    %205 = vector.shape_cast %197 : vector<2x8x8x32xf32> to vector<128x32xf32>
    %206 = arith.truncf %205 : vector<128x32xf32> to vector<128x32xbf16>
    %cst_100 = arith.constant dense<0.000000e+00> : vector<128x32xf32>
    %207 = tpu.matmul %206, %175, %cst_100 {dimension_numbers = #tpu.dot_dimension_numbers<[1], [0], [0], [1], [0, 0, 1, 1], [], []>} : vector<128x32xbf16>, vector<32x32xbf16>, vector<128x32xf32> -> vector<128x32xf32>
    %208 = arith.addf %204, %207 : vector<128x32xf32>
    %209 = vector.extract_strided_slice %169 {offsets = [0, 0, 0, 0], sizes = [2, 8, 7, 32], strides = [1, 1, 1, 1]} : vector<2x8x8x32xf32> to vector<2x8x7x32xf32>
    %210 = tpu.concatenate %189, %209 in 2 : vector<2x8x1x32xf32>, vector<2x8x7x32xf32> -> vector<2x8x8x32xf32>
    %211 = vector.extract_strided_slice %169 {offsets = [0, 0, 1, 0], sizes = [2, 8, 7, 32], strides = [1, 1, 1, 1]} : vector<2x8x8x32xf32> to vector<2x8x7x32xf32>
    %212 = tpu.concatenate %211, %189 in 2 : vector<2x8x7x32xf32>, vector<2x8x1x32xf32> -> vector<2x8x8x32xf32>
    %213 = vector.shape_cast %210 : vector<2x8x8x32xf32> to vector<128x32xf32>
    %214 = arith.truncf %213 : vector<128x32xf32> to vector<128x32xbf16>
    %cst_101 = arith.constant dense<0.000000e+00> : vector<128x32xf32>
    %215 = tpu.matmul %214, %177, %cst_101 {dimension_numbers = #tpu.dot_dimension_numbers<[1], [0], [0], [1], [0, 0, 1, 1], [], []>} : vector<128x32xbf16>, vector<32x32xbf16>, vector<128x32xf32> -> vector<128x32xf32>
    %216 = arith.addf %208, %215 : vector<128x32xf32>
    %217 = vector.shape_cast %169 : vector<2x8x8x32xf32> to vector<128x32xf32>
    %218 = arith.truncf %217 : vector<128x32xf32> to vector<128x32xbf16>
    %cst_102 = arith.constant dense<0.000000e+00> : vector<128x32xf32>
    %219 = tpu.matmul %218, %179, %cst_102 {dimension_numbers = #tpu.dot_dimension_numbers<[1], [0], [0], [1], [0, 0, 1, 1], [], []>} : vector<128x32xbf16>, vector<32x32xbf16>, vector<128x32xf32> -> vector<128x32xf32>
    %220 = arith.addf %216, %219 : vector<128x32xf32>
    %221 = vector.shape_cast %212 : vector<2x8x8x32xf32> to vector<128x32xf32>
    %222 = arith.truncf %221 : vector<128x32xf32> to vector<128x32xbf16>
    %cst_103 = arith.constant dense<0.000000e+00> : vector<128x32xf32>
    %223 = tpu.matmul %222, %181, %cst_103 {dimension_numbers = #tpu.dot_dimension_numbers<[1], [0], [0], [1], [0, 0, 1, 1], [], []>} : vector<128x32xbf16>, vector<32x32xbf16>, vector<128x32xf32> -> vector<128x32xf32>
    %224 = arith.addf %220, %223 : vector<128x32xf32>
    %225 = vector.extract_strided_slice %193 {offsets = [0, 0, 0, 0], sizes = [2, 8, 7, 32], strides = [1, 1, 1, 1]} : vector<2x8x8x32xf32> to vector<2x8x7x32xf32>
    %226 = tpu.concatenate %189, %225 in 2 : vector<2x8x1x32xf32>, vector<2x8x7x32xf32> -> vector<2x8x8x32xf32>
    %227 = vector.extract_strided_slice %193 {offsets = [0, 0, 1, 0], sizes = [2, 8, 7, 32], strides = [1, 1, 1, 1]} : vector<2x8x8x32xf32> to vector<2x8x7x32xf32>
    %228 = tpu.concatenate %227, %189 in 2 : vector<2x8x7x32xf32>, vector<2x8x1x32xf32> -> vector<2x8x8x32xf32>
    %229 = vector.shape_cast %226 : vector<2x8x8x32xf32> to vector<128x32xf32>
    %230 = arith.truncf %229 : vector<128x32xf32> to vector<128x32xbf16>
    %cst_104 = arith.constant dense<0.000000e+00> : vector<128x32xf32>
    %231 = tpu.matmul %230, %183, %cst_104 {dimension_numbers = #tpu.dot_dimension_numbers<[1], [0], [0], [1], [0, 0, 1, 1], [], []>} : vector<128x32xbf16>, vector<32x32xbf16>, vector<128x32xf32> -> vector<128x32xf32>
    %232 = arith.addf %224, %231 : vector<128x32xf32>
    %233 = vector.shape_cast %193 : vector<2x8x8x32xf32> to vector<128x32xf32>
    %234 = arith.truncf %233 : vector<128x32xf32> to vector<128x32xbf16>
    %cst_105 = arith.constant dense<0.000000e+00> : vector<128x32xf32>
    %235 = tpu.matmul %234, %185, %cst_105 {dimension_numbers = #tpu.dot_dimension_numbers<[1], [0], [0], [1], [0, 0, 1, 1], [], []>} : vector<128x32xbf16>, vector<32x32xbf16>, vector<128x32xf32> -> vector<128x32xf32>
    %236 = arith.addf %232, %235 : vector<128x32xf32>
    %237 = vector.shape_cast %228 : vector<2x8x8x32xf32> to vector<128x32xf32>
    %238 = arith.truncf %237 : vector<128x32xf32> to vector<128x32xbf16>
    %cst_106 = arith.constant dense<0.000000e+00> : vector<128x32xf32>
    %239 = tpu.matmul %238, %187, %cst_106 {dimension_numbers = #tpu.dot_dimension_numbers<[1], [0], [0], [1], [0, 0, 1, 1], [], []>} : vector<128x32xbf16>, vector<32x32xbf16>, vector<128x32xf32> -> vector<128x32xf32>
    %240 = arith.addf %236, %239 : vector<128x32xf32>
    %241 = vector.shape_cast %240 : vector<128x32xf32> to vector<2x8x8x32xf32>
    %242 = arith.addf %75, %241 : vector<2x8x8x32xf32>
    %243 = vector.extract_strided_slice %76 {offsets = [2, 0], sizes = [1, 32], strides = [1, 1]} : vector<4x32xf32> to vector<1x32xf32>
    %244 = vector.shape_cast %243 : vector<1x32xf32> to vector<1x1x1x32xf32>
    %245 = vector.extract_strided_slice %77 {offsets = [2, 0], sizes = [1, 32], strides = [1, 1]} : vector<4x32xf32> to vector<1x32xf32>
    %246 = vector.shape_cast %245 : vector<1x32xf32> to vector<1x1x1x32xf32>
    %247 = vector.broadcast %244 : vector<1x1x1x32xf32> to vector<2x8x8x32xf32>
    %248 = arith.mulf %242, %247 : vector<2x8x8x32xf32>
    %249 = vector.broadcast %246 : vector<1x1x1x32xf32> to vector<2x8x8x32xf32>
    %250 = arith.addf %248, %249 : vector<2x8x8x32xf32>
    %cst_107 = arith.constant 0.000000e+00 : f32
    %251 = vector.broadcast %cst_107 : f32 to vector<2x8x8x32xf32>
    %252 = arith.maximumf %250, %251 : vector<2x8x8x32xf32>
    %c18 = arith.constant 18 : index
    %c0_108 = arith.constant 0 : index
    %c0_109 = arith.constant 0 : index
    %253 = vector.load %arg5[%c18, %c0_108, %c0_109] : memref<36x32x32xbf16, #tpu.memory_space<vmem>>, vector<1x32x32xbf16>
    %254 = vector.shape_cast %253 : vector<1x32x32xbf16> to vector<32x32xbf16>
    %c19 = arith.constant 19 : index
    %c0_110 = arith.constant 0 : index
    %c0_111 = arith.constant 0 : index
    %255 = vector.load %arg5[%c19, %c0_110, %c0_111] : memref<36x32x32xbf16, #tpu.memory_space<vmem>>, vector<1x32x32xbf16>
    %256 = vector.shape_cast %255 : vector<1x32x32xbf16> to vector<32x32xbf16>
    %c20 = arith.constant 20 : index
    %c0_112 = arith.constant 0 : index
    %c0_113 = arith.constant 0 : index
    %257 = vector.load %arg5[%c20, %c0_112, %c0_113] : memref<36x32x32xbf16, #tpu.memory_space<vmem>>, vector<1x32x32xbf16>
    %258 = vector.shape_cast %257 : vector<1x32x32xbf16> to vector<32x32xbf16>
    %c21 = arith.constant 21 : index
    %c0_114 = arith.constant 0 : index
    %c0_115 = arith.constant 0 : index
    %259 = vector.load %arg5[%c21, %c0_114, %c0_115] : memref<36x32x32xbf16, #tpu.memory_space<vmem>>, vector<1x32x32xbf16>
    %260 = vector.shape_cast %259 : vector<1x32x32xbf16> to vector<32x32xbf16>
    %c22 = arith.constant 22 : index
    %c0_116 = arith.constant 0 : index
    %c0_117 = arith.constant 0 : index
    %261 = vector.load %arg5[%c22, %c0_116, %c0_117] : memref<36x32x32xbf16, #tpu.memory_space<vmem>>, vector<1x32x32xbf16>
    %262 = vector.shape_cast %261 : vector<1x32x32xbf16> to vector<32x32xbf16>
    %c23 = arith.constant 23 : index
    %c0_118 = arith.constant 0 : index
    %c0_119 = arith.constant 0 : index
    %263 = vector.load %arg5[%c23, %c0_118, %c0_119] : memref<36x32x32xbf16, #tpu.memory_space<vmem>>, vector<1x32x32xbf16>
    %264 = vector.shape_cast %263 : vector<1x32x32xbf16> to vector<32x32xbf16>
    %c24 = arith.constant 24 : index
    %c0_120 = arith.constant 0 : index
    %c0_121 = arith.constant 0 : index
    %265 = vector.load %arg5[%c24, %c0_120, %c0_121] : memref<36x32x32xbf16, #tpu.memory_space<vmem>>, vector<1x32x32xbf16>
    %266 = vector.shape_cast %265 : vector<1x32x32xbf16> to vector<32x32xbf16>
    %c25 = arith.constant 25 : index
    %c0_122 = arith.constant 0 : index
    %c0_123 = arith.constant 0 : index
    %267 = vector.load %arg5[%c25, %c0_122, %c0_123] : memref<36x32x32xbf16, #tpu.memory_space<vmem>>, vector<1x32x32xbf16>
    %268 = vector.shape_cast %267 : vector<1x32x32xbf16> to vector<32x32xbf16>
    %c26 = arith.constant 26 : index
    %c0_124 = arith.constant 0 : index
    %c0_125 = arith.constant 0 : index
    %269 = vector.load %arg5[%c26, %c0_124, %c0_125] : memref<36x32x32xbf16, #tpu.memory_space<vmem>>, vector<1x32x32xbf16>
    %270 = vector.shape_cast %269 : vector<1x32x32xbf16> to vector<32x32xbf16>
    %cst_126 = arith.constant 0.000000e+00 : f32
    %271 = vector.broadcast %cst_126 : f32 to vector<2x1x8x32xf32>
    %cst_127 = arith.constant 0.000000e+00 : f32
    %272 = vector.broadcast %cst_127 : f32 to vector<2x8x1x32xf32>
    %273 = vector.extract_strided_slice %252 {offsets = [0, 0, 0, 0], sizes = [2, 7, 8, 32], strides = [1, 1, 1, 1]} : vector<2x8x8x32xf32> to vector<2x7x8x32xf32>
    %274 = tpu.concatenate %271, %273 in 1 : vector<2x1x8x32xf32>, vector<2x7x8x32xf32> -> vector<2x8x8x32xf32>
    %275 = vector.extract_strided_slice %252 {offsets = [0, 1, 0, 0], sizes = [2, 7, 8, 32], strides = [1, 1, 1, 1]} : vector<2x8x8x32xf32> to vector<2x7x8x32xf32>
    %276 = tpu.concatenate %275, %271 in 1 : vector<2x7x8x32xf32>, vector<2x1x8x32xf32> -> vector<2x8x8x32xf32>
    %277 = vector.extract_strided_slice %274 {offsets = [0, 0, 0, 0], sizes = [2, 8, 7, 32], strides = [1, 1, 1, 1]} : vector<2x8x8x32xf32> to vector<2x8x7x32xf32>
    %278 = tpu.concatenate %272, %277 in 2 : vector<2x8x1x32xf32>, vector<2x8x7x32xf32> -> vector<2x8x8x32xf32>
    %279 = vector.extract_strided_slice %274 {offsets = [0, 0, 1, 0], sizes = [2, 8, 7, 32], strides = [1, 1, 1, 1]} : vector<2x8x8x32xf32> to vector<2x8x7x32xf32>
    %280 = tpu.concatenate %279, %272 in 2 : vector<2x8x7x32xf32>, vector<2x8x1x32xf32> -> vector<2x8x8x32xf32>
    %281 = vector.shape_cast %278 : vector<2x8x8x32xf32> to vector<128x32xf32>
    %282 = arith.truncf %281 : vector<128x32xf32> to vector<128x32xbf16>
    %cst_128 = arith.constant dense<0.000000e+00> : vector<128x32xf32>
    %283 = tpu.matmul %282, %254, %cst_128 {dimension_numbers = #tpu.dot_dimension_numbers<[1], [0], [0], [1], [0, 0, 1, 1], [], []>} : vector<128x32xbf16>, vector<32x32xbf16>, vector<128x32xf32> -> vector<128x32xf32>
    %284 = vector.shape_cast %274 : vector<2x8x8x32xf32> to vector<128x32xf32>
    %285 = arith.truncf %284 : vector<128x32xf32> to vector<128x32xbf16>
    %cst_129 = arith.constant dense<0.000000e+00> : vector<128x32xf32>
    %286 = tpu.matmul %285, %256, %cst_129 {dimension_numbers = #tpu.dot_dimension_numbers<[1], [0], [0], [1], [0, 0, 1, 1], [], []>} : vector<128x32xbf16>, vector<32x32xbf16>, vector<128x32xf32> -> vector<128x32xf32>
    %287 = arith.addf %283, %286 : vector<128x32xf32>
    %288 = vector.shape_cast %280 : vector<2x8x8x32xf32> to vector<128x32xf32>
    %289 = arith.truncf %288 : vector<128x32xf32> to vector<128x32xbf16>
    %cst_130 = arith.constant dense<0.000000e+00> : vector<128x32xf32>
    %290 = tpu.matmul %289, %258, %cst_130 {dimension_numbers = #tpu.dot_dimension_numbers<[1], [0], [0], [1], [0, 0, 1, 1], [], []>} : vector<128x32xbf16>, vector<32x32xbf16>, vector<128x32xf32> -> vector<128x32xf32>
    %291 = arith.addf %287, %290 : vector<128x32xf32>
    %292 = vector.extract_strided_slice %252 {offsets = [0, 0, 0, 0], sizes = [2, 8, 7, 32], strides = [1, 1, 1, 1]} : vector<2x8x8x32xf32> to vector<2x8x7x32xf32>
    %293 = tpu.concatenate %272, %292 in 2 : vector<2x8x1x32xf32>, vector<2x8x7x32xf32> -> vector<2x8x8x32xf32>
    %294 = vector.extract_strided_slice %252 {offsets = [0, 0, 1, 0], sizes = [2, 8, 7, 32], strides = [1, 1, 1, 1]} : vector<2x8x8x32xf32> to vector<2x8x7x32xf32>
    %295 = tpu.concatenate %294, %272 in 2 : vector<2x8x7x32xf32>, vector<2x8x1x32xf32> -> vector<2x8x8x32xf32>
    %296 = vector.shape_cast %293 : vector<2x8x8x32xf32> to vector<128x32xf32>
    %297 = arith.truncf %296 : vector<128x32xf32> to vector<128x32xbf16>
    %cst_131 = arith.constant dense<0.000000e+00> : vector<128x32xf32>
    %298 = tpu.matmul %297, %260, %cst_131 {dimension_numbers = #tpu.dot_dimension_numbers<[1], [0], [0], [1], [0, 0, 1, 1], [], []>} : vector<128x32xbf16>, vector<32x32xbf16>, vector<128x32xf32> -> vector<128x32xf32>
    %299 = arith.addf %291, %298 : vector<128x32xf32>
    %300 = vector.shape_cast %252 : vector<2x8x8x32xf32> to vector<128x32xf32>
    %301 = arith.truncf %300 : vector<128x32xf32> to vector<128x32xbf16>
    %cst_132 = arith.constant dense<0.000000e+00> : vector<128x32xf32>
    %302 = tpu.matmul %301, %262, %cst_132 {dimension_numbers = #tpu.dot_dimension_numbers<[1], [0], [0], [1], [0, 0, 1, 1], [], []>} : vector<128x32xbf16>, vector<32x32xbf16>, vector<128x32xf32> -> vector<128x32xf32>
    %303 = arith.addf %299, %302 : vector<128x32xf32>
    %304 = vector.shape_cast %295 : vector<2x8x8x32xf32> to vector<128x32xf32>
    %305 = arith.truncf %304 : vector<128x32xf32> to vector<128x32xbf16>
    %cst_133 = arith.constant dense<0.000000e+00> : vector<128x32xf32>
    %306 = tpu.matmul %305, %264, %cst_133 {dimension_numbers = #tpu.dot_dimension_numbers<[1], [0], [0], [1], [0, 0, 1, 1], [], []>} : vector<128x32xbf16>, vector<32x32xbf16>, vector<128x32xf32> -> vector<128x32xf32>
    %307 = arith.addf %303, %306 : vector<128x32xf32>
    %308 = vector.extract_strided_slice %276 {offsets = [0, 0, 0, 0], sizes = [2, 8, 7, 32], strides = [1, 1, 1, 1]} : vector<2x8x8x32xf32> to vector<2x8x7x32xf32>
    %309 = tpu.concatenate %272, %308 in 2 : vector<2x8x1x32xf32>, vector<2x8x7x32xf32> -> vector<2x8x8x32xf32>
    %310 = vector.extract_strided_slice %276 {offsets = [0, 0, 1, 0], sizes = [2, 8, 7, 32], strides = [1, 1, 1, 1]} : vector<2x8x8x32xf32> to vector<2x8x7x32xf32>
    %311 = tpu.concatenate %310, %272 in 2 : vector<2x8x7x32xf32>, vector<2x8x1x32xf32> -> vector<2x8x8x32xf32>
    %312 = vector.shape_cast %309 : vector<2x8x8x32xf32> to vector<128x32xf32>
    %313 = arith.truncf %312 : vector<128x32xf32> to vector<128x32xbf16>
    %cst_134 = arith.constant dense<0.000000e+00> : vector<128x32xf32>
    %314 = tpu.matmul %313, %266, %cst_134 {dimension_numbers = #tpu.dot_dimension_numbers<[1], [0], [0], [1], [0, 0, 1, 1], [], []>} : vector<128x32xbf16>, vector<32x32xbf16>, vector<128x32xf32> -> vector<128x32xf32>
    %315 = arith.addf %307, %314 : vector<128x32xf32>
    %316 = vector.shape_cast %276 : vector<2x8x8x32xf32> to vector<128x32xf32>
    %317 = arith.truncf %316 : vector<128x32xf32> to vector<128x32xbf16>
    %cst_135 = arith.constant dense<0.000000e+00> : vector<128x32xf32>
    %318 = tpu.matmul %317, %268, %cst_135 {dimension_numbers = #tpu.dot_dimension_numbers<[1], [0], [0], [1], [0, 0, 1, 1], [], []>} : vector<128x32xbf16>, vector<32x32xbf16>, vector<128x32xf32> -> vector<128x32xf32>
    %319 = arith.addf %315, %318 : vector<128x32xf32>
    %320 = vector.shape_cast %311 : vector<2x8x8x32xf32> to vector<128x32xf32>
    %321 = arith.truncf %320 : vector<128x32xf32> to vector<128x32xbf16>
    %cst_136 = arith.constant dense<0.000000e+00> : vector<128x32xf32>
    %322 = tpu.matmul %321, %270, %cst_136 {dimension_numbers = #tpu.dot_dimension_numbers<[1], [0], [0], [1], [0, 0, 1, 1], [], []>} : vector<128x32xbf16>, vector<32x32xbf16>, vector<128x32xf32> -> vector<128x32xf32>
    %323 = arith.addf %319, %322 : vector<128x32xf32>
    %324 = vector.shape_cast %323 : vector<128x32xf32> to vector<2x8x8x32xf32>
    %325 = vector.extract_strided_slice %76 {offsets = [3, 0], sizes = [1, 32], strides = [1, 1]} : vector<4x32xf32> to vector<1x32xf32>
    %326 = vector.shape_cast %325 : vector<1x32xf32> to vector<1x1x1x32xf32>
    %327 = vector.extract_strided_slice %77 {offsets = [3, 0], sizes = [1, 32], strides = [1, 1]} : vector<4x32xf32> to vector<1x32xf32>
    %328 = vector.shape_cast %327 : vector<1x32xf32> to vector<1x1x1x32xf32>
    %329 = vector.broadcast %326 : vector<1x1x1x32xf32> to vector<2x8x8x32xf32>
    %330 = arith.mulf %324, %329 : vector<2x8x8x32xf32>
    %331 = vector.broadcast %328 : vector<1x1x1x32xf32> to vector<2x8x8x32xf32>
    %332 = arith.addf %330, %331 : vector<2x8x8x32xf32>
    %cst_137 = arith.constant 0.000000e+00 : f32
    %333 = vector.broadcast %cst_137 : f32 to vector<2x8x8x32xf32>
    %334 = arith.maximumf %332, %333 : vector<2x8x8x32xf32>
    %c27 = arith.constant 27 : index
    %c0_138 = arith.constant 0 : index
    %c0_139 = arith.constant 0 : index
    %335 = vector.load %arg5[%c27, %c0_138, %c0_139] : memref<36x32x32xbf16, #tpu.memory_space<vmem>>, vector<1x32x32xbf16>
    %336 = vector.shape_cast %335 : vector<1x32x32xbf16> to vector<32x32xbf16>
    %c28 = arith.constant 28 : index
    %c0_140 = arith.constant 0 : index
    %c0_141 = arith.constant 0 : index
    %337 = vector.load %arg5[%c28, %c0_140, %c0_141] : memref<36x32x32xbf16, #tpu.memory_space<vmem>>, vector<1x32x32xbf16>
    %338 = vector.shape_cast %337 : vector<1x32x32xbf16> to vector<32x32xbf16>
    %c29 = arith.constant 29 : index
    %c0_142 = arith.constant 0 : index
    %c0_143 = arith.constant 0 : index
    %339 = vector.load %arg5[%c29, %c0_142, %c0_143] : memref<36x32x32xbf16, #tpu.memory_space<vmem>>, vector<1x32x32xbf16>
    %340 = vector.shape_cast %339 : vector<1x32x32xbf16> to vector<32x32xbf16>
    %c30 = arith.constant 30 : index
    %c0_144 = arith.constant 0 : index
    %c0_145 = arith.constant 0 : index
    %341 = vector.load %arg5[%c30, %c0_144, %c0_145] : memref<36x32x32xbf16, #tpu.memory_space<vmem>>, vector<1x32x32xbf16>
    %342 = vector.shape_cast %341 : vector<1x32x32xbf16> to vector<32x32xbf16>
    %c31 = arith.constant 31 : index
    %c0_146 = arith.constant 0 : index
    %c0_147 = arith.constant 0 : index
    %343 = vector.load %arg5[%c31, %c0_146, %c0_147] : memref<36x32x32xbf16, #tpu.memory_space<vmem>>, vector<1x32x32xbf16>
    %344 = vector.shape_cast %343 : vector<1x32x32xbf16> to vector<32x32xbf16>
    %c32 = arith.constant 32 : index
    %c0_148 = arith.constant 0 : index
    %c0_149 = arith.constant 0 : index
    %345 = vector.load %arg5[%c32, %c0_148, %c0_149] : memref<36x32x32xbf16, #tpu.memory_space<vmem>>, vector<1x32x32xbf16>
    %346 = vector.shape_cast %345 : vector<1x32x32xbf16> to vector<32x32xbf16>
    %c33 = arith.constant 33 : index
    %c0_150 = arith.constant 0 : index
    %c0_151 = arith.constant 0 : index
    %347 = vector.load %arg5[%c33, %c0_150, %c0_151] : memref<36x32x32xbf16, #tpu.memory_space<vmem>>, vector<1x32x32xbf16>
    %348 = vector.shape_cast %347 : vector<1x32x32xbf16> to vector<32x32xbf16>
    %c34 = arith.constant 34 : index
    %c0_152 = arith.constant 0 : index
    %c0_153 = arith.constant 0 : index
    %349 = vector.load %arg5[%c34, %c0_152, %c0_153] : memref<36x32x32xbf16, #tpu.memory_space<vmem>>, vector<1x32x32xbf16>
    %350 = vector.shape_cast %349 : vector<1x32x32xbf16> to vector<32x32xbf16>
    %c35 = arith.constant 35 : index
    %c0_154 = arith.constant 0 : index
    %c0_155 = arith.constant 0 : index
    %351 = vector.load %arg5[%c35, %c0_154, %c0_155] : memref<36x32x32xbf16, #tpu.memory_space<vmem>>, vector<1x32x32xbf16>
    %352 = vector.shape_cast %351 : vector<1x32x32xbf16> to vector<32x32xbf16>
    %cst_156 = arith.constant 0.000000e+00 : f32
    %353 = vector.broadcast %cst_156 : f32 to vector<2x1x8x32xf32>
    %cst_157 = arith.constant 0.000000e+00 : f32
    %354 = vector.broadcast %cst_157 : f32 to vector<2x8x1x32xf32>
    %355 = vector.extract_strided_slice %334 {offsets = [0, 0, 0, 0], sizes = [2, 7, 8, 32], strides = [1, 1, 1, 1]} : vector<2x8x8x32xf32> to vector<2x7x8x32xf32>
    %356 = tpu.concatenate %353, %355 in 1 : vector<2x1x8x32xf32>, vector<2x7x8x32xf32> -> vector<2x8x8x32xf32>
    %357 = vector.extract_strided_slice %334 {offsets = [0, 1, 0, 0], sizes = [2, 7, 8, 32], strides = [1, 1, 1, 1]} : vector<2x8x8x32xf32> to vector<2x7x8x32xf32>
    %358 = tpu.concatenate %357, %353 in 1 : vector<2x7x8x32xf32>, vector<2x1x8x32xf32> -> vector<2x8x8x32xf32>
    %359 = vector.extract_strided_slice %356 {offsets = [0, 0, 0, 0], sizes = [2, 8, 7, 32], strides = [1, 1, 1, 1]} : vector<2x8x8x32xf32> to vector<2x8x7x32xf32>
    %360 = tpu.concatenate %354, %359 in 2 : vector<2x8x1x32xf32>, vector<2x8x7x32xf32> -> vector<2x8x8x32xf32>
    %361 = vector.extract_strided_slice %356 {offsets = [0, 0, 1, 0], sizes = [2, 8, 7, 32], strides = [1, 1, 1, 1]} : vector<2x8x8x32xf32> to vector<2x8x7x32xf32>
    %362 = tpu.concatenate %361, %354 in 2 : vector<2x8x7x32xf32>, vector<2x8x1x32xf32> -> vector<2x8x8x32xf32>
    %363 = vector.shape_cast %360 : vector<2x8x8x32xf32> to vector<128x32xf32>
    %364 = arith.truncf %363 : vector<128x32xf32> to vector<128x32xbf16>
    %cst_158 = arith.constant dense<0.000000e+00> : vector<128x32xf32>
    %365 = tpu.matmul %364, %336, %cst_158 {dimension_numbers = #tpu.dot_dimension_numbers<[1], [0], [0], [1], [0, 0, 1, 1], [], []>} : vector<128x32xbf16>, vector<32x32xbf16>, vector<128x32xf32> -> vector<128x32xf32>
    %366 = vector.shape_cast %356 : vector<2x8x8x32xf32> to vector<128x32xf32>
    %367 = arith.truncf %366 : vector<128x32xf32> to vector<128x32xbf16>
    %cst_159 = arith.constant dense<0.000000e+00> : vector<128x32xf32>
    %368 = tpu.matmul %367, %338, %cst_159 {dimension_numbers = #tpu.dot_dimension_numbers<[1], [0], [0], [1], [0, 0, 1, 1], [], []>} : vector<128x32xbf16>, vector<32x32xbf16>, vector<128x32xf32> -> vector<128x32xf32>
    %369 = arith.addf %365, %368 : vector<128x32xf32>
    %370 = vector.shape_cast %362 : vector<2x8x8x32xf32> to vector<128x32xf32>
    %371 = arith.truncf %370 : vector<128x32xf32> to vector<128x32xbf16>
    %cst_160 = arith.constant dense<0.000000e+00> : vector<128x32xf32>
    %372 = tpu.matmul %371, %340, %cst_160 {dimension_numbers = #tpu.dot_dimension_numbers<[1], [0], [0], [1], [0, 0, 1, 1], [], []>} : vector<128x32xbf16>, vector<32x32xbf16>, vector<128x32xf32> -> vector<128x32xf32>
    %373 = arith.addf %369, %372 : vector<128x32xf32>
    %374 = vector.extract_strided_slice %334 {offsets = [0, 0, 0, 0], sizes = [2, 8, 7, 32], strides = [1, 1, 1, 1]} : vector<2x8x8x32xf32> to vector<2x8x7x32xf32>
    %375 = tpu.concatenate %354, %374 in 2 : vector<2x8x1x32xf32>, vector<2x8x7x32xf32> -> vector<2x8x8x32xf32>
    %376 = vector.extract_strided_slice %334 {offsets = [0, 0, 1, 0], sizes = [2, 8, 7, 32], strides = [1, 1, 1, 1]} : vector<2x8x8x32xf32> to vector<2x8x7x32xf32>
    %377 = tpu.concatenate %376, %354 in 2 : vector<2x8x7x32xf32>, vector<2x8x1x32xf32> -> vector<2x8x8x32xf32>
    %378 = vector.shape_cast %375 : vector<2x8x8x32xf32> to vector<128x32xf32>
    %379 = arith.truncf %378 : vector<128x32xf32> to vector<128x32xbf16>
    %cst_161 = arith.constant dense<0.000000e+00> : vector<128x32xf32>
    %380 = tpu.matmul %379, %342, %cst_161 {dimension_numbers = #tpu.dot_dimension_numbers<[1], [0], [0], [1], [0, 0, 1, 1], [], []>} : vector<128x32xbf16>, vector<32x32xbf16>, vector<128x32xf32> -> vector<128x32xf32>
    %381 = arith.addf %373, %380 : vector<128x32xf32>
    %382 = vector.shape_cast %334 : vector<2x8x8x32xf32> to vector<128x32xf32>
    %383 = arith.truncf %382 : vector<128x32xf32> to vector<128x32xbf16>
    %cst_162 = arith.constant dense<0.000000e+00> : vector<128x32xf32>
    %384 = tpu.matmul %383, %344, %cst_162 {dimension_numbers = #tpu.dot_dimension_numbers<[1], [0], [0], [1], [0, 0, 1, 1], [], []>} : vector<128x32xbf16>, vector<32x32xbf16>, vector<128x32xf32> -> vector<128x32xf32>
    %385 = arith.addf %381, %384 : vector<128x32xf32>
    %386 = vector.shape_cast %377 : vector<2x8x8x32xf32> to vector<128x32xf32>
    %387 = arith.truncf %386 : vector<128x32xf32> to vector<128x32xbf16>
    %cst_163 = arith.constant dense<0.000000e+00> : vector<128x32xf32>
    %388 = tpu.matmul %387, %346, %cst_163 {dimension_numbers = #tpu.dot_dimension_numbers<[1], [0], [0], [1], [0, 0, 1, 1], [], []>} : vector<128x32xbf16>, vector<32x32xbf16>, vector<128x32xf32> -> vector<128x32xf32>
    %389 = arith.addf %385, %388 : vector<128x32xf32>
    %390 = vector.extract_strided_slice %358 {offsets = [0, 0, 0, 0], sizes = [2, 8, 7, 32], strides = [1, 1, 1, 1]} : vector<2x8x8x32xf32> to vector<2x8x7x32xf32>
    %391 = tpu.concatenate %354, %390 in 2 : vector<2x8x1x32xf32>, vector<2x8x7x32xf32> -> vector<2x8x8x32xf32>
    %392 = vector.extract_strided_slice %358 {offsets = [0, 0, 1, 0], sizes = [2, 8, 7, 32], strides = [1, 1, 1, 1]} : vector<2x8x8x32xf32> to vector<2x8x7x32xf32>
    %393 = tpu.concatenate %392, %354 in 2 : vector<2x8x7x32xf32>, vector<2x8x1x32xf32> -> vector<2x8x8x32xf32>
    %394 = vector.shape_cast %391 : vector<2x8x8x32xf32> to vector<128x32xf32>
    %395 = arith.truncf %394 : vector<128x32xf32> to vector<128x32xbf16>
    %cst_164 = arith.constant dense<0.000000e+00> : vector<128x32xf32>
    %396 = tpu.matmul %395, %348, %cst_164 {dimension_numbers = #tpu.dot_dimension_numbers<[1], [0], [0], [1], [0, 0, 1, 1], [], []>} : vector<128x32xbf16>, vector<32x32xbf16>, vector<128x32xf32> -> vector<128x32xf32>
    %397 = arith.addf %389, %396 : vector<128x32xf32>
    %398 = vector.shape_cast %358 : vector<2x8x8x32xf32> to vector<128x32xf32>
    %399 = arith.truncf %398 : vector<128x32xf32> to vector<128x32xbf16>
    %cst_165 = arith.constant dense<0.000000e+00> : vector<128x32xf32>
    %400 = tpu.matmul %399, %350, %cst_165 {dimension_numbers = #tpu.dot_dimension_numbers<[1], [0], [0], [1], [0, 0, 1, 1], [], []>} : vector<128x32xbf16>, vector<32x32xbf16>, vector<128x32xf32> -> vector<128x32xf32>
    %401 = arith.addf %397, %400 : vector<128x32xf32>
    %402 = vector.shape_cast %393 : vector<2x8x8x32xf32> to vector<128x32xf32>
    %403 = arith.truncf %402 : vector<128x32xf32> to vector<128x32xbf16>
    %cst_166 = arith.constant dense<0.000000e+00> : vector<128x32xf32>
    %404 = tpu.matmul %403, %352, %cst_166 {dimension_numbers = #tpu.dot_dimension_numbers<[1], [0], [0], [1], [0, 0, 1, 1], [], []>} : vector<128x32xbf16>, vector<32x32xbf16>, vector<128x32xf32> -> vector<128x32xf32>
    %405 = arith.addf %401, %404 : vector<128x32xf32>
    %406 = vector.shape_cast %405 : vector<128x32xf32> to vector<2x8x8x32xf32>
    %407 = arith.addf %242, %406 : vector<2x8x8x32xf32>
    %408 = vector.shape_cast %407 : vector<2x8x8x32xf32> to vector<128x32xf32>
    %409 = arith.truncf %408 : vector<128x32xf32> to vector<128x32xbf16>
    %c0_167 = arith.constant 0 : index
    %c0_168 = arith.constant 0 : index
    %410 = vector.load %arg6[%c0_167, %c0_168] : memref<32x128xbf16, #tpu.memory_space<vmem>>, vector<32x128xbf16>
    %cst_169 = arith.constant dense<0.000000e+00> : vector<128x128xf32>
    %411 = tpu.matmul %409, %410, %cst_169 {dimension_numbers = #tpu.dot_dimension_numbers<[1], [0], [0], [1], [0, 0, 1, 1], [], []>} : vector<128x32xbf16>, vector<32x128xbf16>, vector<128x128xf32> -> vector<128x128xf32>
    %c0_170 = arith.constant 0 : index
    %c0_171 = arith.constant 0 : index
    %412 = vector.load %arg7[%c0_170, %c0_171] : memref<1x128xf32, #tpu.memory_space<vmem>>, vector<1x128xf32>
    %413 = vector.broadcast %412 : vector<1x128xf32> to vector<128x128xf32>
    %414 = arith.addf %411, %413 : vector<128x128xf32>
    %c0_172 = arith.constant 0 : index
    %c0_173 = arith.constant 0 : index
    %415 = vector.load %arg8[%c0_172, %c0_173] : memref<128x128xf32, #tpu.memory_space<vmem>>, vector<128x128xf32>
    tpu.vector_store %arg8[%c0_172, %c0_173], %414 {strides = array<i32>} : memref<128x128xf32, #tpu.memory_space<vmem>>, vector<128x128xf32>,
    return
  }
}

</mosaic_0001>

<bundles_post_ra>
// kernel: gamenet_forward_pallas.1
= control target key start
LH: loop header
LB: loop body
LE: loop exit
PB: predicated region body
PF: predicated region fallthrough
CT: control target
= control target key end

     0   :  { %vm211_vm0 = vcmask 1041408   ;;  %vm186_vm1 = vcmask 31744   ;;  %v13813_v3 = vmov 0.0   ;;  %vm108_vm2 = vcmask 1040384   ;;  %s13804_s1 = inlined_call_operand.vmem [shape: bf16[9,4,32], index: 1, kind: input, shape index: {}]   ;;  %s13805_s0 = inlined_call_operand.vmem [shape: f32[2,8,8,4], index: 0, kind: input, shape index: {}]   ;;  %s13806_s5 = inlined_call_operand.vmem [shape: bf16[36,32,32], index: 5, kind: input, shape index: {}]   ;;  %s13807_s3 = inlined_call_operand.vmem [shape: f32[4,32], index: 3, kind: input, shape index: {}]   ;;  %s13808_s4 = inlined_call_operand.vmem [shape: f32[4,32], index: 4, kind: input, shape index: {}]   ;;  %s13809_s2 = inlined_call_operand.vmem [shape: f32[1,32], index: 2, kind: input, shape index: {}]   ;;  %s13810_s6 = inlined_call_operand.vmem [shape: bf16[32,128], index: 6, kind: input, shape index: {}]   ;;  %s13811_s7 = inlined_call_operand.vmem [shape: f32[1,128], index: 7, kind: input, shape index: {}]   ;;  %s13812_s8 = inlined_call_operand.vmem [shape: f32[128,128], index: 8, kind: output, shape index: {}]  }
   0x1   :  { %v7731_v0 = vld [vmem:[%s13804_s1 + $0x2] sm:$0x3]  ;;  %v30_v1 = vld [vmem:[%s13804_s1] sm:$0x3]  ;;  %v78_v4 = vrot.slane %v13813_v3, 7  ;;  %v9833_v8 = vld [vmem:[%s13805_s0 + $0x8] sm:$0xff] }
   0x2   :  { %v9821_v2 = vld [vmem:[%s13805_s0] sm:$0xff]  ;;  %9676 = vmatprep.subr.msk.bf16.mxu0 %vm211_vm0, %v7731_v0  ;;  %v213_v5 = vsel %vm211_vm0, %v7731_v0, 0  ;;  %9677 = vmatprep.subr.msk.bf16.mxu1 %vm211_vm0, %v30_v1  ;;  %v337_v7 = vsel %vm211_vm0, %v30_v1, 0  ;;  %v9838_v9 = vld [vmem:[%s13805_s0 + $0x10] sm:$0xff]  ;;  %v9843_v10 = vld [vmem:[%s13805_s0 + $0x18] sm:$0xff]  ;;  %v80_v14 = vrot.slane %v9833_v8, 7 }
   0x3   :  { %v178_v6 = vpack.c.bf16 %v9821_v2, %v13813_v3  ;;  %8775 = vmatpush3.bf16.msra.mxu0 %v213_v5  ;;  %8793 = vmatpush3.bf16.msra.mxu1 %v337_v7  ;;  %v9847_v11 = vpack.c.bf16 %v9838_v9, %v9833_v8  ;;  %v7732_v12 = vld [vmem:[%s13804_s1 + $0x4] sm:$0x3]  ;;  %v79_v13 = vrot.slane %v9821_v2, 7  ;;  %v81_v15 = vrot.slane %v9838_v9, 7  ;;  %v9872_v20 = vld [vmem:[%s13805_s0 + $0x28] sm:$0xff]  ;;  %v9887_v24 = vld [vmem:[%s13805_s0 + $0x30] sm:$0xff] }
   0x4   :  { %9678 = vmatprep.subr.msk.bf16.mxu0 %vm211_vm0, %v7732_v12  ;;  %v82_v16 = vrot.slane %v9843_v10, 7  ;;  %v9859_v17 = vsel %vm108_vm2, 0.0, %v78_v4  ;;  %v9867_v19 = vld [vmem:[%s13805_s0 + $0x20] sm:$0xff]  ;;  %v9877_v21 = vsel %vm108_vm2, 0.0, %v80_v14  ;;  %v469_v27 = vsel %vm211_vm0, %v7732_v12, 0  ;;  %v9948_v42 = vld [vmem:[%s13805_s0 + $0x48] sm:$0xff] }
   0x5   :  { %8776 = vmatprep.mubr.msk.bf16.mxu0 %vm186_vm1, %v178_v6  ;;  %13888 = vst [vmem:[#allocation2_spill] sm:$0xff] %v9859_v17  ;;  %v9862_v18 = vsel %vm108_vm2, 0.0, %v79_v13  ;;  %v9880_v22 = vsel %vm108_vm2, 0.0, %v81_v15  ;;  %v9892_v25 = vld [vmem:[%s13805_s0 + $0x40] sm:$0xff]  ;;  %v9908_v30 = vpack.c.bf16 %v9867_v19, %v9843_v10  ;;  %v83_v31 = vrot.slane %v9867_v19, 7  ;;  %v9953_v43 = vld [vmem:[%s13805_s0 + $0x50] sm:$0xff] }
   0x6   :  { %8777 = vmatmul.mubr.msk.bf16.vlgmr.msra.gmra.mxu0 %vm186_vm1, %v9847_v11  ;;  %v170_v23 = vpack.c.bf16 %v9862_v18, %v9859_v17  ;;  %v9896_v26 = vpack.c.bf16 %v9880_v22, %v9877_v21  ;;  %v7733_v28 = vld [vmem:[%s13804_s1 + $0x6] sm:$0x3]  ;;  %v9903_v29 = vsel %vm108_vm2, 0.0, %v82_v16  ;;  %v84_v32 = vrot.slane %v9872_v20, 7  ;;  %v9915_v33 = vld [vmem:[%s13804_s1 + $0x8] sm:$0x3] }
   0x7   :  { %8811 = vmatpush3.bf16.msra.mxu0 %v469_v27  ;;  %v85_v34 = vrot.slane %v9887_v24, 7  ;;  %v86_v35 = vrot.slane %v9892_v25, 7  ;;  %9679 = vmatprep.subr.msk.bf16.mxu1 %vm211_vm0, %v7733_v28  ;;  %v9926_v36 = vpack.c.bf16 %v9887_v24, %v9872_v20  ;;  %v9929_v37 = vsel %vm108_vm2, 0.0, %v83_v31  ;;  %v9961_v45 = vld [vmem:[%s13805_s0 + $0x58] sm:$0xff]  ;;  %v9966_v46 = vld [vmem:[%s13805_s0 + $0x60] sm:$0xff]  ;;  %v10011_v59 = vld [vmem:[%s13805_s0 + $0x68] sm:$0xff] }
   0x8   :  { %8794 = vmatprep.mubr.msk.bf16.mxu1 %vm186_vm1, %v170_v23  ;;  %8780 = vmatprep.mubr.msk.bf16.mxu0 %vm186_vm1, %v9908_v30  ;;  %v9932_v38 = vsel %vm108_vm2, 0.0, %v84_v32  ;;  %v9938_v39 = vpack.c.bf16 %v9929_v37, %v9903_v29  ;;  %v182_v41 = vpack.c.bf16 %v9892_v25, %v13813_v3  ;;  %v87_v49 = vrot.slane %v9948_v42, 7  ;;  %v9983_v51 = vld [vmem:[%s13804_s1 + $0xa] sm:$0x3]  ;;  %v10016_v60 = vld [vmem:[%s13805_s0 + $0x70] sm:$0xff] }
   0x9   :  { %8795 = vmatmul.mubr.msk.bf16.vlgmr.msra.gmra.mxu1 %vm186_vm1, %v9896_v26  ;;  %9680 = vmatprep.subr.msk.bf16.mxu0 %vm211_vm0, %v9915_v33  ;;  %v9941_v40 = vsel %vm108_vm2, 0.0, %v85_v34  ;;  %v9956_v44 = vsel %vm108_vm2, 0.0, %v86_v35  ;;  %v88_v50 = vrot.slane %v9953_v43, 7  ;;  %v89_v52 = vrot.slane %v9961_v45, 7 }
   0xa   :  { %8798 = vmatprep.mubr.msk.bf16.mxu1 %vm186_vm1, %v9938_v39  ;;  %v9972_v47 = vpack.c.bf16 %v9941_v40, %v9932_v38  ;;  %v174_v48 = vpack.c.bf16 %v9956_v44, %v9859_v17  ;;  %v90_v53 = vrot.slane %v9966_v46, 7  ;;  %v631_v54 = vsel %vm211_vm0, %v7733_v28, 0 }
   0xb   :  { %8829 = vmatpush3.bf16.msra.mxu1 %v631_v54  ;;  %v9995_v55 = vpack.c.bf16 %v9953_v43, %v9948_v42  ;;  %v9999_v56 = vsel %vm108_vm2, 0.0, %v87_v49  ;;  %v10002_v57 = vsel %vm108_vm2, 0.0, %v88_v50  ;;  %v10006_v58 = vpack.c.bf16 %v9966_v46, %v9961_v45 }
   0xc   :  { %9681 = vmatprep.subr.msk.bf16.mxu1 %vm211_vm0, %v9983_v51  ;;  %v10019_v61 = vsel %vm108_vm2, 0.0, %v89_v52  ;;  %v10022_v62 = vsel %vm108_vm2, 0.0, %v90_v53  ;;  %v125_v63 = vrot.slane %v9821_v2, 1  ;;  %v124_v0 = vrot.slane %v13813_v3, 1  ;;  %v10103_v53 = vld [vmem:[%s13805_s0 + $0x38] sm:$0xff] }
   0xd   :  { %vm154_vm3 = vcmask 1046528   ;;  %v10028_v1 = vpack.c.bf16 %v10002_v57, %v9999_v56  ;;  %v10034_v4 = vpack.c.bf16 %v10022_v62, %v10019_v61  ;;  %v91_v5 = vrot.slane %v10011_v59, 7 }
   0xe   :  { %8781 = vmatmul.mubr.msk.bf16.gmra.mxu0 %vm186_vm1, %v9926_v36  ;;  %v92_v6 = vrot.slane %v10016_v60, 7  ;;  %v10041_v7 = vsel %vm154_vm3, %v124_v0, 0.0  ;;  %v10044_v12 = vsel %vm154_vm3, %v125_v63, 0.0  ;;  %v10050_v13 = vpack.c.bf16 %v10016_v60, %v10011_v59 }
   0xf   :  { %8784 = vmatprep.mubr.msk.bf16.mxu0 %vm186_vm1, %v182_v41  ;;  %13889 = vst [vmem:[#allocation3_spill] sm:$0xff] %v10041_v7  ;;  %v10055_v14 = vsel %vm108_vm2, 0.0, %v91_v5  ;;  %v126_v16 = vrot.slane %v9833_v8, 1  ;;  %v127_v23 = vrot.slane %v9838_v9, 1  ;;  %v436_v27 = vpack.c.bf16 %v10044_v12, %v10041_v7  ;;  %v7736_v5 = vld [vmem:[%s13804_s1 + $0xc] sm:$0x3] }
  0x10   :  { %v10058_v15 = vsel %vm108_vm2, 0.0, %v92_v6  ;;  %v128_v28 = vrot.slane %v9843_v10, 1  ;;  %v129_v31 = vrot.slane %v9867_v19, 1  ;;  %v598_v34 = vpack.c.bf16 %v9877_v21, %v9862_v18 }
  0x11   :  { %8799 = vmatmul.mubr.msk.bf16.gmra.mxu1 %vm186_vm1, %v9972_v47  ;;  %v10068_v32 = vpack.c.bf16 %v10058_v15, %v10055_v14  ;;  %v10075_v35 = vsel %vm154_vm3, %v126_v16, 0.0  ;;  %v10078_v41 = vsel %vm154_vm3, %v127_v23, 0.0  ;;  %v130_v50 = vrot.slane %v9872_v20, 1 }
  0x12   :  { %8802 = vmatprep.mubr.msk.bf16.mxu1 %vm186_vm1, %v174_v48  ;;  %v10082_v48 = vsel %vm154_vm3, %v128_v28, 0.0  ;;  %v10085_v49 = vsel %vm154_vm3, %v129_v31, 0.0  ;;  %v10091_v18 = vpack.c.bf16 %v10078_v41, %v10075_v35  ;;  %v131_v52 = vrot.slane %v9887_v24, 1 }
  0x13   :  { %v10096_v21 = vpack.c.bf16 %v10085_v49, %v10082_v48  ;;  %v779_v54 = vsel %vm211_vm0, %v9915_v33, 0  ;;  %v132_v63 = vrot.slane %v9892_v25, 1  ;;  %v599_v0 = vpack.c.bf16 %v9903_v29, %v9880_v22 }
  0x14   :  { %v600_v6 = vpack.c.bf16 %v9932_v38, %v9929_v37  ;;  %v586_v16 = vrot.slane %v10103_v53, 7  ;;  %v10121_v33 = vsel %vm154_vm3, %v130_v50, 0.0  ;;  %v10124_v22 = vsel %vm154_vm3, %v131_v52, 0.0  ;;  %v7737_v37 = vld [vmem:[%s13804_s1 + $0xe] sm:$0x3] }
  0x15   :  { %v927_v29 = vsel %vm211_vm0, %v9983_v51, 0  ;;  %v10129_v23 = vsel %vm154_vm3, %v132_v63, 0.0  ;;  %v10138_v38 = vpack.c.bf16 %v10124_v22, %v10121_v33  ;;  %v133_v28 = vrot.slane %v9948_v42, 1 }
  0x16   :  { %8785 = vmatmul.mubr.msk.bf16.gmra.mxu0 %vm186_vm1, %v9995_v55  ;;  %v440_v51 = vpack.c.bf16 %v10129_v23, %v10041_v7  ;;  %v134_v31 = vrot.slane %v9953_v43, 1  ;;  %v136_v50 = vrot.slane %v9966_v46, 1  ;;  %vm1665_vm4 = vcmask 261120  }
  0x17   :  { %8788 = vmatprep.mubr.msk.bf16.mxu0 %vm186_vm1, %v10006_v58  ;;  %v164_v63 = vsel %vm154_vm3, %v133_v28, 0.0  ;;  %v603_v28 = vpack.c.bf16 %v10019_v61, %v10002_v57  ;;  %v746_v61 = vpack.c.bf16 %v9833_v8, %v9821_v2  ;;  %v748_v2 = vpack.c.bf16 %v9872_v20, %v9867_v19 }
  0x18   :  { %v1051_v8 = vsel %vm211_vm0, %v7736_v5, 0  ;;  %v749_v19 = vpack.c.bf16 %v10103_v53, %v9887_v24  ;;  %v751_v24 = vpack.c.bf16 %v9961_v45, %v9953_v43 }
  0x19   :  { %8803 = vmatmul.mubr.msk.bf16.gmra.mxu1 %vm186_vm1, %v10028_v1 }
  0x1a   :  { %8806 = vmatprep.mubr.msk.bf16.mxu1 %vm186_vm1, %v10034_v4 }
  0x1e   :  { %8789 = vmatmul.mubr.msk.bf16.gmra.mxu0 %vm186_vm1, %v10050_v13 }
  0x1f   :  { %8812 = vmatprep.mubr.msk.bf16.mxu0 %vm186_vm1, %v436_v27  ;;  %v10142_v27 = vsel %vm108_vm2, 0.0, %v586_v16  ;;  %v167_v16 = vsel %vm154_vm3, %v136_v50, 0.0 }
  0x20   :  { %v601_v52 = vpack.c.bf16 %v10142_v27, %v9941_v40 }
  0x21   :  { %8807 = vmatmul.mubr.msk.bf16.gmra.mxu1 %vm186_vm1, %v10068_v32 }
  0x22   :  { %8830 = vmatprep.mubr.msk.bf16.mxu1 %vm186_vm1, %v598_v34  ;;  %v135_v34 = vrot.slane %v9961_v45, 1 }
  0x26   :  { %8813 = vmatmul.mubr.msk.bf16.vlgmr.msra.gmra.mxu0 %vm186_vm1, %v10091_v18 }
  0x27   :  { %8847 = vmatpush3.bf16.msra.mxu0 %v779_v54  ;;  %8816 = vmatprep.mubr.msk.bf16.mxu0 %vm186_vm1, %v10096_v21  ;;  %v602_v54 = vpack.c.bf16 %v9999_v56, %v9956_v44  ;;  %v137_v44 = vrot.slane %v10011_v59, 1  ;;  %v138_v56 = vrot.slane %v10016_v60, 1 }
  0x28   :  { %9682 = vmatprep.subr.msk.bf16.mxu0 %vm211_vm0, %v7736_v5  ;;  %v752_v5 = vpack.c.bf16 %v10011_v59, %v9966_v46 }
  0x29   :  { %8831 = vmatmul.mubr.msk.bf16.vlgmr.msra.gmra.mxu1 %vm186_vm1, %v599_v0  ;;  %v165_v0 = vsel %vm154_vm3, %v134_v31, 0.0  ;;  %v604_v31 = vpack.c.bf16 %v10055_v14, %v10022_v62  ;;  %v168_v50 = vsel %vm154_vm3, %v137_v44, 0.0  ;;  %v894_v14 = vpack.c.bf16 %v10075_v35, %v10044_v12  ;;  %v7738_v12 = vld [vmem:[%s13804_s1 + $0x10] sm:$0x3] }
  0x2a   :  { %8834 = vmatprep.mubr.msk.bf16.mxu1 %vm186_vm1, %v600_v6  ;;  %8865 = vmatpush3.bf16.msra.mxu1 %v927_v29  ;;  %v166_v6 = vsel %vm154_vm3, %v135_v34, 0.0  ;;  %v10163_v29 = vpack.c.bf16 %v165_v0, %v164_v63  ;;  %v747_v44 = vpack.c.bf16 %v9843_v10, %v9838_v9  ;;  %v896_v35 = vpack.c.bf16 %v10121_v33, %v10085_v49 }
  0x2b   :  { %9683 = vmatprep.subr.msk.bf16.mxu1 %vm211_vm0, %v7737_v37  ;;  %v10166_v40 = vpack.c.bf16 %v167_v16, %v166_v6  ;;  %v592_v9 = vrot.slane %v10103_v53, 1  ;;  %v1175_v10 = vsel %vm211_vm0, %v7737_v37, 0  ;;  %v898_v49 = vpack.c.bf16 %v164_v63, %v10129_v23 }
  0x2c   :  { %v899_v33 = vpack.c.bf16 %v166_v6, %v165_v0  ;;  %v1299_v46 = vsel %vm211_vm0, %v7738_v12, 0 }
  0x2d   :  { %v596_v20 = vsel %vm154_vm3, %v592_v9, 0.0 }
  0x2e   :  { %8817 = vmatmul.mubr.msk.bf16.gmra.mxu0 %vm186_vm1, %v10138_v38 }
  0x2f   :  { %8820 = vmatprep.mubr.msk.bf16.mxu0 %vm186_vm1, %v440_v51  ;;  %v10173_v51 = vld [vmem:[%s13805_s0 + $0x78] sm:$0xff] }
  0x30   :  { %v587_v34 = vrot.slane %v10173_v51, 7 }
  0x31   :  { %8835 = vmatmul.mubr.msk.bf16.gmra.mxu1 %vm186_vm1, %v601_v52  ;;  %v169_v52 = vsel %vm154_vm3, %v138_v56, 0.0  ;;  %v9688_v56 = vld [vmem:[%s13806_s5 + $0x8] sm:$0xff]  }
  0x32   :  { %8838 = vmatprep.mubr.msk.bf16.mxu1 %vm186_vm1, %v602_v54  ;;  %v10187_v54 = vpack.c.bf16 %v169_v52, %v168_v50  ;;  %v10191_v57 = vsel %vm108_vm2, 0.0, %v587_v34 }
  0x33   :  { %v605_v62 = vpack.c.bf16 %v10191_v57, %v10058_v15  ;;  %v895_v15 = vpack.c.bf16 %v10082_v48, %v10078_v41  ;;  %v750_v41 = vpack.c.bf16 %v9948_v42, %v9892_v25  ;;  %v897_v48 = vpack.c.bf16 %v596_v20, %v10124_v22 }
  0x34   :  { %v900_v25 = vpack.c.bf16 %v168_v50, %v167_v16  ;;  %v593_v42 = vrot.slane %v10173_v51, 1  ;;  %v753_v22 = vpack.c.bf16 %v10173_v51, %v10016_v60  ;;  %v9687_v16 = vld [vmem:[%s13806_s5 + $0x10] sm:$0xff]  }
  0x36   :  { %8821 = vmatmul.mubr.msk.bf16.gmra.mxu0 %vm186_vm1, %v10163_v29  ;;  %v597_v43 = vsel %vm154_vm3, %v593_v42, 0.0 }
  0x37   :  { %8824 = vmatprep.mubr.msk.bf16.mxu0 %vm186_vm1, %v10166_v40  ;;  %v901_v45 = vpack.c.bf16 %v597_v43, %v169_v52  ;;  %v9689_v52 = vld [vmem:[%s13806_s5] sm:$0xff]  }
  0x39   :  { %8839 = vmatmul.mubr.msk.bf16.gmra.mxu1 %vm186_vm1, %v603_v28 }
  0x3a   :  { %8842 = vmatprep.mubr.msk.bf16.mxu1 %vm186_vm1, %v604_v31 }
  0x3e   :  { %8825 = vmatmul.mubr.msk.bf16.gmra.mxu0 %vm186_vm1, %v10187_v54 }
  0x3f   :  { %8848 = vmatprep.mubr.msk.bf16.mxu0 %vm186_vm1, %v746_v61 }
  0x41   :  { %8843 = vmatmul.mubr.msk.bf16.gmra.mxu1 %vm186_vm1, %v605_v62 }
  0x42   :  { %8866 = vmatprep.mubr.msk.bf16.mxu1 %vm186_vm1, %v894_v14 }
  0x46   :  { %8849 = vmatmul.mubr.msk.bf16.vlgmr.msra.gmra.mxu0 %vm186_vm1, %v747_v44 }
  0x47   :  { %8883 = vmatpush3.bf16.msra.mxu0 %v1051_v8  ;;  %8852 = vmatprep.mubr.msk.bf16.mxu0 %vm186_vm1, %v748_v2 }
  0x48   :  { %9684 = vmatprep.subr.msk.bf16.mxu0 %vm211_vm0, %v7738_v12 }
  0x49   :  { %8867 = vmatmul.mubr.msk.bf16.vlgmr.msra.gmra.mxu1 %vm186_vm1, %v895_v15 }
  0x4a   :  { %8870 = vmatprep.mubr.msk.bf16.mxu1 %vm186_vm1, %v896_v35  ;;  %8901 = vmatpush3.bf16.msra.mxu1 %v1175_v10 }
  0x4e   :  { %8853 = vmatmul.mubr.msk.bf16.gmra.mxu0 %vm186_vm1, %v749_v19 }
  0x4f   :  { %8856 = vmatprep.mubr.msk.bf16.mxu0 %vm186_vm1, %v750_v41 }
  0x51   :  { %8871 = vmatmul.mubr.msk.bf16.gmra.mxu1 %vm186_vm1, %v897_v48 }
  0x52   :  { %8874 = vmatprep.mubr.msk.bf16.mxu1 %vm186_vm1, %v898_v49 }
  0x56   :  { %8857 = vmatmul.mubr.msk.bf16.gmra.mxu0 %vm186_vm1, %v751_v24 }
  0x57   :  { %8860 = vmatprep.mubr.msk.bf16.mxu0 %vm186_vm1, %v752_v5 }
  0x59   :  { %8875 = vmatmul.mubr.msk.bf16.gmra.mxu1 %vm186_vm1, %v899_v33 }
  0x5a   :  { %8878 = vmatprep.mubr.msk.bf16.mxu1 %vm186_vm1, %v900_v25 }
  0x5e   :  { %8861 = vmatmul.mubr.msk.bf16.gmra.mxu0 %vm186_vm1, %v753_v22 }
  0x5f   :  { %8884 = vmatprep.mubr.msk.bf16.mxu0 %vm186_vm1, %v9896_v26  ;;  %v1042_v26 = vpack.c.bf16 %v9859_v17, %v10142_v27 }
  0x61   :  { %8879 = vmatmul.mubr.msk.bf16.gmra.mxu1 %vm186_vm1, %v901_v45 }
  0x62   :  { %8902 = vmatprep.mubr.msk.bf16.mxu1 %vm186_vm1, %v9847_v11  ;;  %v1166_v11 = vpack.c.bf16 %v13813_v3, %v10103_v53 }
  0x66   :  { %8885 = vmatmul.mubr.msk.bf16.vlgmr.msra.gmra.mxu0 %vm186_vm1, %v9938_v39  ;;  %v1290_v39 = vpack.c.bf16 %v10041_v7, %v596_v20  ;;  %v10328_v20 = vld [vmem:[%s13806_s5 + $0x28] sm:$0xff]  }
  0x67   :  { %8919 = vmatpush3.bf16.msra.mxu0 %v1299_v46  ;;  %8888 = vmatprep.mubr.msk.bf16.mxu0 %vm186_vm1, %v9972_v47  ;;  %v1291_v47 = vpack.c.bf16 %v10041_v7, %v597_v43  ;;  %13890 = vst [vmem:[#allocation4_spill] sm:$0xff] %v10328_v20 }
  0x68   :  { %8956 = vmatprep.subr.bf16.mxu0 %v9688_v56 }
  0x69   :  { %8903 = vmatmul.mubr.msk.bf16.vlgmr.msra.gmra.mxu1 %vm186_vm1, %v9908_v30  ;;  %v1043_v30 = vpack.c.bf16 %v9859_v17, %v10191_v57 }
  0x6a   :  { %8906 = vmatprep.mubr.msk.bf16.mxu1 %vm186_vm1, %v9926_v36  ;;  %v1167_v36 = vpack.c.bf16 %v13813_v3, %v10173_v51 }
  0x6e   :  { %8889 = vmatmul.mubr.msk.bf16.gmra.mxu0 %vm186_vm1, %v1042_v26 }
  0x6f   :  { %8892 = vmatprep.mubr.msk.bf16.mxu0 %vm186_vm1, %v10028_v1 }
  0x71   :  { %8907 = vmatmul.mubr.msk.bf16.gmra.mxu1 %vm186_vm1, %v1166_v11 }
  0x72   :  { %8910 = vmatprep.mubr.msk.bf16.mxu1 %vm186_vm1, %v9995_v55  ;;  %v9686_v55 = vld [vmem:[%s13806_s5 + $0x18] sm:$0xff]  }
  0x73   :  { %8936 = vmatprep.subr.bf16.mxu1 %v9686_v55 }
  0x74   :  { %8937 = vmatpush3.bf16.msra.mxu1 %v9686_v55 }
  0x75   :  { %8938 = vmatprep.subr.bf16.mxu1 %v9687_v16 }
  0x76   :  { %8893 = vmatmul.mubr.msk.bf16.gmra.mxu0 %vm186_vm1, %v10034_v4 }
  0x77   :  { %8896 = vmatprep.mubr.msk.bf16.mxu0 %vm186_vm1, %v10068_v32 }
  0x78   :  { %8939 = vmatpush3.bf16.msra.mxu1 %v9687_v16 }
  0x79   :  { %8911 = vmatmul.mubr.msk.bf16.gmra.mxu1 %vm186_vm1, %v10006_v58  ;;  %8976 = vmatprep.subr.bf16.mxu1 %v10328_v20 }
  0x7a   :  { %8914 = vmatprep.mubr.msk.bf16.mxu1 %vm186_vm1, %v10050_v13 }
  0x7e   :  { %8897 = vmatmul.mubr.msk.bf16.gmra.mxu0 %vm186_vm1, %v1043_v30 }
  0x7f   :  { %8920 = vmatprep.mubr.msk.bf16.mxu0 %vm186_vm1, %v10091_v18 }
  0x81   :  { %8915 = vmatmul.mubr.msk.bf16.gmra.mxu1 %vm186_vm1, %v1167_v36 }
  0x86   :  { %8921 = vmatmul.mubr.msk.bf16.vlgmr.msra.gmra.mxu0 %vm186_vm1, %v10096_v21 }
  0x87   :  { %8924 = vmatprep.mubr.msk.bf16.mxu0 %vm186_vm1, %v10138_v38  ;;  %8957 = vmatpush3.bf16.msra.mxu0 %v9688_v56 }
  0x88   :  { %8958 = vmatprep.subr.bf16.mxu0 %v9689_v52 }
  0x8b   :  { %8959 = vmatpush3.bf16.msra.mxu0 %v9689_v52 }
  0x8e   :  { %8925 = vmatmul.mubr.msk.bf16.gmra.mxu0 %vm186_vm1, %v1290_v39 }
  0x8f   :  { %8928 = vmatprep.mubr.msk.bf16.mxu0 %vm186_vm1, %v10163_v29 }
  0x96   :  { %8929 = vmatmul.mubr.msk.bf16.gmra.mxu0 %vm186_vm1, %v10166_v40 }
  0x97   :  { %8932 = vmatprep.mubr.msk.bf16.mxu0 %vm186_vm1, %v10187_v54 }
  0x9e   :  { %8933 = vmatmul.mubr.msk.bf16.gmra.mxu0 %vm186_vm1, %v1291_v47 }
  0xc6   :  { %v8778_v58 = vpop.f32.mrf.mxu0 }
  0xc8   :  { %v249_v59 = vpop.f32.mrf.mxu0 }
  0xc9   :  { %v8796_v60 = vpop.f32.mrf.mxu1 }
  0xca   :  { %v382_v1 = vadd.f32 %v8796_v60, %v8778_v58  ;;  %v8779_v4 = vpop.f32.mrf.mxu0 }
  0xcb   :  { %v373_v13 = vpop.f32.mrf.mxu1 }
  0xcc   :  { %v374_v32 = vadd.f32 %v373_v13, %v249_v59  ;;  %v10304_v18 = vpop.f32.mrf.mxu0 }
  0xcd   :  { %v8797_v21 = vpop.f32.mrf.mxu1 }
  0xce   :  { %v385_v53 = vadd.f32 %v8797_v21, %v8779_v4  ;;  %v8782_v23 = vpop.f32.mrf.mxu0 }
  0xcf   :  { %v10306_v37 = vpop.f32.mrf.mxu1 }
  0xd0   :  { %v265_v38 = vpop.f32.mrf.mxu0 }
  0xd1   :  { %v8800_v27 = vpop.f32.mrf.mxu1 }
  0xd2   :  { %v398_v63 = vadd.f32 %v8800_v27, %v8782_v23  ;;  %v8783_v0 = vpop.f32.mrf.mxu0 }
  0xd3   :  { %v389_v6 = vpop.f32.mrf.mxu1 }
  0xd4   :  { %v390_v29 = vadd.f32 %v389_v6, %v265_v38  ;;  %v10311_v40 = vpop.f32.mrf.mxu0  ;;  %v10364_v6 = vld [vmem:[%s13806_s5 + $0x38] sm:$0xff]  }
  0xd5   :  { %v8801_v51 = vpop.f32.mrf.mxu1  ;;  %13891 = vst [vmem:[#allocation5_spill] sm:$0xff] %v10364_v6  ;;  %8996 = vmatprep.subr.bf16.mxu0 %v10364_v6 }
  0xd6   :  { %v401_v28 = vadd.f32 %v8801_v51, %v8783_v0  ;;  %v8786_v31 = vpop.f32.mrf.mxu0 }
  0xd7   :  { %v10316_v34 = vpop.f32.mrf.mxu1 }
  0xd8   :  { %v281_v50 = vpop.f32.mrf.mxu0 }
  0xd9   :  { %v8804_v54 = vpop.f32.mrf.mxu1 }
  0xda   :  { %v414_v57 = vadd.f32 %v8804_v54, %v8786_v31  ;;  %v8787_v61 = vpop.f32.mrf.mxu0 }
  0xdb   :  { %v405_v62 = vpop.f32.mrf.mxu1 }
  0xdc   :  { %v406_v14 = vadd.f32 %v405_v62, %v281_v50  ;;  %v10321_v44 = vpop.f32.mrf.mxu0 }
  0xdd   :  { %v8805_v2 = vpop.f32.mrf.mxu1 }
  0xde   :  { %v417_v8 = vadd.f32 %v8805_v2, %v8787_v61  ;;  %v8790_v15 = vpop.f32.mrf.mxu0 }
  0xdf   :  { %v10323_v12 = vpop.f32.mrf.mxu1 }
  0xe0   :  { %v297_v35 = vpop.f32.mrf.mxu0 }
  0xe1   :  { %v8808_v9 = vpop.f32.mrf.mxu1 }
  0xe2   :  { %v430_v10 = vadd.f32 %v8808_v9, %v8790_v15  ;;  %v8791_v19 = vpop.f32.mrf.mxu0 }
  0xe3   :  { %v421_v41 = vpop.f32.mrf.mxu1 }
  0xe4   :  { %v422_v48 = vadd.f32 %v421_v41, %v297_v35  ;;  %v10330_v49 = vpop.f32.mrf.mxu0 }
  0xe5   :  { %v8809_v24 = vpop.f32.mrf.mxu1 }
  0xe6   :  { %v433_v5 = vadd.f32 %v8809_v24, %v8791_v19  ;;  %v8814_v33 = vpop.f32.mrf.mxu0 }
  0xe7   :  { %v10333_v25 = vpop.f32.mrf.mxu1  ;;  %v10335_v42 = vadd.f32 %v8814_v33, %v382_v1 }
  0xe8   :  { %v505_v22 = vpop.f32.mrf.mxu0 }
  0xe9   :  { %v10337_v43 = vadd.f32 %v505_v22, %v374_v32  ;;  %v10339_v45 = vpop.f32.mrf.mxu1 }
  0xea   :  { %v8815_v46 = vpop.f32.mrf.mxu0 }
  0xeb   :  { %v571_v26 = vadd.f32 %v8815_v46, %v385_v53  ;;  %v10341_v11 = vpop.f32.mrf.mxu1 }
  0xec   :  { %v10343_v30 = vpop.f32.mrf.mxu0 }
  0xed   :  { %v8833_v36 = vpop.f32.mrf.mxu1 }
  0xee   :  { %v733_v39 = vadd.f32 %v8833_v36, %v571_v26  ;;  %v8818_v47 = vpop.f32.mrf.mxu0 }
  0xef   :  { %v10345_v55 = vadd.f32 %v8818_v47, %v398_v63  ;;  %v10347_v58 = vpop.f32.mrf.mxu1 }
  0xf0   :  { %v521_v59 = vpop.f32.mrf.mxu0 }
  0xf1   :  { %v10349_v60 = vadd.f32 %v521_v59, %v390_v29  ;;  %v10351_v1 = vpop.f32.mrf.mxu1 }
  0xf2   :  { %v8819_v4 = vpop.f32.mrf.mxu0 }
  0xf3   :  { %v575_v13 = vadd.f32 %v8819_v4, %v401_v28  ;;  %v10353_v32 = vpop.f32.mrf.mxu1 }
  0xf4   :  { %v10355_v21 = vpop.f32.mrf.mxu0 }
  0xf5   :  { %v8837_v53 = vpop.f32.mrf.mxu1 }
  0xf6   :  { %v737_v23 = vadd.f32 %v8837_v53, %v575_v13  ;;  %v8822_v38 = vpop.f32.mrf.mxu0 }
  0xf7   :  { %v10357_v27 = vadd.f32 %v8822_v38, %v414_v57  ;;  %v10359_v63 = vpop.f32.mrf.mxu1 }
  0xf8   :  { %v537_v0 = vpop.f32.mrf.mxu0 }
  0xf9   :  { %v10366_v16 = vadd.f32 %v537_v0, %v406_v14  ;;  %v10368_v29 = vpop.f32.mrf.mxu1 }
  0xfa   :  { %v8823_v56 = vpop.f32.mrf.mxu0 }
  0xfb   :  { %v10371_v51 = vadd.f32 %v8823_v56, %v417_v8  ;;  %v10373_v28 = vpop.f32.mrf.mxu1 }
  0xfc   :  { %v10375_v31 = vpop.f32.mrf.mxu0 }
  0xfd   :  { %v10377_v50 = vpop.f32.mrf.mxu1 }
  0xfe   :  { %v8826_v52 = vpop.f32.mrf.mxu0 }
  0xff   :  { %v10379_v54 = vadd.f32 %v8826_v52, %v430_v10  ;;  %v10381_v57 = vpop.f32.mrf.mxu1 }
 0x100   :  { %v553_v61 = vpop.f32.mrf.mxu0 }
 0x101   :  { %v10383_v62 = vadd.f32 %v553_v61, %v422_v48  ;;  %v10385_v14 = vpop.f32.mrf.mxu1 }
 0x102   :  { %v8827_v2 = vpop.f32.mrf.mxu0 }
 0x103   :  { %v583_v15 = vadd.f32 %v8827_v2, %v433_v5  ;;  %v10387_v8 = vpop.f32.mrf.mxu1 }
 0x104   :  { %v10389_v35 = vpop.f32.mrf.mxu0 }
 0x105   :  { %v8845_v9 = vpop.f32.mrf.mxu1 }
 0x106   :  { %v745_v19 = vadd.f32 %v8845_v9, %v583_v15  ;;  %v10391_v41 = vpop.f32.mrf.mxu0 }
 0x107   :  { %v10393_v24 = vpop.f32.mrf.mxu1 }
 0x108   :  { %v10395_v10 = vpop.f32.mrf.mxu0 }
 0x109   :  { %v10397_v33 = vpop.f32.mrf.mxu1 }
 0x10a   :  { %v8851_v48 = vpop.f32.mrf.mxu0 }
 0x10b   :  { %v10399_v22 = vadd.f32 %v8851_v48, %v733_v39  ;;  %v10401_v46 = vpop.f32.mrf.mxu1 }
 0x10c   :  { %v10403_v5 = vpop.f32.mrf.mxu0 }
 0x10d   :  { %v10405_v26 = vpop.f32.mrf.mxu1 }
 0x10e   :  { %v10407_v36 = vpop.f32.mrf.mxu0 }
 0x10f   :  { %v10409_v47 = vpop.f32.mrf.mxu1 }
 0x110   :  { %v10411_v59 = vpop.f32.mrf.mxu0 }
 0x111   :  { %v10413_v4 = vpop.f32.mrf.mxu1 }
 0x112   :  { %13892 = vst [vmem:[#allocation6_spill] sm:$0xff] %v10413_v4  ;;  %v8855_v13 = vpop.f32.mrf.mxu0 }
 0x113   :  { %v885_v53 = vadd.f32 %v8855_v13, %v737_v23  ;;  %v10415_v38 = vpop.f32.mrf.mxu1 }
 0x114   :  { %13893 = vst [vmem:[#allocation7_spill] sm:$0xff] %v10415_v38  ;;  %v10417_v39 = vpop.f32.mrf.mxu0 }
 0x115   :  { %v8873_v0 = vpop.f32.mrf.mxu1 }
 0x116   :  { %v1033_v56 = vadd.f32 %v8873_v0, %v885_v53  ;;  %v10419_v52 = vpop.f32.mrf.mxu0 }
 0x117   :  { %v10421_v61 = vpop.f32.mrf.mxu1 }
 0x118   :  { %13894 = vst [vmem:[#allocation8_spill] sm:$0xff] %v10421_v61  ;;  %v10423_v2 = vpop.f32.mrf.mxu0 }
 0x119   :  { %13895 = vst [vmem:[#allocation9_spill] sm:$0xff] %v10423_v2  ;;  %v10425_v15 = vpop.f32.mrf.mxu1 }
 0x11a   :  { %13896 = vst [vmem:[#allocation10_spill] sm:$0xff] %v10425_v15  ;;  %v10427_v9 = vpop.f32.mrf.mxu0 }
 0x11b   :  { %13897 = vst [vmem:[#allocation11_spill] sm:$0xff] %v10427_v9  ;;  %v10429_v48 = vpop.f32.mrf.mxu1  ;;  %v1439_v9 = vlaneseq }
 0x11c   :  { %13898 = vst [vmem:[#allocation12_spill] sm:$0xff] %v10429_v48  ;;  %v10431_v3 = vpop.f32.mrf.mxu0 }
 0x11d   :  { %13899 = vst [vmem:[#allocation13_spill] sm:$0xff] %v10431_v3  ;;  %v10433_v23 = vpop.f32.mrf.mxu1 }
 0x11e   :  { %13900 = vst [vmem:[#allocation14_spill] sm:$0xff] %v10433_v23  ;;  %v10435_v13 = vpop.f32.mrf.mxu0 }
 0x11f   :  { %13901 = vst [vmem:[#allocation15_spill] sm:$0xff] %v10435_v13  ;;  %v10437_v7 = vpop.f32.mrf.mxu1 }
 0x120   :  { %13902 = vst [vmem:[#allocation16_spill] sm:$0xff] %v10437_v7  ;;  %v10439_v53 = vpop.f32.mrf.mxu0 }
 0x121   :  { %13903 = vst [vmem:[#allocation17_spill] sm:$0xff] %v10439_v53  ;;  %v10441_v0 = vpop.f32.mrf.mxu1 }
 0x122   :  { %13904 = vst [vmem:[#allocation18_spill] sm:$0xff] %v10441_v0  ;;  %v8863_v6 = vpop.f32.mrf.mxu0 }
 0x123   :  { %v893_v20 = vadd.f32 %v8863_v6, %v745_v19  ;;  %v10443_v17 = vpop.f32.mrf.mxu1 }
 0x124   :  { %13905 = vst [vmem:[#allocation19_spill] sm:$0xff] %v10443_v17  ;;  %v10445_v15 = vpop.f32.mrf.mxu0 }
 0x125   :  { %13906 = vst [vmem:[#allocation20_spill] sm:$0xff] %v10445_v15  ;;  %v8881_v61 = vpop.f32.mrf.mxu1 }
 0x126   :  { %v10447_v48 = vadd.f32 %v8881_v61, %v893_v20  ;;  %v8886_v38 = vpop.f32.mrf.mxu0 }
 0x127   :  { %v10449_v4 = vpop.f32.mrf.mxu1 }
 0x128   :  { %13907 = vst [vmem:[#allocation21_spill] sm:$0xff] %v10449_v4  ;;  %v1087_v23 = vpop.f32.mrf.mxu0 }
 0x129   :  { %v10451_v13 = vpop.f32.mrf.mxu1 }
 0x12a   :  { %v10453_v7 = vpop.f32.mrf.mxu0 }
 0x12b   :  { %v10455_v53 = vpop.f32.mrf.mxu1 }
 0x12c   :  { %13908 = vst [vmem:[#allocation22_spill] sm:$0xff] %v10455_v53  ;;  %v10457_v0 = vpop.f32.mrf.mxu0 }
 0x12d   :  { %13909 = vst [vmem:[#allocation23_spill] sm:$0xff] %v10457_v0  ;;  %v10459_v6 = vpop.f32.mrf.mxu1 }
 0x12e   :  { %13910 = vst [vmem:[#allocation24_spill] sm:$0xff] %v10459_v6  ;;  %v10461_v19 = vpop.f32.mrf.mxu0  ;;  %v10479_v6 = vshrl.u32 %v1439_v9, 7 }
 0x12f   :  { %13911 = vst [vmem:[#allocation25_spill] sm:$0xff] %v10461_v19  ;;  %v10463_v17 = vpop.f32.mrf.mxu1 }
 0x130   :  { %v10465_v20 = vpop.f32.mrf.mxu0  ;;  %13917 = vst [vmem:[#allocation31_spill] sm:$0xff] %v10479_v6 }
 0x131   :  { %13912 = vst [vmem:[#allocation26_spill] sm:$0xff] %v10465_v20  ;;  %v10467_v61 = vpop.f32.mrf.mxu1  ;;  %v377_v20 = vadd.f32 %v10306_v37, %v10304_v18  ;;  %v409_v18 = vadd.f32 %v10323_v12, %v10321_v44 }
 0x132   :  { %v8891_v4 = vpop.f32.mrf.mxu0 }
 0x133   :  { %v10469_v15 = vadd.f32 %v8891_v4, %v1033_v56  ;;  %v10471_v3 = vpop.f32.mrf.mxu1  ;;  %v732_v4 = vadd.f32 %v10339_v45, %v10335_v42  ;;  %v393_v56 = vadd.f32 %v10316_v34, %v10311_v40  ;;  %v569_v9 = vadd.f32 %v10343_v30, %v377_v20  ;;  %v1437_v40 = vld [vmem:[%s13807_s3] sm:$0xf] }
 0x134   :  { %13914 = vst [vmem:[#allocation28_spill] sm:$0xff] %v10471_v3  ;;  %v10473_v2 = vpop.f32.mrf.mxu0  ;;  %v1438_v34 = vld [vmem:[%s13808_s4] sm:$0xf]  ;;  %v577_v45 = vadd.f32 %v10375_v31, %v409_v18  ;;  %v425_v20 = vadd.f32 %v10333_v25, %v10330_v49  ;;  %v734_v31 = vadd.f32 %v10353_v32, %v10349_v60  ;;  %v738_v49 = vadd.f32 %v10373_v28, %v10366_v16  ;;  %v13925_v18 = vld [vmem:[#allocation7_spill] sm:$0xff] }
 0x135   :  { %13913 = vst [vmem:[#allocation27_spill] sm:$0xff] %v10469_v15  ;;  %v10475_v53 = vpop.f32.mrf.mxu1  ;;  %v573_v37 = vadd.f32 %v10355_v21, %v393_v56  ;;  %v731_v44 = vadd.f32 %v10347_v58, %v569_v9  ;;  %v740_v58 = vadd.f32 %v10368_v29, %v10357_v27  ;;  %v741_v25 = vadd.f32 %v10377_v50, %v10371_v51  ;;  %v13924_v56 = vld [vmem:[#allocation23_spill] sm:$0xff] }
 0x136   :  { %13915 = vst [vmem:[#allocation29_spill] sm:$0xff] %v10475_v53  ;;  %v10477_v0 = vpop.f32.mrf.mxu0  ;;  %v730_v53 = vadd.f32 %v10341_v11, %v10337_v43  ;;  %v581_v60 = vadd.f32 %v10389_v35, %v425_v20  ;;  %v1029_v27 = vadd.f32 %v10405_v26, %v10399_v22  ;;  %v744_v16 = vadd.f32 %v10385_v14, %v10379_v54  ;;  %v13919_v54 = vld [vmem:[#allocation9_spill] sm:$0xff] }
 0x137   :  { %13916 = vst [vmem:[#allocation30_spill] sm:$0xff] %v10477_v0  ;;  %v10489_v15 = vpop.f32.mrf.mxu1  ;;  %v1441_v0 = vsub.s32 0, %v10479_v6  ;;  %v882_v51 = vadd.f32 %v10411_v59, %v734_v31  ;;  %v888_v50 = vadd.f32 %v10419_v52, %v740_v58  ;;  %v742_v35 = vadd.f32 %v10387_v8, %v10383_v62  ;;  %v13920_v59 = vld [vmem:[#allocation11_spill] sm:$0xff]  ;;  %v10569_v62 = vld [vmem:[%s13809_s2] ss:$0 sm:$0xff] }
 0x138   :  { %v10481_v19 = vpop.f32.mrf.mxu0  ;;  %v878_v43 = vadd.f32 %v10395_v10, %v730_v53  ;;  %v736_v10 = vadd.f32 %v10351_v1, %v10345_v55  ;;  %v735_v53 = vadd.f32 %v10359_v63, %v573_v37  ;;  %v739_v55 = vadd.f32 %v10381_v57, %v577_v45  ;;  %v13922_v8 = vld [vmem:[#allocation6_spill] sm:$0xff] }
 0x139   :  { %13918 = vst [vmem:[#allocation32_spill] sm:$0xff] %v10481_v19  ;;  %v880_v19 = vadd.f32 %v10391_v41, %v732_v4  ;;  %v10511_v11 = vpop.f32.mrf.mxu1  ;;  %v10517_v21 = vrot.slane %v1437_v40, %v1441_v0  ;;  %v10519_v41 = vrot.slane %v1438_v34, %v1441_v0  ;;  %v879_v0 = vadd.f32 %v10403_v5, %v731_v44  ;;  %v13926_v40 = vld [vmem:[#allocation8_spill] sm:$0xff]  ;;  %v13928_v44 = vld [vmem:[#allocation15_spill] sm:$0xff] }
 0x13a   :  { %v10491_v3 = vpop.f32.mrf.mxu0  ;;  %v884_v63 = vadd.f32 %v10407_v36, %v736_v10  ;;  %v883_v28 = vadd.f32 %v10417_v39, %v735_v53  ;;  %v1153_v26 = vadd.f32 %v10453_v7, %v1029_v27  ;;  %v743_v36 = vadd.f32 %v10393_v24, %v581_v60  ;;  %v13921_v39 = vld [vmem:[#allocation13_spill] sm:$0xff]  ;;  %v13930_v53 = vld [vmem:[#allocation24_spill] sm:$0xff] }
 0x13b   :  { %v1028_v12 = vadd.f32 %v10397_v33, %v880_v19  ;;  %v1026_v33 = vadd.f32 %v10401_v46, %v878_v43  ;;  %v10540_v1 = vpop.f32.mrf.mxu1  ;;  %v1027_v22 = vadd.f32 %v10409_v47, %v879_v0  ;;  %v886_v14 = vadd.f32 %v13919_v54, %v738_v49  ;;  %v13927_v43 = vld [vmem:[#allocation10_spill] sm:$0xff]  ;;  %v13929_v10 = vld [vmem:[#allocation17_spill] sm:$0xff]  ;;  %v13934_v60 = vld [vmem:[#allocation16_spill] sm:$0xff] }
 0x13c   :  { %v10501_v42 = vpop.f32.mrf.mxu0  ;;  %v1032_v47 = vadd.f32 %v13922_v8, %v884_v63  ;;  %v1030_v37 = vadd.f32 %v13925_v18, %v882_v51  ;;  %v1031_v34 = vadd.f32 %v13926_v40, %v883_v28  ;;  %v1036_v45 = vadd.f32 %v13927_v43, %v888_v50  ;;  %v13935_v27 = vld [vmem:[#allocation25_spill] sm:$0xff] }
 0x13d   :  { %v1152_v19 = vadd.f32 %v8886_v38, %v1028_v12  ;;  %v1150_v29 = vadd.f32 %v1087_v23, %v1026_v33  ;;  %v889_v38 = vadd.f32 %v13920_v59, %v741_v25  ;;  %v10564_v52 = vpop.f32.mrf.mxu1  ;;  %v1151_v24 = vadd.f32 %v13924_v56, %v1027_v22  ;;  %v13933_v25 = vld [vmem:[#allocation14_spill] sm:$0xff] }
 0x13e   :  { %v10513_v30 = vpop.f32.mrf.mxu0  ;;  %v892_v12 = vadd.f32 %v13928_v44, %v744_v16  ;;  %v890_v31 = vadd.f32 %v13929_v10, %v742_v35  ;;  %v1277_v58 = vadd.f32 %v13930_v53, %v1153_v26  ;;  %v1156_v63 = vadd.f32 %v13935_v27, %v1032_v47  ;;  %v13937_v22 = vld [vmem:[#allocation18_spill] sm:$0xff]  ;;  %v13938_v26 = vld [vmem:[#allocation20_spill] sm:$0xff]  ;;  %v13945_v44 = vld [vmem:[#allocation21_spill] sm:$0xff] }
 0x13f   :  { %v1276_v5 = vadd.f32 %v10451_v13, %v1152_v19  ;;  %v13923_v13 = vld [vmem:[#allocation22_spill] sm:$0xff]  ;;  %v13932_v19 = vld [vmem:[#allocation12_spill] sm:$0xff]  ;;  %v1275_v16 = vadd.f32 %v10463_v17, %v1151_v24  ;;  %v891_v54 = vadd.f32 %v13938_v26, %v743_v36 }
 0x140   :  { %v10528_v4 = vpop.f32.mrf.mxu0  ;;  %v1274_v7 = vadd.f32 %v13923_v13, %v1150_v29  ;;  %v1034_v49 = vadd.f32 %v13932_v19, %v886_v14  ;;  %v1246_v29 = vpop.f32.mrf.mxu1  ;;  %v13939_v14 = vld [vmem:[#allocation26_spill] sm:$0xff]  ;;  %v1280_v13 = vadd.f32 %v10467_v61, %v1156_v63  ;;  %v13943_v24 = vld [vmem:[#allocation32_spill] sm:$0xff] }
 0x141   :  { %v1154_v59 = vadd.f32 %v13939_v14, %v1030_v37  ;;  %v1039_v61 = vadd.f32 %v13945_v44, %v891_v54 }
 0x142   :  { %v8899_v32 = vpop.f32.mrf.mxu0  ;;  %v1158_v36 = vadd.f32 %v13943_v24, %v1034_v49  ;;  %v8916_v18 = vpop.f32.mrf.mxu1  ;;  %v9691_v24 = vld [vmem:[%s13806_s5 + $0x20] sm:$0xff]  }
 0x143   :  { %v10546_v46 = vadd.f32 %v8899_v32, %v10447_v48  ;;  %v887_v48 = vadd.f32 %v13921_v39, %v739_v55  ;;  %v1037_v55 = vadd.f32 %v13933_v25, %v889_v38  ;;  %v1155_v38 = vadd.f32 %v10473_v2, %v1031_v34 }
 0x144   :  { %v10553_v57 = vpop.f32.mrf.mxu0  ;;  %v1259_v19 = vpop.f32.mrf.mxu1 }
 0x145   :  { %v1035_v32 = vadd.f32 %v13934_v60, %v887_v48  ;;  %v13940_v48 = vld [vmem:[#allocation19_spill] sm:$0xff] }
 0x146   :  { %v8922_v23 = vpop.f32.mrf.mxu0  ;;  %v8917_v26 = vpop.f32.mrf.mxu1 }
 0x147   :  { %v1400_v9 = vadd.f32 %v8922_v23, %v1276_v5  ;;  %v1040_v5 = vadd.f32 %v13937_v22, %v892_v12  ;;  %v1038_v23 = vadd.f32 %v13940_v48, %v890_v31  ;;  %v13946_v12 = vld [vmem:[#allocation28_spill] sm:$0xff]  ;;  %v1159_v31 = vadd.f32 %v10501_v42, %v1035_v32 }
 0x148   :  { %v1335_v20 = vpop.f32.mrf.mxu0 }
 0x149   :  { %v10581_v33 = vadd.f32 %v10569_v62, %v1400_v9  ;;  %v1398_v0 = vadd.f32 %v1335_v20, %v1274_v7  ;;  %v13942_v7 = vld [vmem:[#allocation30_spill] sm:$0xff]  ;;  %v1161_v9 = vadd.f32 %v10491_v3, %v1037_v55  ;;  %v1279_v20 = vadd.f32 %v10489_v15, %v1155_v38 }
 0x14a   :  { %v8923_v51 = vpop.f32.mrf.mxu0  ;;  %v1160_v56 = vadd.f32 %v13942_v7, %v1036_v45  ;;  %v1278_v45 = vadd.f32 %v13946_v12, %v1154_v59  ;;  %v1164_v53 = vadd.f32 %v10513_v30, %v1040_v5  ;;  %v1282_v30 = vadd.f32 %v10540_v1, %v1158_v36 }
 0x14b   :  { %13931 = vst [vmem:[#allocation9_spill] sm:$0xff] %v10581_v33  ;;  %v1445_v28 = vmul.f32 %v10517_v21, %v10581_v33  ;;  %v10591_v50 = vadd.f32 %v10569_v62, %v1398_v0  ;;  %v1401_v35 = vadd.f32 %v8923_v51, %v1277_v58  ;;  %v1162_v58 = vadd.f32 %v10528_v4, %v1038_v23 }
 0x14c   :  { %v1338_v39 = vpop.f32.mrf.mxu0  ;;  %v1284_v42 = vadd.f32 %v10511_v11, %v1160_v56  ;;  %v1285_v4 = vadd.f32 %v10564_v52, %v1161_v9  ;;  %v1283_v22 = vadd.f32 %v1246_v29, %v1159_v31  ;;  %v1288_v11 = vadd.f32 %v8916_v18, %v1164_v53 }
 0x14d   :  { %13936 = vst [vmem:[#allocation11_spill] sm:$0xff] %v10591_v50  ;;  %v1443_v17 = vmul.f32 %v10517_v21, %v10591_v50  ;;  %v10601_v8 = vadd.f32 %v10569_v62, %v1401_v35  ;;  %v1399_v47 = vadd.f32 %v1338_v39, %v1275_v16  ;;  %v1465_v37 = vadd.f32 %v10519_v41, %v1445_v28 }
 0x14e   :  { %v8926_v2 = vpop.f32.mrf.mxu0  ;;  %v13949_v28 = vmov 0.0   ;;  %v10644_v52 = vadd.f32 %v1259_v19, %v1162_v58  ;;  %v10673_v36 = vadd.f32 %v8917_v26, %v10546_v46 }
 0x14f   :  { %13941 = vst [vmem:[#allocation13_spill] sm:$0xff] %v10601_v8  ;;  %v1463_v40 = vadd.f32 %v10519_v41, %v1443_v17  ;;  %v1446_v34 = vmul.f32 %v10517_v21, %v10601_v8  ;;  %v10612_v43 = vadd.f32 %v10569_v62, %v1399_v47  ;;  %v1404_v10 = vadd.f32 %v8926_v2, %v1280_v13 }
 0x150   :  { %v1351_v3 = vpop.f32.mrf.mxu0  ;;  %v10633_v32 = vmax.f32 %v1465_v37, 0.0  ;;  %v10661_v17 = vadd.f32 %v10553_v57, %v1039_v61 }
 0x151   :  { %13944 = vst [vmem:[#allocation6_spill] sm:$0xff] %v10612_v43  ;;  %v10620_v0 = vmax.f32 %v1463_v40, 0.0  ;;  %v1466_v49 = vadd.f32 %v10519_v41, %v1446_v34  ;;  %v1444_v25 = vmul.f32 %v10517_v21, %v10612_v43  ;;  %v10626_v55 = vadd.f32 %v10569_v62, %v1404_v10  ;;  %v13952_v40 = vld [vmem:[#allocation2_spill] sm:$0xff]  ;;  %v13953_v10 = vld [vmem:[#allocation4_spill] sm:$0xff] }
 0x152   :  { %v1402_v15 = vadd.f32 %v1351_v3, %v1278_v45  ;;  %v10628_v60 = vpop.f32.mrf.mxu0  ;;  %v1555_v39 = vrot.slane %v10633_v32, 7 }
 0x153   :  { %13947 = vst [vmem:[#allocation22_spill] sm:$0xff] %v10626_v55  ;;  %v1464_v27 = vadd.f32 %v10519_v41, %v1444_v25  ;;  %v1449_v63 = vmul.f32 %v10517_v21, %v10626_v55  ;;  %v1645_v35 = vpack.c.bf16 %v10620_v0, %v13949_v28  ;;  %v1553_v1 = vrot.slane %v10620_v0, 7 }
 0x154   :  { %v10639_v51 = vadd.f32 %v10569_v62, %v1402_v15  ;;  %v1354_v16 = vpop.f32.mrf.mxu0  ;;  %v10646_v54 = vmax.f32 %v1466_v49, 0.0  ;;  %v10690_v61 = vsel %vm108_vm2, 0.0, %v1555_v39  ;;  %v10711_v49 = vld [vmem:[%s13806_s5 + $0x48] sm:$0xff]  }
 0x155   :  { %v1403_v5 = vadd.f32 %v1354_v16, %v1279_v20  ;;  %v10648_v14 = vmax.f32 %v1464_v27, 0.0  ;;  %8940 = vmatprep.mubr.msk.bf16.mxu1 %vm1665_vm4, %v1645_v35  ;;  %v10658_v23 = vsel %vm108_vm2, 0.0, %v1553_v1  ;;  %v1469_v7 = vadd.f32 %v10519_v41, %v1449_v63 }
 0x156   :  { %13948 = vst [vmem:[#allocation23_spill] sm:$0xff] %v10639_v51  ;;  %v1447_v59 = vmul.f32 %v10517_v21, %v10639_v51  ;;  %v8930_v38 = vpop.f32.mrf.mxu0  ;;  %v1637_v34 = vpack.c.bf16 %v10658_v23, %v13952_v40  ;;  %v1556_v44 = vrot.slane %v10646_v54, 7  ;;  %v1598_v51 = vrot.slane %v10646_v54, 1 }
 0x157   :  { %v10655_v29 = vadd.f32 %v10569_v62, %v1403_v5  ;;  %v1408_v48 = vadd.f32 %v8930_v38, %v1284_v42  ;;  %v1554_v47 = vrot.slane %v10648_v14, 7  ;;  %v10666_v13 = vpack.c.bf16 %v10633_v32, %v10648_v14 }
 0x158   :  { %v1367_v56 = vpop.f32.mrf.mxu0  ;;  %v1467_v9 = vadd.f32 %v10519_v41, %v1447_v59  ;;  %v10698_v3 = vmax.f32 %v1469_v7, 0.0  ;;  %8960 = vmatprep.mubr.msk.bf16.mxu0 %vm1665_vm4, %v1637_v34  ;;  %v10767_v34 = vld [vmem:[%s13806_s5 + $0x58] sm:$0xff]  }
 0x159   :  { %13950 = vst [vmem:[#allocation7_spill] sm:$0xff] %v10655_v29  ;;  %v1448_v57 = vmul.f32 %v10517_v21, %v10655_v29  ;;  %v10679_v18 = vadd.f32 %v10569_v62, %v1408_v48  ;;  %v10682_v2 = vsel %vm108_vm2, 0.0, %v1554_v47  ;;  %v1406_v37 = vadd.f32 %v1367_v56, %v1282_v30  ;;  %8941 = vmatmul.mubr.msk.bf16.vlgmr.msra.gmra.mxu1 %vm1665_vm4, %v10666_v13  ;;  %v13957_v56 = vld [vmem:[#allocation5_spill] sm:$0xff] }
 0x15a   :  { %v8931_v46 = vpop.f32.mrf.mxu0  ;;  %v10692_v12 = vmax.f32 %v1467_v9, 0.0  ;;  %8977 = vmatpush3.bf16.msra.mxu1 %v13953_v10  ;;  %v10706_v19 = vpack.c.bf16 %v10690_v61, %v10682_v2 }
 0x15b   :  { %13951 = vst [vmem:[#allocation8_spill] sm:$0xff] %v10679_v18  ;;  %v1468_v45 = vadd.f32 %v10519_v41, %v1448_v57  ;;  %v1453_v20 = vmul.f32 %v10517_v21, %v10679_v18  ;;  %v10701_v31 = vadd.f32 %v10569_v62, %v1406_v37  ;;  %v1409_v53 = vadd.f32 %v8931_v46, %v1285_v4  ;;  %v9693_v4 = vld [vmem:[%s13806_s5 + $0x30] sm:$0xff]  }
 0x15c   :  { %v1370_v58 = vpop.f32.mrf.mxu0  ;;  %8978 = vmatprep.subr.bf16.mxu1 %v9691_v24  ;;  %v10718_v30 = vpack.c.bf16 %v10692_v12, %v10646_v54  ;;  %8961 = vmatmul.mubr.msk.bf16.vlgmr.msra.gmra.mxu0 %vm1665_vm4, %v10706_v19  ;;  %v1557_v35 = vrot.slane %v10692_v12, 7 }
 0x15d   :  { %13954 = vst [vmem:[#allocation10_spill] sm:$0xff] %v10701_v31  ;;  %v10713_v25 = vmax.f32 %v1468_v45, 0.0  ;;  %v1473_v15 = vadd.f32 %v10519_v41, %v1453_v20  ;;  %v1407_v42 = vadd.f32 %v1370_v58, %v1283_v22  ;;  %v1451_v27 = vmul.f32 %v10517_v21, %v10701_v31  ;;  %8997 = vmatpush3.bf16.msra.mxu0 %v13957_v56 }
 0x15e   :  { %v10726_v63 = vadd.f32 %v10569_v62, %v1409_v53  ;;  %v8934_v16 = vpop.f32.mrf.mxu0  ;;  %v10732_v22 = vsel %vm108_vm2, 0.0, %v1556_v44  ;;  %8944 = vmatprep.mubr.msk.bf16.mxu1 %vm1665_vm4, %v10718_v30  ;;  %8979 = vmatpush3.bf16.msra.mxu1 %v9691_v24  ;;  %v10749_v47 = vsel %vm108_vm2, 0.0, %v1557_v35 }
 0x15f   :  { %v10734_v5 = vmax.f32 %v1473_v15, 0.0  ;;  %v10737_v1 = vadd.f32 %v10569_v62, %v1407_v42  ;;  %v1412_v26 = vadd.f32 %v8934_v16, %v1288_v11  ;;  %v10743_v59 = vpack.c.bf16 %v10698_v3, %v10713_v25  ;;  %9016 = vmatprep.subr.bf16.mxu1 %v10711_v49  ;;  %v1262_v11 = vpop.f32.mrf.mxu1  ;;  %8998 = vmatprep.subr.bf16.mxu0 %v9693_v4 }
 0x160   :  { %13955 = vst [vmem:[#allocation15_spill] sm:$0xff] %v10726_v63  ;;  %v1471_v38 = vadd.f32 %v10519_v41, %v1451_v27  ;;  %v1454_v39 = vmul.f32 %v10517_v21, %v10726_v63  ;;  %v1383_v48 = vpop.f32.mrf.mxu0  ;;  %v1558_v7 = vrot.slane %v10713_v25, 7  ;;  %v10762_v37 = vpack.c.bf16 %v10749_v47, %v10732_v22 }
 0x161   :  { %13956 = vst [vmem:[#allocation17_spill] sm:$0xff] %v10737_v1  ;;  %v1452_v9 = vmul.f32 %v10517_v21, %v10737_v1  ;;  %v10757_v24 = vadd.f32 %v10569_v62, %v1412_v26  ;;  %v1410_v57 = vadd.f32 %v1383_v48, %v10644_v52  ;;  %8945 = vmatmul.mubr.msk.bf16.gmra.mxu1 %vm1665_vm4, %v10743_v59  ;;  %v1559_v52 = vrot.slane %v10698_v3, 7 }
 0x162   :  { %v10769_v46 = vmax.f32 %v1471_v38, 0.0  ;;  %v1474_v44 = vadd.f32 %v10519_v41, %v1454_v39  ;;  %v8935_v45 = vpop.f32.mrf.mxu0  ;;  %v10776_v20 = vsel %vm108_vm2, 0.0, %v1558_v7  ;;  %8964 = vmatprep.mubr.msk.bf16.mxu0 %vm1665_vm4, %v10762_v37  ;;  %v1287_v42 = vadd.f32 %v1262_v11, %v10661_v17  ;;  %8999 = vmatpush3.bf16.msra.mxu0 %v9693_v4 }
 0x163   :  { %13958 = vst [vmem:[#allocation24_spill] sm:$0xff] %v10757_v24  ;;  %v1472_v10 = vadd.f32 %v10519_v41, %v1452_v9  ;;  %v1457_v53 = vmul.f32 %v10517_v21, %v10757_v24  ;;  %v10782_v58 = vadd.f32 %v10569_v62, %v1410_v57  ;;  %v1413_v15 = vadd.f32 %v8935_v45, %v10673_v36  ;;  %v13961_v45 = vld [vmem:[#allocation27_spill] sm:$0xff] }
 0x164   :  { %v10788_v27 = vmax.f32 %v1474_v44, 0.0  ;;  %v1386_v16 = vpop.f32.mrf.mxu0  ;;  %v1649_v35 = vpack.c.bf16 %v10769_v46, %v13949_v28  ;;  %v1560_v26 = vrot.slane %v10769_v46, 7  ;;  %v10801_v36 = vsel %vm108_vm2, 0.0, %v1559_v52  ;;  %9036 = vmatprep.subr.bf16.mxu0 %v10767_v34  ;;  %v13962_v52 = vld [vmem:[#allocation29_spill] sm:$0xff] }
 0x165   :  { %13959 = vst [vmem:[#allocation12_spill] sm:$0xff] %v10782_v58  ;;  %v10793_v38 = vmax.f32 %v1472_v10, 0.0  ;;  %v1455_v39 = vmul.f32 %v10517_v21, %v10782_v58  ;;  %v10798_v48 = vadd.f32 %v10569_v62, %v1413_v15  ;;  %v1477_v17 = vadd.f32 %v10519_v41, %v1457_v53 }
 0x166   :  { %v1411_v7 = vadd.f32 %v1386_v16, %v1287_v42  ;;  %v10807_v56 = vpack.c.bf16 %v10801_v36, %v10776_v20  ;;  %8948 = vmatprep.mubr.msk.bf16.mxu1 %vm1665_vm4, %v1649_v35  ;;  %v10811_v4 = vsel %vm108_vm2, 0.0, %v1560_v26  ;;  %v1562_v44 = vrot.slane %v10734_v5, 7 }
 0x167   :  { %13960 = vst [vmem:[#allocation14_spill] sm:$0xff] %v10798_v48  ;;  %v1475_v11 = vadd.f32 %v10519_v41, %v1455_v39  ;;  %v1458_v9 = vmul.f32 %v10517_v21, %v10798_v48  ;;  %v1641_v57 = vpack.c.bf16 %v10811_v4, %v13952_v40  ;;  %v1281_v10 = vadd.f32 %v13962_v52, %v13961_v45 }
 0x168   :  { %v10822_v53 = vadd.f32 %v10569_v62, %v1411_v7  ;;  %8965 = vmatmul.mubr.msk.bf16.gmra.mxu0 %vm1665_vm4, %v10807_v56  ;;  %v10828_v15 = vpack.c.bf16 %v10734_v5, %v10793_v38  ;;  %v1561_v42 = vrot.slane %v10793_v38, 7  ;;  %v1563_v26 = vrot.slane %v10788_v27, 7 }
 0x169   :  { %v10831_v16 = vmax.f32 %v1475_v11, 0.0  ;;  %v1478_v35 = vadd.f32 %v10519_v41, %v1458_v9  ;;  %8968 = vmatprep.mubr.msk.bf16.mxu0 %vm1665_vm4, %v1641_v57  ;;  %v1405_v39 = vadd.f32 %v10628_v60, %v1281_v10  ;;  %v1595_v11 = vrot.slane %v10620_v0, 1 }
 0x16a   :  { %13963 = vst [vmem:[#allocation16_spill] sm:$0xff] %v10822_v53  ;;  %v1456_v7 = vmul.f32 %v10517_v21, %v10822_v53  ;;  %8949 = vmatmul.mubr.msk.bf16.gmra.mxu1 %vm1665_vm4, %v10828_v15  ;;  %v10842_v45 = vsel %vm108_vm2, 0.0, %v1561_v42  ;;  %v10845_v52 = vmax.f32 %v1477_v17, 0.0  ;;  %v10848_v9 = vsel %vm108_vm2, 0.0, %v1562_v44 }
 0x16b   :  { %v10852_v57 = vpack.c.bf16 %v10831_v16, %v10788_v27  ;;  %v1564_v60 = vrot.slane %v10831_v16, 7  ;;  %v10858_v53 = vpack.c.bf16 %v10848_v9, %v10842_v45  ;;  %v10863_v17 = vsel %vm108_vm2, 0.0, %v1563_v26 }
 0x16c   :  { %v1476_v10 = vadd.f32 %v10519_v41, %v1456_v7  ;;  %v10875_v7 = vsel %vm154_vm3, %v1595_v11, 0.0  ;;  %v10878_v58 = vadd.f32 %v10569_v62, %v1405_v39  ;;  %v1566_v24 = vrot.slane %v10845_v52, 7  ;;  %v13965_v11 = vld [vmem:[#allocation3_spill] sm:$0xff] }
 0x16d   :  { %8952 = vmatprep.mubr.msk.bf16.mxu1 %vm1665_vm4, %v10852_v57  ;;  %v10866_v44 = vsel %vm108_vm2, 0.0, %v1564_v60  ;;  %v1920_v62 = vpack.c.bf16 %v10875_v7, %v13965_v11  ;;  %v1599_v1 = vrot.slane %v10692_v12, 1  ;;  %v1597_v63 = vrot.slane %v10633_v32, 1 }
 0x16e   :  { %v10868_v42 = vmax.f32 %v1476_v10, 0.0  ;;  %v10872_v48 = vpack.c.bf16 %v10866_v44, %v10863_v17  ;;  %13964 = vst [vmem:[#allocation25_spill] sm:$0xff] %v10878_v58  ;;  %v1596_v10 = vrot.slane %v10648_v14, 1  ;;  %v1450_v31 = vmul.f32 %v10517_v21, %v10878_v58 }
 0x16f   :  { %v10904_v18 = vsel %vm108_vm2, 0.0, %v1566_v24  ;;  %v10915_v55 = vsel %vm154_vm3, %v1599_v1, 0.0  ;;  %v10918_v43 = vsel %vm154_vm3, %v1597_v63, 0.0  ;;  %v2091_v24 = vpack.c.bf16 %v10682_v2, %v10658_v23  ;;  %v9695_v63 = vld [vmem:[%s13806_s5 + $0x40] sm:$0xff]  }
 0x170   :  { %8969 = vmatmul.mubr.msk.bf16.gmra.mxu0 %vm1665_vm4, %v10858_v53  ;;  %v10885_v26 = vpack.c.bf16 %v10845_v52, %v10868_v42  ;;  %v1565_v60 = vrot.slane %v10868_v42, 7  ;;  %v1470_v21 = vadd.f32 %v10519_v41, %v1450_v31  ;;  %v1600_v23 = vrot.slane %v10713_v25, 1 }
 0x171   :  { %8972 = vmatprep.mubr.msk.bf16.mxu0 %vm1665_vm4, %v10872_v48  ;;  %v10941_v2 = vmax.f32 %v1478_v35, 0.0  ;;  %v1601_v1 = vrot.slane %v10698_v3, 1  ;;  %v9698_v35 = vld [vmem:[%s13806_s5 + $0x68] sm:$0xff]   ;;  %v2092_v58 = vpack.c.bf16 %v10732_v22, %v10690_v61  ;;  %v2093_v50 = vpack.c.bf16 %v10776_v20, %v10749_v47 }
 0x172   :  { %8953 = vmatmul.mubr.msk.bf16.gmra.mxu1 %vm1665_vm4, %v10885_v26  ;;  %v10896_v39 = vsel %vm108_vm2, 0.0, %v1565_v60  ;;  %v10912_v60 = vsel %vm154_vm3, %v1596_v10, 0.0  ;;  %v10930_v10 = vsel %vm154_vm3, %v1598_v51, 0.0  ;;  %v1602_v51 = vrot.slane %v10769_v46, 1 }
 0x173   :  { %8980 = vmatprep.mubr.msk.bf16.mxu1 %vm1665_vm4, %v1920_v62  ;;  %v10908_v29 = vpack.c.bf16 %v10904_v18, %v10896_v39  ;;  %v10927_v62 = vpack.c.bf16 %v10918_v43, %v10912_v60  ;;  %v10938_v41 = vpack.c.bf16 %v10915_v55, %v10930_v10  ;;  %v10946_v31 = vmax.f32 %v1470_v21, 0.0 }
 0x174   :  { %v10961_v21 = vsel %vm154_vm3, %v1602_v51, 0.0  ;;  %v10971_v33 = vsel %vm154_vm3, %v1601_v1, 0.0  ;;  %v1603_v47 = vrot.slane %v10793_v38, 1  ;;  %v1606_v20 = vrot.slane %v10831_v16, 1 }
 0x175   :  { %v1924_v22 = vpack.c.bf16 %v10961_v21, %v13965_v11  ;;  %v1605_v51 = vrot.slane %v10788_v27, 1 }
 0x176   :  { %v11000_v8 = vsel %vm154_vm3, %v1606_v20, 0.0  ;;  %v2097_v20 = vpack.c.bf16 %v10896_v39, %v10866_v44  ;;  %v2405_v44 = vpack.c.bf16 %v10912_v60, %v10875_v7  ;;  %v2249_v39 = vpack.c.bf16 %v10646_v54, %v10633_v32  ;;  %v9702_v32 = vld [vmem:[%s13806_s5 + $0x88] sm:$0xff]  }
 0x177   :  { %v1633_v11 = vsel %vm154_vm3, %v1605_v51, 0.0  ;;  %v2080_v51 = vrot.slane %v10941_v2, 7  ;;  %v2406_v54 = vpack.c.bf16 %v10930_v10, %v10918_v43  ;;  %v2085_v7 = vrot.slane %v10946_v31, 1 }
 0x178   :  { %8973 = vmatmul.mubr.msk.bf16.gmra.mxu0 %vm1665_vm4, %v10908_v29  ;;  %v2252_v43 = vpack.c.bf16 %v10793_v38, %v10769_v46  ;;  %v2254_v46 = vpack.c.bf16 %v10868_v42, %v10831_v16 }
 0x179   :  { %9000 = vmatprep.mubr.msk.bf16.mxu0 %vm1665_vm4, %v2091_v24  ;;  %v10956_v24 = vsel %vm154_vm3, %v1600_v23, 0.0  ;;  %v2079_v23 = vrot.slane %v10946_v31, 7  ;;  %v2089_v60 = vsel %vm154_vm3, %v2085_v7, 0.0 }
 0x17a   :  { %8981 = vmatmul.mubr.msk.bf16.vlgmr.msra.gmra.mxu1 %vm1665_vm4, %v10927_v62  ;;  %v10977_v61 = vpack.c.bf16 %v10971_v33, %v10956_v24 }
 0x17b   :  { %8984 = vmatprep.mubr.msk.bf16.mxu1 %vm1665_vm4, %v10938_v41  ;;  %9017 = vmatpush3.bf16.msra.mxu1 %v10711_v49  ;;  %v9697_v49 = vld [vmem:[%s13806_s5 + $0x50] sm:$0xff]  }
 0x17c   :  { %9018 = vmatprep.subr.bf16.mxu1 %v9695_v63 }
 0x17f   :  { %9019 = vmatpush3.bf16.msra.mxu1 %v9695_v63  ;;  %v1604_v63 = vrot.slane %v10734_v5, 1 }
 0x180   :  { %9001 = vmatmul.mubr.msk.bf16.vlgmr.msra.gmra.mxu0 %vm1665_vm4, %v2092_v58  ;;  %9056 = vmatprep.subr.bf16.mxu1 %v9698_v35  ;;  %v9700_v58 = vld [vmem:[%s13806_s5 + $0x78] sm:$0xff]  }
 0x181   :  { %9004 = vmatprep.mubr.msk.bf16.mxu0 %vm1665_vm4, %v2093_v50  ;;  %9037 = vmatpush3.bf16.msra.mxu0 %v10767_v34  ;;  %v10992_v50 = vsel %vm108_vm2, 0.0, %v2079_v23  ;;  %v1631_v34 = vsel %vm154_vm3, %v1603_v47, 0.0  ;;  %v1632_v23 = vsel %vm154_vm3, %v1604_v63, 0.0  ;;  %v2096_v47 = vpack.c.bf16 %v10863_v17, %v10848_v9 }
 0x182   :  { %8985 = vmatmul.mubr.msk.bf16.gmra.mxu1 %vm1665_vm4, %v10977_v61  ;;  %9038 = vmatprep.subr.bf16.mxu0 %v9697_v49  ;;  %v2094_v1 = vpack.c.bf16 %v10992_v50, %v10801_v36  ;;  %v11006_v6 = vpack.c.bf16 %v1632_v23, %v1631_v34  ;;  %v1607_v36 = vrot.slane %v10868_v42, 1  ;;  %v11036_v9 = vsel %vm108_vm2, 0.0, %v2080_v51  ;;  %v9706_v51 = vld [vmem:[%s13806_s5 + $0x98] sm:$0xff]  }
 0x183   :  { %8988 = vmatprep.mubr.msk.bf16.mxu1 %vm1665_vm4, %v1924_v22  ;;  %v2095_v22 = vpack.c.bf16 %v10842_v45, %v10811_v4  ;;  %v1608_v4 = vrot.slane %v10845_v52, 1  ;;  %v2098_v17 = vpack.c.bf16 %v11036_v9, %v10904_v18  ;;  %v9701_v18 = vld [vmem:[%s13806_s5 + $0x70] sm:$0xff]   ;;  %v2409_v10 = vpack.c.bf16 %v1631_v34, %v10961_v21  ;;  %v9705_v21 = vld [vmem:[%s13806_s5 + $0xa0] sm:$0xff]  }
 0x184   :  { %v1635_v45 = vsel %vm154_vm3, %v1607_v36, 0.0  ;;  %v2410_v38 = vpack.c.bf16 %v1633_v11, %v1632_v23 }
 0x185   :  { %9039 = vmatpush3.bf16.msra.mxu0 %v9697_v49  ;;  %v11011_v49 = vpack.c.bf16 %v11000_v8, %v1633_v11  ;;  %v1636_v63 = vsel %vm154_vm3, %v1608_v4, 0.0 }
 0x186   :  { %9076 = vmatprep.subr.bf16.mxu0 %v9700_v58 }
 0x188   :  { %9005 = vmatmul.mubr.msk.bf16.gmra.mxu0 %vm1665_vm4, %v2094_v1  ;;  %v11027_v1 = vpack.c.bf16 %v1636_v63, %v1635_v45 }
 0x189   :  { %9008 = vmatprep.mubr.msk.bf16.mxu0 %vm1665_vm4, %v2095_v22  ;;  %v2248_v22 = vpack.c.bf16 %v10648_v14, %v10620_v0  ;;  %v9699_v0 = vld [vmem:[%s13806_s5 + $0x60] sm:$0xff]   ;;  %v2250_v14 = vpack.c.bf16 %v10713_v25, %v10692_v12  ;;  %v2407_v12 = vpack.c.bf16 %v10956_v24, %v10915_v55  ;;  %v2251_v25 = vpack.c.bf16 %v10946_v31, %v10698_v3 }
 0x18a   :  { %8989 = vmatmul.mubr.msk.bf16.gmra.mxu1 %vm1665_vm4, %v11006_v6  ;;  %v2408_v55 = vpack.c.bf16 %v2089_v60, %v10971_v33  ;;  %v2253_v3 = vpack.c.bf16 %v10788_v27, %v10734_v5  ;;  %v2411_v33 = vpack.c.bf16 %v1635_v45, %v11000_v8  ;;  %v13966_v5 = vpack.c.bf16 %v10941_v2, %v10845_v52  ;;  %v9703_v8 = vld [vmem:[%s13806_s5 + $0x80] sm:$0xff]  }
 0x18b   :  { %8992 = vmatprep.mubr.msk.bf16.mxu1 %vm1665_vm4, %v11011_v49 }
 0x190   :  { %9009 = vmatmul.mubr.msk.bf16.gmra.mxu0 %vm1665_vm4, %v2096_v47 }
 0x191   :  { %9012 = vmatprep.mubr.msk.bf16.mxu0 %vm1665_vm4, %v2097_v20 }
 0x192   :  { %8993 = vmatmul.mubr.msk.bf16.gmra.mxu1 %vm1665_vm4, %v11027_v1 }
 0x193   :  { %9020 = vmatprep.mubr.msk.bf16.mxu1 %vm1665_vm4, %v2248_v22 }
 0x198   :  { %9013 = vmatmul.mubr.msk.bf16.gmra.mxu0 %vm1665_vm4, %v2098_v17 }
 0x199   :  { %9040 = vmatprep.mubr.msk.bf16.mxu0 %vm1665_vm4, %v2405_v44 }
 0x19a   :  { %9021 = vmatmul.mubr.msk.bf16.vlgmr.msra.gmra.mxu1 %vm1665_vm4, %v2249_v39 }
 0x19b   :  { %9024 = vmatprep.mubr.msk.bf16.mxu1 %vm1665_vm4, %v2250_v14  ;;  %9057 = vmatpush3.bf16.msra.mxu1 %v9698_v35  ;;  %v2086_v35 = vrot.slane %v10941_v2, 1 }
 0x19c   :  { %9058 = vmatprep.subr.bf16.mxu1 %v9699_v0 }
 0x19d   :  { %v2090_v27 = vsel %vm154_vm3, %v2086_v35, 0.0 }
 0x19e   :  { %v2412_v16 = vpack.c.bf16 %v2090_v27, %v1636_v63 }
 0x19f   :  { %9059 = vmatpush3.bf16.msra.mxu1 %v9699_v0 }
 0x1a0   :  { %9041 = vmatmul.mubr.msk.bf16.vlgmr.msra.gmra.mxu0 %vm1665_vm4, %v2406_v54  ;;  %9096 = vmatprep.subr.bf16.mxu1 %v9702_v32  ;;  %v11173_v54 = vld [vmem:[%s13806_s5 + $0xb8] sm:$0xff]  }
 0x1a1   :  { %9044 = vmatprep.mubr.msk.bf16.mxu0 %vm1665_vm4, %v2407_v12  ;;  %9077 = vmatpush3.bf16.msra.mxu0 %v9700_v58  ;;  %13968 = vst [vmem:[#allocation18_spill] sm:$0xff] %v11173_v54 }
 0x1a2   :  { %9025 = vmatmul.mubr.msk.bf16.gmra.mxu1 %vm1665_vm4, %v2251_v25  ;;  %9078 = vmatprep.subr.bf16.mxu0 %v9701_v18 }
 0x1a3   :  { %9028 = vmatprep.mubr.msk.bf16.mxu1 %vm1665_vm4, %v2252_v43 }
 0x1a5   :  { %9079 = vmatpush3.bf16.msra.mxu0 %v9701_v18 }
 0x1a8   :  { %9045 = vmatmul.mubr.msk.bf16.gmra.mxu0 %vm1665_vm4, %v2408_v55 }
 0x1a9   :  { %9048 = vmatprep.mubr.msk.bf16.mxu0 %vm1665_vm4, %v2409_v10 }
 0x1aa   :  { %9029 = vmatmul.mubr.msk.bf16.gmra.mxu1 %vm1665_vm4, %v2253_v3 }
 0x1ab   :  { %9032 = vmatprep.mubr.msk.bf16.mxu1 %vm1665_vm4, %v2254_v46 }
 0x1b0   :  { %9049 = vmatmul.mubr.msk.bf16.gmra.mxu0 %vm1665_vm4, %v2410_v38 }
 0x1b1   :  { %9052 = vmatprep.mubr.msk.bf16.mxu0 %vm1665_vm4, %v2411_v33 }
 0x1b2   :  { %9033 = vmatmul.mubr.msk.bf16.gmra.mxu1 %vm1665_vm4, %v13966_v5 }
 0x1b3   :  { %9060 = vmatprep.mubr.msk.bf16.mxu1 %vm1665_vm4, %v10706_v19  ;;  %v2562_v19 = vpack.c.bf16 %v13952_v40, %v10992_v50 }
 0x1b8   :  { %9053 = vmatmul.mubr.msk.bf16.gmra.mxu0 %vm1665_vm4, %v2412_v16 }
 0x1b9   :  { %9080 = vmatprep.mubr.msk.bf16.mxu0 %vm1665_vm4, %v10666_v13  ;;  %v2695_v13 = vpack.c.bf16 %v13949_v28, %v10946_v31 }
 0x1ba   :  { %9061 = vmatmul.mubr.msk.bf16.vlgmr.msra.gmra.mxu1 %vm1665_vm4, %v10762_v37 }
 0x1bb   :  { %9064 = vmatprep.mubr.msk.bf16.mxu1 %vm1665_vm4, %v10807_v56  ;;  %9097 = vmatpush3.bf16.msra.mxu1 %v9702_v32  ;;  %v9704_v56 = vld [vmem:[%s13806_s5 + $0xa8] sm:$0xff]   ;;  %v9707_v32 = vld [vmem:[%s13806_s5 + $0x90] sm:$0xff]  }
 0x1bc   :  { %9098 = vmatprep.subr.bf16.mxu1 %v9703_v8  ;;  %9116 = vmatprep.subr.bf16.mxu0 %v9704_v56 }
 0x1bf   :  { %9099 = vmatpush3.bf16.msra.mxu1 %v9703_v8 }
 0x1c0   :  { %9081 = vmatmul.mubr.msk.bf16.vlgmr.msra.gmra.mxu0 %vm1665_vm4, %v10718_v30  ;;  %v2563_v30 = vpack.c.bf16 %v13952_v40, %v11036_v9  ;;  %9136 = vmatprep.subr.bf16.mxu1 %v9706_v51 }
 0x1c1   :  { %9084 = vmatprep.mubr.msk.bf16.mxu0 %vm1665_vm4, %v10743_v59  ;;  %v2696_v59 = vpack.c.bf16 %v13949_v28, %v10941_v2  ;;  %9117 = vmatpush3.bf16.msra.mxu0 %v9704_v56 }
 0x1c2   :  { %9065 = vmatmul.mubr.msk.bf16.gmra.mxu1 %vm1665_vm4, %v2562_v19  ;;  %9118 = vmatprep.subr.bf16.mxu0 %v9705_v21 }
 0x1c3   :  { %9068 = vmatprep.mubr.msk.bf16.mxu1 %vm1665_vm4, %v10858_v53 }
 0x1c5   :  { %9119 = vmatpush3.bf16.msra.mxu0 %v9705_v21 }
 0x1c6   :  { %9156 = vmatprep.subr.bf16.mxu0 %v11173_v54 }
 0x1c8   :  { %9085 = vmatmul.mubr.msk.bf16.gmra.mxu0 %vm1665_vm4, %v2695_v13 }
 0x1c9   :  { %9088 = vmatprep.mubr.msk.bf16.mxu0 %vm1665_vm4, %v10828_v15 }
 0x1ca   :  { %9069 = vmatmul.mubr.msk.bf16.gmra.mxu1 %vm1665_vm4, %v10872_v48 }
 0x1cb   :  { %9072 = vmatprep.mubr.msk.bf16.mxu1 %vm1665_vm4, %v10908_v29  ;;  %v13967_v29 = vld [vmem:[#allocation3_spill] sm:$0xff] }
 0x1cc   :  { %v2828_v37 = vpack.c.bf16 %v13967_v29, %v2089_v60  ;;  %v2829_v48 = vpack.c.bf16 %v13967_v29, %v2090_v27 }
 0x1d0   :  { %9089 = vmatmul.mubr.msk.bf16.gmra.mxu0 %vm1665_vm4, %v10852_v57 }
 0x1d1   :  { %9092 = vmatprep.mubr.msk.bf16.mxu0 %vm1665_vm4, %v10885_v26 }
 0x1d2   :  { %9073 = vmatmul.mubr.msk.bf16.gmra.mxu1 %vm1665_vm4, %v2563_v30 }
 0x1d3   :  { %9100 = vmatprep.mubr.msk.bf16.mxu1 %vm1665_vm4, %v10927_v62 }
 0x1d8   :  { %9093 = vmatmul.mubr.msk.bf16.gmra.mxu0 %vm1665_vm4, %v2696_v59 }
 0x1da   :  { %9101 = vmatmul.mubr.msk.bf16.vlgmr.msra.gmra.mxu1 %vm1665_vm4, %v10938_v41 }
 0x1db   :  { %9104 = vmatprep.mubr.msk.bf16.mxu1 %vm1665_vm4, %v10977_v61  ;;  %9137 = vmatpush3.bf16.msra.mxu1 %v9706_v51 }
 0x1dc   :  { %9138 = vmatprep.subr.bf16.mxu1 %v9707_v32 }
 0x1df   :  { %9139 = vmatpush3.bf16.msra.mxu1 %v9707_v32 }
 0x1e2   :  { %9105 = vmatmul.mubr.msk.bf16.gmra.mxu1 %vm1665_vm4, %v2828_v37 }
 0x1e3   :  { %9108 = vmatprep.mubr.msk.bf16.mxu1 %vm1665_vm4, %v11006_v6 }
 0x1ea   :  { %9109 = vmatmul.mubr.msk.bf16.gmra.mxu1 %vm1665_vm4, %v11011_v49 }
 0x1eb   :  { %9112 = vmatprep.mubr.msk.bf16.mxu1 %vm1665_vm4, %v11027_v1 }
 0x1f2   :  { %9113 = vmatmul.mubr.msk.bf16.gmra.mxu1 %vm1665_vm4, %v2829_v48 }
 0x219   :  { %v8942_v53 = vpop.f32.mrf.mxu1 }
 0x21b   :  { %v1724_v15 = vpop.f32.mrf.mxu1 }
 0x21c   :  { %v8962_v52 = vpop.f32.mrf.mxu0 }
 0x21d   :  { %v8943_v6 = vpop.f32.mrf.mxu1  ;;  %v1866_v57 = vadd.f32 %v8962_v52, %v8942_v53 }
 0x21e   :  { %v1857_v42 = vpop.f32.mrf.mxu0 }
 0x21f   :  { %v11151_v26 = vpop.f32.mrf.mxu1  ;;  %v1858_v11 = vadd.f32 %v1857_v42, %v1724_v15 }
 0x220   :  { %v8963_v62 = vpop.f32.mrf.mxu0 }
 0x221   :  { %v8946_v41 = vpop.f32.mrf.mxu1  ;;  %v1869_v2 = vadd.f32 %v8963_v62, %v8943_v6 }
 0x222   :  { %v11153_v31 = vpop.f32.mrf.mxu0 }
 0x223   :  { %v1740_v24 = vpop.f32.mrf.mxu1 }
 0x225   :  { %v8947_v61 = vpop.f32.mrf.mxu1 }
 0x227   :  { %v11158_v50 = vpop.f32.mrf.mxu1 }
 0x228   :  { %v8966_v58 = vpop.f32.mrf.mxu0 }
 0x229   :  { %v1882_v34 = vadd.f32 %v8966_v58, %v8946_v41 }
 0x22a   :  { %v1873_v23 = vpop.f32.mrf.mxu0  ;;  %v8950_v49 = vpop.f32.mrf.mxu1 }
 0x22b   :  { %v1874_v36 = vadd.f32 %v1873_v23, %v1740_v24 }
 0x22c   :  { %v8967_v4 = vpop.f32.mrf.mxu0  ;;  %v1756_v45 = vpop.f32.mrf.mxu1 }
 0x22d   :  { %v1885_v47 = vadd.f32 %v8967_v4, %v8947_v61 }
 0x22e   :  { %v11160_v20 = vpop.f32.mrf.mxu0  ;;  %v8951_v63 = vpop.f32.mrf.mxu1 }
 0x230   :  { %v8970_v1 = vpop.f32.mrf.mxu0  ;;  %v11165_v22 = vpop.f32.mrf.mxu1 }
 0x231   :  { %v1898_v9 = vadd.f32 %v8970_v1, %v8950_v49 }
 0x232   :  { %v1889_v17 = vpop.f32.mrf.mxu0  ;;  %v8954_v44 = vpop.f32.mrf.mxu1 }
 0x233   :  { %v1890_v39 = vadd.f32 %v1889_v17, %v1756_v45 }
 0x234   :  { %v8971_v0 = vpop.f32.mrf.mxu0  ;;  %v1772_v14 = vpop.f32.mrf.mxu1 }
 0x235   :  { %v1901_v18 = vadd.f32 %v8971_v0, %v8951_v63 }
 0x236   :  { %v11175_v7 = vpop.f32.mrf.mxu0  ;;  %v8955_v12 = vpop.f32.mrf.mxu1 }
 0x238   :  { %v8974_v25 = vpop.f32.mrf.mxu0  ;;  %v11178_v43 = vpop.f32.mrf.mxu1 }
 0x239   :  { %v1914_v60 = vadd.f32 %v8974_v25, %v8954_v44 }
 0x23a   :  { %v1905_v55 = vpop.f32.mrf.mxu0  ;;  %v8982_v10 = vpop.f32.mrf.mxu1 }
 0x23b   :  { %v1906_v3 = vadd.f32 %v1905_v55, %v1772_v14  ;;  %v11180_v46 = vadd.f32 %v8982_v10, %v1866_v57 }
 0x23c   :  { %v8975_v38 = vpop.f32.mrf.mxu0  ;;  %v1998_v35 = vpop.f32.mrf.mxu1 }
 0x23d   :  { %v1917_v33 = vadd.f32 %v8975_v38, %v8955_v12  ;;  %v11182_v5 = vadd.f32 %v1998_v35, %v1858_v11 }
 0x23e   :  { %v11184_v27 = vpop.f32.mrf.mxu0  ;;  %v8983_v16 = vpop.f32.mrf.mxu1 }
 0x23f   :  { %v11186_v8 = vadd.f32 %v8983_v16, %v1869_v2  ;;  %v11207_v2 = vld [vmem:[%s13806_s5 + $0xc8] sm:$0xff]  }
 0x240   :  { %v11188_v19 = vpop.f32.mrf.mxu0  ;;  %v11190_v13 = vpop.f32.mrf.mxu1  ;;  %13969 = vst [vmem:[#allocation20_spill] sm:$0xff] %v11207_v2  ;;  %9176 = vmatprep.subr.bf16.mxu1 %v11207_v2 }
 0x242   :  { %v11192_v30 = vpop.f32.mrf.mxu0  ;;  %v8986_v59 = vpop.f32.mrf.mxu1 }
 0x243   :  { %v2067_v37 = vadd.f32 %v8986_v59, %v1882_v34 }
 0x244   :  { %v11194_v48 = vpop.f32.mrf.mxu0  ;;  %v2014_v56 = vpop.f32.mrf.mxu1 }
 0x245   :  { %v11196_v53 = vadd.f32 %v2014_v56, %v1874_v36 }
 0x246   :  { %v11198_v15 = vpop.f32.mrf.mxu0  ;;  %v8987_v52 = vpop.f32.mrf.mxu1 }
 0x247   :  { %v2068_v6 = vadd.f32 %v8987_v52, %v1885_v47 }
 0x248   :  { %v9006_v57 = vpop.f32.mrf.mxu0  ;;  %v11200_v42 = vpop.f32.mrf.mxu1 }
 0x249   :  { %v2238_v11 = vadd.f32 %v9006_v57, %v2067_v37 }
 0x24a   :  { %v11202_v62 = vpop.f32.mrf.mxu0  ;;  %v8990_v41 = vpop.f32.mrf.mxu1 }
 0x24b   :  { %v2071_v24 = vadd.f32 %v8990_v41, %v1898_v9 }
 0x24c   :  { %v9007_v21 = vpop.f32.mrf.mxu0  ;;  %v2030_v61 = vpop.f32.mrf.mxu1 }
 0x24d   :  { %v2239_v58 = vadd.f32 %v9007_v21, %v2068_v6  ;;  %v11210_v34 = vadd.f32 %v2030_v61, %v1890_v39 }
 0x24e   :  { %v11212_v23 = vpop.f32.mrf.mxu0  ;;  %v8991_v49 = vpop.f32.mrf.mxu1 }
 0x24f   :  { %v11214_v36 = vadd.f32 %v8991_v49, %v1901_v18 }
 0x250   :  { %v9010_v4 = vpop.f32.mrf.mxu0  ;;  %v11216_v45 = vpop.f32.mrf.mxu1 }
 0x251   :  { %v2242_v47 = vadd.f32 %v9010_v4, %v2071_v24 }
 0x252   :  { %v11218_v63 = vpop.f32.mrf.mxu0  ;;  %v8994_v51 = vpop.f32.mrf.mxu1 }
 0x253   :  { %v2075_v1 = vadd.f32 %v8994_v51, %v1914_v60 }
 0x254   :  { %v11220_v9 = vpop.f32.mrf.mxu0  ;;  %v2046_v17 = vpop.f32.mrf.mxu1 }
 0x255   :  { %v11222_v44 = vadd.f32 %v2046_v17, %v1906_v3 }
 0x256   :  { %v11224_v39 = vpop.f32.mrf.mxu0  ;;  %v8995_v0 = vpop.f32.mrf.mxu1 }
 0x257   :  { %v2076_v14 = vadd.f32 %v8995_v0, %v1917_v33 }
 0x258   :  { %v9014_v32 = vpop.f32.mrf.mxu0  ;;  %v11226_v18 = vpop.f32.mrf.mxu1 }
 0x259   :  { %v2246_v12 = vadd.f32 %v9014_v32, %v2075_v1 }
 0x25a   :  { %v11228_v25 = vpop.f32.mrf.mxu0  ;;  %v11230_v55 = vpop.f32.mrf.mxu1 }
 0x25c   :  { %v9015_v10 = vpop.f32.mrf.mxu0  ;;  %v11232_v38 = vpop.f32.mrf.mxu1 }
 0x25d   :  { %v2247_v60 = vadd.f32 %v9015_v10, %v2076_v14 }
 0x25e   :  { %v11234_v35 = vpop.f32.mrf.mxu0  ;;  %v11236_v3 = vpop.f32.mrf.mxu1 }
 0x260   :  { %v11238_v16 = vpop.f32.mrf.mxu0  ;;  %v11240_v59 = vpop.f32.mrf.mxu1 }
 0x262   :  { %v11242_v33 = vpop.f32.mrf.mxu0  ;;  %v9026_v37 = vpop.f32.mrf.mxu1 }
 0x263   :  { %v11244_v56 = vadd.f32 %v9026_v37, %v2238_v11 }
 0x264   :  { %v11246_v52 = vpop.f32.mrf.mxu0  ;;  %v11248_v6 = vpop.f32.mrf.mxu1 }
 0x266   :  { %v11250_v57 = vpop.f32.mrf.mxu0  ;;  %v9027_v41 = vpop.f32.mrf.mxu1 }
 0x267   :  { %v2396_v24 = vadd.f32 %v9027_v41, %v2239_v58 }
 0x268   :  { %v11252_v21 = vpop.f32.mrf.mxu0  ;;  %v11254_v61 = vpop.f32.mrf.mxu1 }
 0x26a   :  { %v11256_v49 = vpop.f32.mrf.mxu0  ;;  %v9030_v4 = vpop.f32.mrf.mxu1 }
 0x26b   :  { %v11258_v51 = vadd.f32 %v9030_v4, %v2242_v47 }
 0x26c   :  { %v9047_v1 = vpop.f32.mrf.mxu0  ;;  %v11260_v11 = vpop.f32.mrf.mxu1 }
 0x26d   :  { %13970 = vst [vmem:[#allocation26_spill] sm:$0xff] %v11258_v51  ;;  %v2553_v17 = vadd.f32 %v9047_v1, %v2396_v24 }
 0x26e   :  { %v11262_v0 = vpop.f32.mrf.mxu0  ;;  %v11264_v14 = vpop.f32.mrf.mxu1 }
 0x26f   :  { %13971 = vst [vmem:[#allocation19_spill] sm:$0xff] %v11262_v0 }
 0x270   :  { %v11266_v32 = vpop.f32.mrf.mxu0  ;;  %v11268_v58 = vpop.f32.mrf.mxu1 }
 0x271   :  { %13972 = vst [vmem:[#allocation30_spill] sm:$0xff] %v11266_v32  ;;  %13973 = vst [vmem:[#allocation32_spill] sm:$0xff] %v11268_v58 }
 0x272   :  { %v11270_v10 = vpop.f32.mrf.mxu0  ;;  %v9034_v37 = vpop.f32.mrf.mxu1 }
 0x273   :  { %13974 = vst [vmem:[#allocation21_spill] sm:$0xff] %v11270_v10  ;;  %v11272_v41 = vadd.f32 %v9034_v37, %v2246_v12 }
 0x274   :  { %v11274_v29 = vpop.f32.mrf.mxu0  ;;  %v11276_v47 = vpop.f32.mrf.mxu1 }
 0x275   :  { %13975 = vst [vmem:[#allocation28_spill] sm:$0xff] %v11272_v41  ;;  %13976 = vst [vmem:[#allocation4_spill] sm:$0xff] %v11274_v29 }
 0x276   :  { %13977 = vst [vmem:[#allocation5_spill] sm:$0xff] %v11276_v47  ;;  %v11278_v4 = vpop.f32.mrf.mxu0  ;;  %v9035_v24 = vpop.f32.mrf.mxu1 }
 0x277   :  { %13978 = vst [vmem:[#allocation27_spill] sm:$0xff] %v11278_v4  ;;  %v2404_v1 = vadd.f32 %v9035_v24, %v2247_v60 }
 0x278   :  { %v11280_v2 = vpop.f32.mrf.mxu0  ;;  %v11282_v54 = vpop.f32.mrf.mxu1 }
 0x279   :  { %13979 = vst [vmem:[#allocation29_spill] sm:$0xff] %v11280_v2  ;;  %13980 = vst [vmem:[#allocation33_spill] sm:$0xff] %v11282_v54 }
 0x27a   :  { %v11284_v40 = vpop.f32.mrf.mxu0  ;;  %v9062_v28 = vpop.f32.mrf.mxu1 }
 0x27b   :  { %13981 = vst [vmem:[#allocation34_spill] sm:$0xff] %v11284_v40 }
 0x27c   :  { %v9055_v58 = vpop.f32.mrf.mxu0  ;;  %v2616_v10 = vpop.f32.mrf.mxu1 }
 0x27d   :  { %v2561_v32 = vadd.f32 %v9055_v58, %v2404_v1 }
 0x27e   :  { %v11286_v12 = vpop.f32.mrf.mxu0  ;;  %v9063_v37 = vpop.f32.mrf.mxu1 }
 0x27f   :  { %13982 = vst [vmem:[#allocation35_spill] sm:$0xff] %v11286_v12 }
 0x280   :  { %v9082_v41 = vpop.f32.mrf.mxu0  ;;  %v11288_v29 = vpop.f32.mrf.mxu1 }
 0x282   :  { %v11290_v47 = vpop.f32.mrf.mxu0  ;;  %v11292_v4 = vpop.f32.mrf.mxu1 }
 0x283   :  { %13983 = vst [vmem:[#allocation36_spill] sm:$0xff] %v11292_v4  ;;  %v1861_v4 = vadd.f32 %v11153_v31, %v11151_v26  ;;  %v2235_v26 = vadd.f32 %v11194_v48, %v11186_v8  ;;  %v1909_v8 = vadd.f32 %v11184_v27, %v11178_v43 }
 0x284   :  { %v11294_v60 = vpop.f32.mrf.mxu0  ;;  %v11296_v24 = vpop.f32.mrf.mxu1 }
 0x285   :  { %13984 = vst [vmem:[#allocation37_spill] sm:$0xff] %v11296_v24  ;;  %v2234_v24 = vadd.f32 %v11188_v19, %v11180_v46  ;;  %v13990_v46 = vld [vmem:[#allocation31_spill] sm:$0xff]  ;;  %v2074_v43 = vadd.f32 %v11226_v18, %v1909_v8 }
 0x286   :  { %v11298_v2 = vpop.f32.mrf.mxu0  ;;  %v9067_v40 = vpop.f32.mrf.mxu1  ;;  %v2963_v19 = vsub.s32 1, %v13990_v46 }
 0x287   :  { %13985 = vst [vmem:[#allocation38_spill] sm:$0xff] %v11298_v2  ;;  %v11300_v54 = vadd.f32 %v9067_v40, %v2553_v17  ;;  %v2232_v40 = vadd.f32 %v11192_v30, %v11182_v5  ;;  %v2062_v17 = vadd.f32 %v11190_v13, %v1861_v4  ;;  %v2392_v4 = vadd.f32 %v11236_v3, %v2235_v26 }
 0x288   :  { %v11302_v58 = vpop.f32.mrf.mxu0  ;;  %v11304_v1 = vpop.f32.mrf.mxu1  ;;  %v2236_v3 = vadd.f32 %v11202_v62, %v11196_v53  ;;  %v2243_v53 = vadd.f32 %v11220_v9, %v11214_v36  ;;  %v2244_v9 = vadd.f32 %v11228_v25, %v11222_v44  ;;  %v13993_v44 = vld [vmem:[#allocation30_spill] sm:$0xff] }
 0x289   :  { %13986 = vst [vmem:[#allocation39_spill] sm:$0xff] %v11300_v54  ;;  %13987 = vst [vmem:[#allocation40_spill] sm:$0xff] %v11302_v58  ;;  %v2391_v54 = vadd.f32 %v11230_v55, %v2234_v24  ;;  %v2389_v31 = vadd.f32 %v11232_v38, %v2232_v40  ;;  %v2233_v13 = vadd.f32 %v11198_v15, %v2062_v17 }
 0x28a   :  { %v11306_v12 = vpop.f32.mrf.mxu1  ;;  %v11308_v51 = vpop.f32.mrf.mxu0  ;;  %v2393_v62 = vadd.f32 %v11248_v6, %v2236_v3  ;;  %v2245_v6 = vadd.f32 %v11234_v35, %v2074_v43  ;;  %v2400_v17 = vadd.f32 %v11264_v14, %v2243_v53  ;;  %v13994_v35 = vld [vmem:[#allocation32_spill] sm:$0xff] }
 0x28b   :  { %13988 = vst [vmem:[#allocation41_spill] sm:$0xff] %v11308_v51  ;;  %v2548_v55 = vadd.f32 %v11238_v16, %v2391_v54  ;;  %v2390_v38 = vadd.f32 %v11240_v59, %v2233_v13  ;;  %v9760_v54 = vld [vmem:[%s13807_s3] sm:$0xf]  ;;  %v2240_v16 = vadd.f32 %v11218_v63, %v11210_v34  ;;  %v14000_v3 = vld [vmem:[#allocation4_spill] sm:$0xff] }
 0x28c   :  { %v11310_v0 = vpop.f32.mrf.mxu1  ;;  %v11322_v58 = vpop.f32.mrf.mxu0  ;;  %v11351_v15 = vrot.slane %v9760_v54, %v2963_v19  ;;  %v9761_v34 = vld [vmem:[%s13808_s4] sm:$0xf]  ;;  %v14003_v53 = vld [vmem:[#allocation28_spill] sm:$0xff] }
 0x28d   :  { %13989 = vst [vmem:[#allocation42_spill] sm:$0xff] %v11310_v0  ;;  %v1877_v0 = vadd.f32 %v11160_v20, %v11158_v50  ;;  %v1893_v20 = vadd.f32 %v11175_v7, %v11165_v22  ;;  %v11374_v63 = vrot.slane %v9761_v34, %v2963_v19  ;;  %v2547_v18 = vadd.f32 %v11250_v57, %v2390_v38  ;;  %v13992_v19 = vld [vmem:[#allocation26_spill] sm:$0xff]  ;;  %v13999_v38 = vld [vmem:[#allocation37_spill] sm:$0xff] }
 0x28e   :  { %v11316_v2 = vpop.f32.mrf.mxu1  ;;  %v11338_v50 = vpop.f32.mrf.mxu0  ;;  %v2556_v25 = vadd.f32 %v13993_v44, %v13992_v19 }
 0x28f   :  { %v2066_v5 = vadd.f32 %v11200_v42, %v1877_v0  ;;  %v2546_v42 = vadd.f32 %v11242_v33, %v2389_v31  ;;  %v2681_v0 = vadd.f32 %v9062_v28, %v2548_v55  ;;  %v2070_v7 = vadd.f32 %v11216_v45, %v1893_v20  ;;  %v13997_v20 = vld [vmem:[#allocation33_spill] sm:$0xff] }
 0x290   :  { %v11326_v51 = vpop.f32.mrf.mxu1  ;;  %v2549_v28 = vadd.f32 %v11246_v52, %v2392_v4  ;;  %v11361_v33 = vpop.f32.mrf.mxu0  ;;  %v2397_v52 = vadd.f32 %v11260_v11, %v2240_v16  ;;  %v2680_v57 = vadd.f32 %v11288_v29, %v2547_v18  ;;  %v13996_v29 = vld [vmem:[#allocation5_spill] sm:$0xff]  ;;  %v2402_v8 = vadd.f32 %v13997_v20, %v2245_v6  ;;  %v14005_v6 = vld [vmem:[#allocation34_spill] sm:$0xff] }
 0x291   :  { %v2237_v22 = vadd.f32 %v11212_v23, %v2066_v5  ;;  %v2679_v59 = vadd.f32 %v2616_v10, %v2546_v42  ;;  %v2241_v36 = vadd.f32 %v11224_v39, %v2070_v7  ;;  %v13991_v39 = vld [vmem:[#allocation19_spill] sm:$0xff]  ;;  %v2401_v4 = vadd.f32 %v13996_v29, %v2244_v9  ;;  %v14001_v7 = vld [vmem:[#allocation38_spill] sm:$0xff] }
 0x292   :  { %v11333_v30 = vpop.f32.mrf.mxu1  ;;  %v2682_v10 = vadd.f32 %v9063_v37, %v2549_v28  ;;  %v2781_v11 = vpop.f32.mrf.mxu0  ;;  %v2550_v37 = vadd.f32 %v11256_v49, %v2393_v62  ;;  %v13998_v49 = vld [vmem:[#allocation36_spill] sm:$0xff]  ;;  %v2813_v43 = vadd.f32 %v14001_v7, %v2680_v57  ;;  %v14002_v28 = vld [vmem:[#allocation27_spill] sm:$0xff]  ;;  %v14004_v62 = vld [vmem:[#allocation29_spill] sm:$0xff] }
 0x293   :  { %v2394_v23 = vadd.f32 %v11254_v61, %v2237_v22  ;;  %v2552_v61 = vadd.f32 %v11252_v21, %v11244_v56  ;;  %v2812_v26 = vadd.f32 %v11290_v47, %v2679_v59  ;;  %v2398_v5 = vadd.f32 %v13994_v35, %v2241_v36  ;;  %v13995_v56 = vld [vmem:[#allocation21_spill] sm:$0xff] }
 0x294   :  { %v11344_v48 = vpop.f32.mrf.mxu1  ;;  %v2554_v21 = vadd.f32 %v13995_v56, %v2397_v52  ;;  %v2815_v14 = vadd.f32 %v11294_v60, %v2682_v10  ;;  %v2557_v22 = vadd.f32 %v14000_v3, %v2400_v17  ;;  %v14010_v19 = vld [vmem:[#allocation42_spill] sm:$0xff] }
 0x295   :  { %v2551_v31 = vadd.f32 %v13991_v39, %v2394_v23  ;;  %v2685_v42 = vadd.f32 %v13998_v49, %v2552_v61  ;;  %v2555_v59 = vadd.f32 %v14002_v28, %v2398_v5  ;;  %v2560_v23 = vadd.f32 %v14004_v62, %v14003_v53  ;;  %v14009_v39 = vld [vmem:[#allocation39_spill] sm:$0xff]  ;;  %v14012_v28 = vld [vmem:[#allocation2_spill] sm:$0xff] }
 0x296   :  { %v9075_v27 = vpop.f32.mrf.mxu1  ;;  %v2558_v61 = vadd.f32 %v14005_v6, %v2401_v4  ;;  %v2690_v29 = vadd.f32 %v11316_v2, %v2557_v22  ;;  %v14011_v49 = vmov 0.0  }
 0x297   :  { %v11363_v24 = vadd.f32 %v9075_v27, %v2561_v32  ;;  %v2814_v32 = vadd.f32 %v9082_v41, %v2681_v0  ;;  %v2683_v0 = vadd.f32 %v13999_v38, %v2550_v37  ;;  %v9091_v27 = vpop.f32.mrf.mxu0  ;;  %v2684_v34 = vadd.f32 %v11304_v1, %v2551_v31 }
 0x298   :  { %v11369_v45 = vpop.f32.mrf.mxu1  ;;  %v2819_v31 = vadd.f32 %v11322_v58, %v14009_v39  ;;  %v2693_v3 = vadd.f32 %v11333_v30, %v2560_v23  ;;  %v2823_v53 = vadd.f32 %v9091_v27, %v2690_v29  ;;  %v2691_v30 = vadd.f32 %v11344_v48, %v2558_v61  ;;  %v9711_v39 = vld [vmem:[%s13806_s5 + $0xc0] sm:$0xff]  }
 0x299   :  { %v2784_v44 = vpop.f32.mrf.mxu0  ;;  %v2817_v5 = vadd.f32 %v11338_v50, %v2684_v34 }
 0x29a   :  { %v9102_v40 = vpop.f32.mrf.mxu1 }
 0x29b   :  { %v2947_v41 = vadd.f32 %v9102_v40, %v2814_v32  ;;  %v2689_v32 = vadd.f32 %v11306_v12, %v2556_v25  ;;  %v14006_v40 = vld [vmem:[#allocation35_spill] sm:$0xff]  ;;  %v2687_v12 = vadd.f32 %v14010_v19, %v2554_v21 }
 0x29c   :  { %v2882_v13 = vpop.f32.mrf.mxu1  ;;  %v11412_v17 = vadd.f32 %v14006_v40, %v2402_v8 }
 0x29d   :  { %v2967_v47 = vmul.f32 %v11351_v15, %v2947_v41  ;;  %v2945_v55 = vadd.f32 %v2882_v13, %v2812_v26  ;;  %v14007_v26 = vld [vmem:[#allocation40_spill] sm:$0xff]  ;;  %v14008_v41 = vld [vmem:[#allocation41_spill] sm:$0xff]  ;;  %v2820_v38 = vadd.f32 %v2781_v11, %v2687_v12 }
 0x29e   :  { %v9103_v54 = vpop.f32.mrf.mxu1  ;;  %v2818_v57 = vadd.f32 %v14007_v26, %v2685_v42  ;;  %v2816_v37 = vadd.f32 %v14008_v41, %v2683_v0  ;;  %v2688_v0 = vadd.f32 %v11326_v51, %v2555_v59 }
 0x29f   :  { %v2965_v16 = vmul.f32 %v11351_v15, %v2945_v55  ;;  %v2948_v60 = vadd.f32 %v9103_v54, %v2815_v14  ;;  %v2987_v18 = vadd.f32 %v11374_v63, %v2967_v47  ;;  %v2822_v55 = vadd.f32 %v11361_v33, %v2689_v32  ;;  %v9094_v54 = vpop.f32.mrf.mxu0 }
 0x2a0   :  { %v2885_v52 = vpop.f32.mrf.mxu1  ;;  %v2826_v48 = vadd.f32 %v9094_v54, %v2693_v3  ;;  %v11518_v54 = vld [vmem:[%s13806_s5 + $0xe8] sm:$0xff]  }
 0x2a1   :  { %v2985_v10 = vadd.f32 %v11374_v63, %v2965_v16  ;;  %v2968_v36 = vmul.f32 %v11351_v15, %v2948_v60  ;;  %v2946_v9 = vadd.f32 %v2885_v52, %v2813_v43  ;;  %v11423_v13 = vmax.f32 %v2987_v18, 0.0  ;;  %v9709_v18 = vld [vmem:[%s13806_s5 + $0xb0] sm:$0xff]   ;;  %v2797_v32 = vpop.f32.mrf.mxu0 }
 0x2a2   :  { %v9106_v1 = vpop.f32.mrf.mxu1  ;;  %v2821_v52 = vadd.f32 %v2784_v44, %v2688_v0 }
 0x2a3   :  { %v11419_v25 = vmax.f32 %v2985_v10, 0.0  ;;  %v2988_v35 = vadd.f32 %v11374_v63, %v2968_v36  ;;  %v2966_v56 = vmul.f32 %v11351_v15, %v2946_v9  ;;  %v2951_v14 = vadd.f32 %v9106_v1, %v2818_v57  ;;  %v14013_v1 = vld [vmem:[#allocation18_spill] sm:$0xff] }
 0x2a4   :  { %v2898_v47 = vpop.f32.mrf.mxu1  ;;  %v3078_v22 = vrot.slane %v11423_v13, 7 }
 0x2a5   :  { %v11428_v58 = vmax.f32 %v2988_v35, 0.0  ;;  %v2949_v21 = vadd.f32 %v2898_v47, %v2816_v37  ;;  %v2986_v4 = vadd.f32 %v11374_v63, %v2966_v56  ;;  %v2971_v20 = vmul.f32 %v11351_v15, %v2951_v14  ;;  %v9095_v47 = vpop.f32.mrf.mxu0 }
 0x2a6   :  { %v9107_v8 = vpop.f32.mrf.mxu1  ;;  %v3168_v50 = vpack.c.bf16 %v11419_v25, %v14011_v49  ;;  %v3076_v42 = vrot.slane %v11419_v25, 7  ;;  %v11465_v9 = vsel %vm108_vm2, 0.0, %v3078_v22  ;;  %v2824_v56 = vadd.f32 %v2797_v32, %v2691_v30 }
 0x2a7   :  { %v2969_v33 = vmul.f32 %v11351_v15, %v2949_v21  ;;  %v11441_v7 = vmax.f32 %v2986_v4, 0.0  ;;  %v2991_v51 = vadd.f32 %v11374_v63, %v2971_v20  ;;  %v3079_v40 = vrot.slane %v11428_v58, 7 }
 0x2a8   :  { %9120 = vmatprep.mubr.msk.bf16.mxu0 %vm1665_vm4, %v3168_v50  ;;  %v2901_v43 = vpop.f32.mrf.mxu1  ;;  %v11445_v16 = vsel %vm108_vm2, 0.0, %v3076_v42  ;;  %v2952_v41 = vadd.f32 %v9107_v8, %v2819_v31  ;;  %v11493_v31 = vld [vmem:[%s13806_s5 + $0xd8] sm:$0xff]   ;;  %v2692_v14 = vadd.f32 %v11369_v45, %v11412_v17  ;;  %v14014_v17 = vld [vmem:[#allocation20_spill] sm:$0xff] }
 0x2a9   :  { %v2989_v11 = vadd.f32 %v11374_v63, %v2969_v33  ;;  %v2950_v60 = vadd.f32 %v2901_v43, %v2817_v5  ;;  %v3160_v59 = vpack.c.bf16 %v11445_v16, %v14012_v28  ;;  %v3077_v62 = vrot.slane %v11441_v7, 7 }
 0x2aa   :  { %v11455_v23 = vpack.c.bf16 %v11423_v13, %v11441_v7  ;;  %v9110_v34 = vpop.f32.mrf.mxu1  ;;  %v11477_v57 = vmax.f32 %v2991_v51, 0.0  ;;  %v11506_v8 = vsel %vm108_vm2, 0.0, %v3079_v40  ;;  %v2972_v50 = vmul.f32 %v11351_v15, %v2952_v41 }
 0x2ab   :  { %v11460_v10 = vmax.f32 %v2989_v11, 0.0  ;;  %v2970_v36 = vmul.f32 %v11351_v15, %v2950_v60  ;;  %v2955_v27 = vadd.f32 %v9110_v34, %v2822_v55  ;;  %9140 = vmatprep.mubr.msk.bf16.mxu1 %vm1665_vm4, %v3160_v59  ;;  %v11468_v6 = vsel %vm108_vm2, 0.0, %v3077_v62  ;;  %v2800_v11 = vpop.f32.mrf.mxu0 }
 0x2ac   :  { %9121 = vmatmul.mubr.msk.bf16.vlgmr.msra.gmra.mxu0 %vm1665_vm4, %v11455_v23  ;;  %v2914_v61 = vpop.f32.mrf.mxu1  ;;  %v11475_v26 = vpack.c.bf16 %v11465_v9, %v11468_v6  ;;  %v3082_v33 = vrot.slane %v11477_v57, 7  ;;  %v2827_v62 = vadd.f32 %v9095_v47, %v11363_v24  ;;  %v2992_v40 = vadd.f32 %v11374_v63, %v2972_v50 }
 0x2ad   :  { %v2990_v37 = vadd.f32 %v11374_v63, %v2970_v36  ;;  %9157 = vmatpush3.bf16.msra.mxu0 %v14013_v1  ;;  %v2975_v19 = vmul.f32 %v11351_v15, %v2955_v27  ;;  %v2953_v12 = vadd.f32 %v2914_v61, %v2820_v38  ;;  %v11487_v35 = vpack.c.bf16 %v11460_v10, %v11428_v58 }
 0x2ae   :  { %v9111_v44 = vpop.f32.mrf.mxu1  ;;  %v3080_v5 = vrot.slane %v11460_v10, 7  ;;  %9158 = vmatprep.subr.bf16.mxu0 %v9709_v18  ;;  %9141 = vmatmul.mubr.msk.bf16.vlgmr.msra.gmra.mxu1 %vm1665_vm4, %v11475_v26  ;;  %v2825_v61 = vadd.f32 %v2800_v11, %v2692_v14 }
 0x2af   :  { %v11497_v55 = vmax.f32 %v2990_v37, 0.0  ;;  %v2956_v29 = vadd.f32 %v9111_v44, %v2823_v53  ;;  %v2995_v21 = vadd.f32 %v11374_v63, %v2975_v19  ;;  %v2973_v4 = vmul.f32 %v11351_v15, %v2953_v12  ;;  %9124 = vmatprep.mubr.msk.bf16.mxu0 %vm1665_vm4, %v11487_v35  ;;  %9177 = vmatpush3.bf16.msra.mxu1 %v14014_v17 }
 0x2b0   :  { %v2917_v20 = vpop.f32.mrf.mxu1  ;;  %v11509_v45 = vsel %vm108_vm2, 0.0, %v3080_v5  ;;  %9178 = vmatprep.subr.bf16.mxu1 %v9711_v39  ;;  %v11560_v44 = vsel %vm108_vm2, 0.0, %v3082_v33 }
 0x2b1   :  { %v3081_v42 = vrot.slane %v11497_v55, 7  ;;  %v2976_v38 = vmul.f32 %v11351_v15, %v2956_v29  ;;  %v2954_v0 = vadd.f32 %v2917_v20, %v2821_v52  ;;  %9159 = vmatpush3.bf16.msra.mxu0 %v9709_v18  ;;  %v2993_v3 = vadd.f32 %v11374_v63, %v2973_v4 }
 0x2b2   :  { %v9114_v22 = vpop.f32.mrf.mxu1  ;;  %v11524_v43 = vpack.c.bf16 %v11509_v45, %v11506_v8  ;;  %9196 = vmatprep.subr.bf16.mxu0 %v11493_v31  ;;  %v11533_v30 = vpack.c.bf16 %v11477_v57, %v11497_v55  ;;  %v11536_v34 = vmax.f32 %v2995_v21, 0.0 }
 0x2b3   :  { %v2996_v60 = vadd.f32 %v11374_v63, %v2976_v38  ;;  %v2974_v59 = vmul.f32 %v11351_v15, %v2954_v0  ;;  %v2959_v53 = vadd.f32 %v9114_v22, %v2826_v48  ;;  %v11538_v18 = vmax.f32 %v2993_v3, 0.0  ;;  %9179 = vmatpush3.bf16.msra.mxu1 %v9711_v39 }
 0x2b4   :  { %9144 = vmatprep.mubr.msk.bf16.mxu1 %vm1665_vm4, %v11524_v43  ;;  %v2930_v52 = vpop.f32.mrf.mxu1  ;;  %v11543_v32 = vsel %vm108_vm2, 0.0, %v3081_v42  ;;  %9125 = vmatmul.mubr.msk.bf16.gmra.mxu0 %vm1665_vm4, %v11533_v30  ;;  %v3085_v5 = vrot.slane %v11536_v34, 7  ;;  %v11584_v0 = vmax.f32 %v2992_v40, 0.0  ;;  %v3118_v22 = vrot.slane %v11419_v25, 1 }
 0x2b5   :  { %v11545_v36 = vmax.f32 %v2996_v60, 0.0  ;;  %v2994_v27 = vadd.f32 %v11374_v63, %v2974_v59  ;;  %v2979_v48 = vmul.f32 %v11351_v15, %v2959_v53  ;;  %v2957_v24 = vadd.f32 %v2930_v52, %v2824_v56  ;;  %9216 = vmatprep.subr.bf16.mxu1 %v11518_v54 }
 0x2b6   :  { %v9115_v41 = vpop.f32.mrf.mxu1  ;;  %v3172_v37 = vpack.c.bf16 %v11538_v18, %v14011_v49  ;;  %v3083_v1 = vrot.slane %v11538_v18, 7  ;;  %v11565_v56 = vpack.c.bf16 %v11560_v44, %v11543_v32  ;;  %v11596_v59 = vsel %vm108_vm2, 0.0, %v3085_v5 }
 0x2b7   :  { %v11556_v39 = vmax.f32 %v2994_v27, 0.0  ;;  %v2977_v19 = vmul.f32 %v11351_v15, %v2957_v24  ;;  %v2960_v12 = vadd.f32 %v9115_v41, %v2827_v62  ;;  %v3086_v29 = vrot.slane %v11545_v36, 7 }
 0x2b8   :  { %9128 = vmatprep.mubr.msk.bf16.mxu0 %vm1665_vm4, %v3172_v37  ;;  %v2933_v14 = vpop.f32.mrf.mxu1  ;;  %v11569_v47 = vsel %vm108_vm2, 0.0, %v3083_v1  ;;  %v2999_v4 = vadd.f32 %v11374_v63, %v2979_v48  ;;  %9145 = vmatmul.mubr.msk.bf16.gmra.mxu1 %vm1665_vm4, %v11565_v56  ;;  %v3120_v48 = vrot.slane %v11423_v13, 1  ;;  %v3601_v40 = vrot.slane %v11584_v0, 7 }
 0x2b9   :  { %v3084_v21 = vrot.slane %v11556_v39, 7  ;;  %v2997_v20 = vadd.f32 %v11374_v63, %v2977_v19  ;;  %v2980_v17 = vmul.f32 %v11351_v15, %v2960_v12  ;;  %v2958_v50 = vadd.f32 %v2933_v14, %v2825_v61 }
 0x2ba   :  { %v3164_v42 = vpack.c.bf16 %v11569_v47, %v14012_v28  ;;  %v11582_v38 = vpack.c.bf16 %v11536_v34, %v11556_v39  ;;  %v11599_v53 = vsel %vm108_vm2, 0.0, %v3086_v29  ;;  %v11601_v62 = vmax.f32 %v2999_v4, 0.0 }
 0x2bb   :  { %v11586_v33 = vmax.f32 %v2997_v20, 0.0  ;;  %v11589_v3 = vsel %vm108_vm2, 0.0, %v3084_v21  ;;  %v3000_v11 = vadd.f32 %v11374_v63, %v2980_v17  ;;  %v2978_v60 = vmul.f32 %v11351_v15, %v2958_v50 }
 0x2bc   :  { %14015 = vst [vmem:[#allocation19_spill] sm:$0xff] %v11582_v38  ;;  %9148 = vmatprep.mubr.msk.bf16.mxu1 %vm1665_vm4, %v3164_v42  ;;  %9129 = vmatmul.mubr.msk.bf16.gmra.mxu0 %vm1665_vm4, %v11582_v38  ;;  %v11616_v61 = vpack.c.bf16 %v11596_v59, %v11589_v3  ;;  %v3121_v37 = vrot.slane %v11428_v58, 1  ;;  %v3122_v1 = vrot.slane %v11460_v10, 1  ;;  %v3089_v5 = vrot.slane %v11601_v62, 7 }
 0x2bd   :  { %v11607_v52 = vpack.c.bf16 %v11586_v33, %v11545_v36  ;;  %v3087_v27 = vrot.slane %v11586_v33, 7  ;;  %v2998_v24 = vadd.f32 %v11374_v63, %v2978_v60  ;;  %v11626_v19 = vmax.f32 %v3000_v11, 0.0 }
 0x2be   :  { %v11636_v14 = vsel %vm154_vm3, %v3118_v22, 0.0  ;;  %v11639_v29 = vsel %vm154_vm3, %v3121_v37, 0.0  ;;  %v11642_v21 = vsel %vm154_vm3, %v3122_v1, 0.0  ;;  %v11645_v4 = vsel %vm154_vm3, %v3120_v48, 0.0  ;;  %v14020_v48 = vld [vmem:[#allocation3_spill] sm:$0xff] }
 0x2bf   :  { %14016 = vst [vmem:[#allocation26_spill] sm:$0xff] %v11607_v52  ;;  %9132 = vmatprep.mubr.msk.bf16.mxu0 %vm1665_vm4, %v11607_v52  ;;  %v11622_v41 = vsel %vm108_vm2, 0.0, %v3087_v27  ;;  %v11628_v12 = vmax.f32 %v2998_v24, 0.0  ;;  %v11656_v50 = vpack.c.bf16 %v11642_v21, %v11639_v29  ;;  %v3119_v42 = vrot.slane %v11441_v7, 1 }
 0x2c0   :  { %v11632_v63 = vpack.c.bf16 %v11622_v41, %v11599_v53  ;;  %9149 = vmatmul.mubr.msk.bf16.gmra.mxu1 %vm1665_vm4, %v11616_v61  ;;  %v3127_v22 = vrot.slane %v11536_v34, 1  ;;  %v11665_v60 = vsel %vm108_vm2, 0.0, %v3601_v40  ;;  %v3602_v27 = vrot.slane %v11626_v19, 7 }
 0x2c1   :  { %v3088_v20 = vrot.slane %v11628_v12, 7  ;;  %v11652_v17 = vpack.c.bf16 %v11601_v62, %v11628_v12  ;;  %14019 = vst [vmem:[#allocation21_spill] sm:$0xff] %v11656_v50  ;;  %v3442_v24 = vpack.c.bf16 %v11636_v14, %v14020_v48  ;;  %v3616_v1 = vpack.c.bf16 %v11665_v60, %v11560_v44 }
 0x2c2   :  { %14017 = vst [vmem:[#allocation30_spill] sm:$0xff] %v11632_v63  ;;  %9152 = vmatprep.mubr.msk.bf16.mxu1 %vm1665_vm4, %v11632_v63  ;;  %v11678_v2 = vsel %vm108_vm2, 0.0, %v3089_v5  ;;  %v3128_v40 = vrot.slane %v11545_v36, 1  ;;  %v3124_v11 = vrot.slane %v11477_v57, 1  ;;  %v3607_v15 = vrot.slane %v11584_v0, 1 }
 0x2c3   :  { %14018 = vst [vmem:[#allocation32_spill] sm:$0xff] %v11652_v17  ;;  %v11671_v37 = vsel %vm108_vm2, 0.0, %v3088_v20  ;;  %v3129_v44 = vrot.slane %v11586_v33, 1  ;;  %v11690_v51 = vsel %vm154_vm3, %v3119_v42, 0.0  ;;  %v3131_v5 = vrot.slane %v11601_v62, 1 }
 0x2c4   :  { %9133 = vmatmul.mubr.msk.bf16.gmra.mxu0 %vm1665_vm4, %v11652_v17  ;;  %v11686_v20 = vpack.c.bf16 %v11678_v2, %v11671_v37  ;;  %v11694_v46 = vsel %vm154_vm3, %v3127_v22, 0.0  ;;  %v11697_v17 = vsel %vm154_vm3, %v3128_v40, 0.0  ;;  %v3608_v52 = vrot.slane %v11626_v19, 1 }
 0x2c5   :  { %9160 = vmatprep.mubr.msk.bf16.mxu0 %vm1665_vm4, %v3442_v24  ;;  %v11701_v24 = vsel %vm154_vm3, %v3129_v44, 0.0  ;;  %v11706_v38 = vsel %vm108_vm2, 0.0, %v3602_v27  ;;  %v3613_v42 = vpack.c.bf16 %v11468_v6, %v11445_v16  ;;  %v11719_v44 = vsel %vm154_vm3, %v3124_v11, 0.0 }
 0x2c6   :  { %14021 = vst [vmem:[#allocation5_spill] sm:$0xff] %v11686_v20  ;;  %14022 = vst [vmem:[#allocation33_spill] sm:$0xff] %v11706_v38  ;;  %v11712_v22 = vpack.c.bf16 %v11701_v24, %v11697_v17  ;;  %v3620_v40 = vpack.c.bf16 %v11706_v38, %v11678_v2  ;;  %v11724_v63 = vsel %vm154_vm3, %v3607_v15, 0.0  ;;  %v11728_v16 = vpack.c.bf16 %v11645_v4, %v11690_v51  ;;  %v9713_v2 = vld [vmem:[%s13806_s5 + $0xd0] sm:$0xff]   ;;  %v9716_v38 = vld [vmem:[%s13806_s5 + $0xf8] sm:$0xff]  }
 0x2c7   :  { %v3123_v27 = vrot.slane %v11497_v55, 1  ;;  %v11740_v15 = vsel %vm154_vm3, %v3131_v5, 0.0  ;;  %v3615_v11 = vpack.c.bf16 %v11543_v32, %v11509_v45  ;;  %v3617_v45 = vpack.c.bf16 %v11589_v3, %v11569_v47 }
 0x2c8   :  { %9153 = vmatmul.mubr.msk.bf16.gmra.mxu1 %vm1665_vm4, %v11686_v20  ;;  %14023 = vst [vmem:[#allocation36_spill] sm:$0xff] %v11728_v16  ;;  %v3125_v20 = vrot.slane %v11538_v18, 1  ;;  %v3130_v32 = vrot.slane %v11628_v12, 1  ;;  %v3619_v47 = vpack.c.bf16 %v11671_v37, %v11622_v41  ;;  %v14025_v3 = vpack.c.bf16 %v11599_v53, %v11596_v59  ;;  %v9717_v59 = vld [vmem:[%s13806_s5 + $0xf0] sm:$0xff]  }
 0x2c9   :  { %9180 = vmatprep.mubr.msk.bf16.mxu1 %vm1665_vm4, %v3613_v42  ;;  %v11745_v42 = vsel %vm154_vm3, %v3608_v52, 0.0  ;;  %v3151_v5 = vsel %vm154_vm3, %v3123_v27, 0.0  ;;  %v9715_v52 = vld [vmem:[%s13806_s5 + $0xe0] sm:$0xff]   ;;  %v3126_v27 = vrot.slane %v11556_v39, 1  ;;  %v3927_v41 = vpack.c.bf16 %v11690_v51, %v11636_v14  ;;  %v9720_v51 = vld [vmem:[%s13806_s5 + $0x118] sm:$0xff]  }
 0x2ca   :  { %v3153_v6 = vsel %vm154_vm3, %v3125_v20, 0.0  ;;  %v3770_v20 = vpack.c.bf16 %v11441_v7, %v11419_v25  ;;  %v3772_v53 = vpack.c.bf16 %v11497_v55, %v11460_v10  ;;  %v14026_v25 = vpack.c.bf16 %v11428_v58, %v11423_v13  ;;  %v9719_v7 = vld [vmem:[%s13806_s5 + $0x100] sm:$0xff]  }
 0x2cb   :  { %v3929_v14 = vpack.c.bf16 %v3151_v5, %v11642_v21  ;;  %v14027_v10 = vpack.c.bf16 %v11639_v29, %v11645_v4  ;;  %v3774_v13 = vpack.c.bf16 %v11556_v39, %v11538_v18  ;;  %v14028_v58 = vpack.c.bf16 %v11584_v0, %v11477_v57 }
 0x2cc   :  { %9161 = vmatmul.mubr.msk.bf16.vlgmr.msra.gmra.mxu0 %vm1665_vm4, %v11728_v16  ;;  %v3446_v16 = vpack.c.bf16 %v3153_v6, %v14020_v48  ;;  %v3776_v18 = vpack.c.bf16 %v11628_v12, %v11586_v33  ;;  %v14030_v39 = vpack.c.bf16 %v11545_v36, %v11536_v34  ;;  %v14031_v29 = vpack.c.bf16 %v11697_v17, %v11694_v46  ;;  %v14037_v36 = vld [vmem:[#allocation26_spill] sm:$0xff]  ;;  %v14041_v12 = vld [vmem:[#allocation21_spill] sm:$0xff] }
 0x2cd   :  { %9164 = vmatprep.mubr.msk.bf16.mxu0 %vm1665_vm4, %v11656_v50  ;;  %9197 = vmatpush3.bf16.msra.mxu0 %v11493_v31  ;;  %v14024_v50 = vpack.c.bf16 %v11506_v8, %v11465_v9  ;;  %v11771_v31 = vpack.c.bf16 %v11719_v44, %v3151_v5  ;;  %v9718_v9 = vld [vmem:[%s13806_s5 + $0x108] sm:$0xff]   ;;  %v3154_v8 = vsel %vm154_vm3, %v3126_v27, 0.0  ;;  %v14032_v21 = vpack.c.bf16 %v11626_v19, %v11601_v62  ;;  %v14039_v33 = vld [vmem:[#allocation33_spill] sm:$0xff] }
 0x2ce   :  { %9198 = vmatprep.subr.bf16.mxu0 %v9713_v2  ;;  %v3931_v55 = vpack.c.bf16 %v3154_v8, %v3153_v6  ;;  %v14033_v34 = vpack.c.bf16 %v11745_v42, %v11740_v15  ;;  %v4350_v4 = vpack.c.bf16 %v14020_v48, %v11724_v63 }
 0x2cf   :  { %v14040_v62 = vld [vmem:[#allocation36_spill] sm:$0xff] }
 0x2d0   :  { %9181 = vmatmul.mubr.msk.bf16.vlgmr.msra.gmra.mxu1 %vm1665_vm4, %v14024_v50  ;;  %v3158_v50 = vsel %vm154_vm3, %v3130_v32, 0.0 }
 0x2d1   :  { %9199 = vmatpush3.bf16.msra.mxu0 %v9713_v2  ;;  %9184 = vmatprep.mubr.msk.bf16.mxu1 %vm1665_vm4, %v3615_v11  ;;  %v3933_v57 = vpack.c.bf16 %v3158_v50, %v11701_v24 }
 0x2d2   :  { %9217 = vmatpush3.bf16.msra.mxu1 %v11518_v54  ;;  %9236 = vmatprep.subr.bf16.mxu0 %v9716_v38  ;;  %v11788_v54 = vpack.c.bf16 %v11694_v46, %v3154_v8  ;;  %v9721_v46 = vld [vmem:[%s13806_s5 + $0x110] sm:$0xff]  }
 0x2d3   :  { %9218 = vmatprep.subr.bf16.mxu1 %v9715_v52 }
 0x2d4   :  { %9165 = vmatmul.mubr.msk.bf16.gmra.mxu0 %vm1665_vm4, %v11771_v31 }
 0x2d5   :  { %9168 = vmatprep.mubr.msk.bf16.mxu0 %vm1665_vm4, %v3446_v16 }
 0x2d6   :  { %9219 = vmatpush3.bf16.msra.mxu1 %v9715_v52 }
 0x2d7   :  { %9256 = vmatprep.subr.bf16.mxu1 %v9718_v9 }
 0x2d8   :  { %9185 = vmatmul.mubr.msk.bf16.gmra.mxu1 %vm1665_vm4, %v3616_v1  ;;  %v11804_v1 = vpack.c.bf16 %v11740_v15, %v3158_v50 }
 0x2d9   :  { %9188 = vmatprep.mubr.msk.bf16.mxu1 %vm1665_vm4, %v3617_v45 }
 0x2dc   :  { %9169 = vmatmul.mubr.msk.bf16.gmra.mxu0 %vm1665_vm4, %v11788_v54 }
 0x2dd   :  { %9172 = vmatprep.mubr.msk.bf16.mxu0 %vm1665_vm4, %v11712_v22 }
 0x2e0   :  { %9189 = vmatmul.mubr.msk.bf16.gmra.mxu1 %vm1665_vm4, %v14025_v3 }
 0x2e1   :  { %9192 = vmatprep.mubr.msk.bf16.mxu1 %vm1665_vm4, %v3619_v47 }
 0x2e4   :  { %9173 = vmatmul.mubr.msk.bf16.gmra.mxu0 %vm1665_vm4, %v11804_v1 }
 0x2e5   :  { %9200 = vmatprep.mubr.msk.bf16.mxu0 %vm1665_vm4, %v3770_v20 }
 0x2e8   :  { %9193 = vmatmul.mubr.msk.bf16.gmra.mxu1 %vm1665_vm4, %v3620_v40 }
 0x2e9   :  { %9220 = vmatprep.mubr.msk.bf16.mxu1 %vm1665_vm4, %v3927_v41 }
 0x2ec   :  { %9201 = vmatmul.mubr.msk.bf16.vlgmr.msra.gmra.mxu0 %vm1665_vm4, %v14026_v25 }
 0x2ed   :  { %9204 = vmatprep.mubr.msk.bf16.mxu0 %vm1665_vm4, %v3772_v53  ;;  %9237 = vmatpush3.bf16.msra.mxu0 %v9716_v38  ;;  %v14029_v38 = vpack.c.bf16 %v11724_v63, %v11719_v44  ;;  %v9722_v63 = vld [vmem:[%s13806_s5 + $0x138] sm:$0xff]  }
 0x2ee   :  { %9238 = vmatprep.subr.bf16.mxu0 %v9717_v59 }
 0x2f0   :  { %9221 = vmatmul.mubr.msk.bf16.vlgmr.msra.gmra.mxu1 %vm1665_vm4, %v14027_v10 }
 0x2f1   :  { %9239 = vmatpush3.bf16.msra.mxu0 %v9717_v59  ;;  %9224 = vmatprep.mubr.msk.bf16.mxu1 %vm1665_vm4, %v3929_v14 }
 0x2f2   :  { %9257 = vmatpush3.bf16.msra.mxu1 %v9718_v9  ;;  %9276 = vmatprep.subr.bf16.mxu0 %v9720_v51 }
 0x2f3   :  { %9258 = vmatprep.subr.bf16.mxu1 %v9719_v7 }
 0x2f4   :  { %9205 = vmatmul.mubr.msk.bf16.gmra.mxu0 %vm1665_vm4, %v14028_v58 }
 0x2f5   :  { %9208 = vmatprep.mubr.msk.bf16.mxu0 %vm1665_vm4, %v3774_v13 }
 0x2f6   :  { %9259 = vmatpush3.bf16.msra.mxu1 %v9719_v7 }
 0x2f7   :  { %9296 = vmatprep.subr.bf16.mxu1 %v9722_v63 }
 0x2f8   :  { %9225 = vmatmul.mubr.msk.bf16.gmra.mxu1 %vm1665_vm4, %v14029_v38  ;;  %v9725_v38 = vld [vmem:[%s13806_s5 + $0x120] sm:$0xff]  }
 0x2f9   :  { %9228 = vmatprep.mubr.msk.bf16.mxu1 %vm1665_vm4, %v3931_v55 }
 0x2fc   :  { %9209 = vmatmul.mubr.msk.bf16.gmra.mxu0 %vm1665_vm4, %v14030_v39 }
 0x2fd   :  { %9212 = vmatprep.mubr.msk.bf16.mxu0 %vm1665_vm4, %v3776_v18  ;;  %v11954_v18 = vld [vmem:[%s13806_s5 + $0x148] sm:$0xff]  }
 0x2fe   :  { %14042 = vst [vmem:[#allocation37_spill] sm:$0xff] %v11954_v18 }
 0x300   :  { %9229 = vmatmul.mubr.msk.bf16.gmra.mxu1 %vm1665_vm4, %v14031_v29 }
 0x301   :  { %9232 = vmatprep.mubr.msk.bf16.mxu1 %vm1665_vm4, %v3933_v57 }
 0x304   :  { %9213 = vmatmul.mubr.msk.bf16.gmra.mxu0 %vm1665_vm4, %v14032_v21 }
 0x305   :  { %9240 = vmatprep.mubr.msk.bf16.mxu0 %vm1665_vm4, %v11475_v26  ;;  %v4217_v26 = vpack.c.bf16 %v14011_v49, %v11584_v0  ;;  %v4085_v0 = vpack.c.bf16 %v14012_v28, %v14039_v33 }
 0x308   :  { %9233 = vmatmul.mubr.msk.bf16.gmra.mxu1 %vm1665_vm4, %v14033_v34 }
 0x309   :  { %9260 = vmatprep.mubr.msk.bf16.mxu1 %vm1665_vm4, %v11455_v23  ;;  %v4084_v23 = vpack.c.bf16 %v14012_v28, %v11665_v60 }
 0x30c   :  { %9241 = vmatmul.mubr.msk.bf16.vlgmr.msra.gmra.mxu0 %vm1665_vm4, %v11524_v43  ;;  %v14034_v43 = vld [vmem:[#allocation19_spill] sm:$0xff] }
 0x30d   :  { %9244 = vmatprep.mubr.msk.bf16.mxu0 %vm1665_vm4, %v11565_v56  ;;  %9277 = vmatpush3.bf16.msra.mxu0 %v9720_v51  ;;  %v14038_v56 = vld [vmem:[#allocation32_spill] sm:$0xff]  ;;  %v9724_v51 = vld [vmem:[%s13806_s5 + $0x128] sm:$0xff]  }
 0x30e   :  { %9278 = vmatprep.subr.bf16.mxu0 %v9721_v46 }
 0x310   :  { %9261 = vmatmul.mubr.msk.bf16.vlgmr.msra.gmra.mxu1 %vm1665_vm4, %v11487_v35  ;;  %v14035_v35 = vld [vmem:[#allocation30_spill] sm:$0xff] }
 0x311   :  { %9279 = vmatpush3.bf16.msra.mxu0 %v9721_v46  ;;  %9264 = vmatprep.mubr.msk.bf16.mxu1 %vm1665_vm4, %v11533_v30  ;;  %v14036_v30 = vld [vmem:[#allocation5_spill] sm:$0xff] }
 0x312   :  { %9297 = vmatpush3.bf16.msra.mxu1 %v9722_v63  ;;  %9316 = vmatprep.subr.bf16.mxu0 %v9724_v51 }
 0x314   :  { %9245 = vmatmul.mubr.msk.bf16.gmra.mxu0 %vm1665_vm4, %v4084_v23 }
 0x315   :  { %9248 = vmatprep.mubr.msk.bf16.mxu0 %vm1665_vm4, %v11616_v61  ;;  %v4218_v61 = vpack.c.bf16 %v14011_v49, %v11626_v19  ;;  %v4351_v19 = vpack.c.bf16 %v14020_v48, %v11745_v42 }
 0x318   :  { %9265 = vmatmul.mubr.msk.bf16.gmra.mxu1 %vm1665_vm4, %v4217_v26 }
 0x319   :  { %9268 = vmatprep.mubr.msk.bf16.mxu1 %vm1665_vm4, %v14034_v43 }
 0x31c   :  { %9249 = vmatmul.mubr.msk.bf16.gmra.mxu0 %vm1665_vm4, %v14035_v35 }
 0x31d   :  { %9252 = vmatprep.mubr.msk.bf16.mxu0 %vm1665_vm4, %v14036_v30 }
 0x320   :  { %9269 = vmatmul.mubr.msk.bf16.gmra.mxu1 %vm1665_vm4, %v14037_v36 }
 0x321   :  { %9272 = vmatprep.mubr.msk.bf16.mxu1 %vm1665_vm4, %v14038_v56 }
 0x324   :  { %9253 = vmatmul.mubr.msk.bf16.gmra.mxu0 %vm1665_vm4, %v4085_v0 }
 0x325   :  { %9280 = vmatprep.mubr.msk.bf16.mxu0 %vm1665_vm4, %v14040_v62 }
 0x328   :  { %9273 = vmatmul.mubr.msk.bf16.gmra.mxu1 %vm1665_vm4, %v4218_v61 }
 0x32c   :  { %9281 = vmatmul.mubr.msk.bf16.vlgmr.msra.gmra.mxu0 %vm1665_vm4, %v14041_v12 }
 0x32d   :  { %9284 = vmatprep.mubr.msk.bf16.mxu0 %vm1665_vm4, %v11771_v31  ;;  %v9723_v31 = vld [vmem:[%s13806_s5 + $0x130] sm:$0xff]   ;;  %9317 = vmatpush3.bf16.msra.mxu0 %v9724_v51 }
 0x32e   :  { %9298 = vmatprep.subr.bf16.mxu1 %v9723_v31  ;;  %9318 = vmatprep.subr.bf16.mxu0 %v9725_v38 }
 0x32f   :  { %9299 = vmatpush3.bf16.msra.mxu1 %v9723_v31 }
 0x330   :  { %9336 = vmatprep.subr.bf16.mxu1 %v11954_v18 }
 0x331   :  { %9319 = vmatpush3.bf16.msra.mxu0 %v9725_v38 }
 0x334   :  { %9285 = vmatmul.mubr.msk.bf16.gmra.mxu0 %vm1665_vm4, %v4350_v4 }
 0x335   :  { %9288 = vmatprep.mubr.msk.bf16.mxu0 %vm1665_vm4, %v11788_v54 }
 0x33c   :  { %9289 = vmatmul.mubr.msk.bf16.gmra.mxu0 %vm1665_vm4, %v11712_v22 }
 0x33d   :  { %9292 = vmatprep.mubr.msk.bf16.mxu0 %vm1665_vm4, %v11804_v1 }
 0x344   :  { %9293 = vmatmul.mubr.msk.bf16.gmra.mxu0 %vm1665_vm4, %v4351_v19 }
 0x36c   :  { %v9122_v17 = vpop.f32.mrf.mxu0 }
 0x36e   :  { %v3246_v60 = vpop.f32.mrf.mxu0  ;;  %v9142_v37 = vpop.f32.mrf.mxu1 }
 0x36f   :  { %v3388_v24 = vadd.f32 %v9142_v37, %v9122_v17 }
 0x370   :  { %v9123_v40 = vpop.f32.mrf.mxu0  ;;  %v3379_v22 = vpop.f32.mrf.mxu1 }
 0x371   :  { %v3380_v44 = vadd.f32 %v3379_v22, %v3246_v60 }
 0x372   :  { %v11930_v16 = vpop.f32.mrf.mxu0  ;;  %v9143_v2 = vpop.f32.mrf.mxu1 }
 0x373   :  { %v3391_v6 = vadd.f32 %v9143_v2, %v9123_v40 }
 0x374   :  { %v9126_v11 = vpop.f32.mrf.mxu0  ;;  %v11932_v15 = vpop.f32.mrf.mxu1 }
 0x376   :  { %v3262_v42 = vpop.f32.mrf.mxu0 }
 0x378   :  { %v9127_v5 = vpop.f32.mrf.mxu0  ;;  %v9146_v52 = vpop.f32.mrf.mxu1 }
 0x379   :  { %v3404_v27 = vadd.f32 %v9146_v52, %v9126_v11 }
 0x37a   :  { %v11937_v9 = vpop.f32.mrf.mxu0  ;;  %v3395_v8 = vpop.f32.mrf.mxu1 }
 0x37b   :  { %v3396_v45 = vadd.f32 %v3395_v8, %v3262_v42 }
 0x37c   :  { %v9130_v54 = vpop.f32.mrf.mxu0  ;;  %v9147_v32 = vpop.f32.mrf.mxu1 }
 0x37d   :  { %v3407_v50 = vadd.f32 %v9147_v32, %v9127_v5 }
 0x37e   :  { %v3278_v47 = vpop.f32.mrf.mxu0  ;;  %v11939_v3 = vpop.f32.mrf.mxu1 }
 0x380   :  { %v9131_v1 = vpop.f32.mrf.mxu0  ;;  %v9150_v20 = vpop.f32.mrf.mxu1 }
 0x381   :  { %v3420_v41 = vadd.f32 %v9150_v20, %v9130_v54 }
 0x382   :  { %v11941_v59 = vpop.f32.mrf.mxu0  ;;  %v3411_v53 = vpop.f32.mrf.mxu1 }
 0x383   :  { %v3412_v25 = vadd.f32 %v3411_v53, %v3278_v47 }
 0x384   :  { %v9134_v7 = vpop.f32.mrf.mxu0  ;;  %v9151_v14 = vpop.f32.mrf.mxu1 }
 0x385   :  { %v3423_v10 = vadd.f32 %v9151_v14, %v9131_v1 }
 0x386   :  { %v3294_v13 = vpop.f32.mrf.mxu0  ;;  %v11946_v58 = vpop.f32.mrf.mxu1 }
 0x388   :  { %v9135_v55 = vpop.f32.mrf.mxu0  ;;  %v9154_v39 = vpop.f32.mrf.mxu1 }
 0x389   :  { %v3436_v57 = vadd.f32 %v9154_v39, %v9134_v7 }
 0x38a   :  { %v11956_v29 = vpop.f32.mrf.mxu0  ;;  %v3427_v21 = vpop.f32.mrf.mxu1 }
 0x38b   :  { %v3428_v34 = vadd.f32 %v3427_v21, %v3294_v13 }
 0x38c   :  { %v9162_v46 = vpop.f32.mrf.mxu0  ;;  %v9155_v23 = vpop.f32.mrf.mxu1 }
 0x38d   :  { %v11959_v26 = vadd.f32 %v9162_v46, %v3388_v24  ;;  %v3439_v43 = vadd.f32 %v9155_v23, %v9135_v55 }
 0x38e   :  { %v3520_v35 = vpop.f32.mrf.mxu0  ;;  %v11961_v30 = vpop.f32.mrf.mxu1 }
 0x38f   :  { %v11963_v36 = vadd.f32 %v3520_v35, %v3380_v44 }
 0x390   :  { %v9163_v56 = vpop.f32.mrf.mxu0  ;;  %v11965_v33 = vpop.f32.mrf.mxu1 }
 0x391   :  { %v3586_v0 = vadd.f32 %v9163_v56, %v3391_v6 }
 0x392   :  { %v11967_v62 = vpop.f32.mrf.mxu0  ;;  %v11969_v61 = vpop.f32.mrf.mxu1 }
 0x394   :  { %v9166_v12 = vpop.f32.mrf.mxu0  ;;  %v9183_v4 = vpop.f32.mrf.mxu1 }
 0x395   :  { %v3589_v19 = vadd.f32 %v9166_v12, %v3404_v27  ;;  %v3757_v63 = vadd.f32 %v9183_v4, %v3586_v0  ;;  %v11982_v27 = vld [vmem:[%s13806_s5 + $0x158] sm:$0xff]  }
 0x396   :  { %v3536_v17 = vpop.f32.mrf.mxu0  ;;  %v11971_v60 = vpop.f32.mrf.mxu1  ;;  %14043 = vst [vmem:[#allocation4_spill] sm:$0xff] %v11982_v27  ;;  %9356 = vmatprep.subr.bf16.mxu0 %v11982_v27 }
 0x397   :  { %v11973_v37 = vadd.f32 %v3536_v17, %v3396_v45 }
 0x398   :  { %v9167_v24 = vpop.f32.mrf.mxu0  ;;  %v9186_v40 = vpop.f32.mrf.mxu1 }
 0x399   :  { %v3590_v22 = vadd.f32 %v9167_v24, %v3407_v50  ;;  %v3760_v44 = vadd.f32 %v9186_v40, %v3589_v19 }
 0x39a   :  { %v11975_v2 = vpop.f32.mrf.mxu0  ;;  %v11977_v6 = vpop.f32.mrf.mxu1 }
 0x39c   :  { %v9170_v11 = vpop.f32.mrf.mxu0  ;;  %v9187_v42 = vpop.f32.mrf.mxu1 }
 0x39d   :  { %v3593_v5 = vadd.f32 %v9170_v11, %v3420_v41  ;;  %v3761_v52 = vadd.f32 %v9187_v42, %v3590_v22 }
 0x39e   :  { %v3552_v31 = vpop.f32.mrf.mxu0  ;;  %v11984_v8 = vpop.f32.mrf.mxu1 }
 0x39f   :  { %v11986_v45 = vadd.f32 %v3552_v31, %v3412_v25 }
 0x3a0   :  { %v9171_v54 = vpop.f32.mrf.mxu0  ;;  %v9190_v32 = vpop.f32.mrf.mxu1 }
 0x3a1   :  { %v11989_v50 = vadd.f32 %v9171_v54, %v3423_v10  ;;  %v3764_v47 = vadd.f32 %v9190_v32, %v3593_v5 }
 0x3a2   :  { %v11991_v1 = vpop.f32.mrf.mxu0  ;;  %v11993_v20 = vpop.f32.mrf.mxu1 }
 0x3a4   :  { %v9174_v41 = vpop.f32.mrf.mxu0  ;;  %v11995_v53 = vpop.f32.mrf.mxu1 }
 0x3a5   :  { %v3597_v7 = vadd.f32 %v9174_v41, %v3436_v57 }
 0x3a6   :  { %v3568_v51 = vpop.f32.mrf.mxu0  ;;  %v11997_v14 = vpop.f32.mrf.mxu1 }
 0x3a7   :  { %v11999_v25 = vadd.f32 %v3568_v51, %v3428_v34 }
 0x3a8   :  { %v9175_v13 = vpop.f32.mrf.mxu0  ;;  %v9194_v55 = vpop.f32.mrf.mxu1 }
 0x3a9   :  { %v3598_v38 = vadd.f32 %v9175_v13, %v3439_v43  ;;  %v3768_v39 = vadd.f32 %v9194_v55, %v3597_v7 }
 0x3aa   :  { %v12001_v10 = vpop.f32.mrf.mxu0  ;;  %v12003_v21 = vpop.f32.mrf.mxu1 }
 0x3ac   :  { %v12005_v46 = vpop.f32.mrf.mxu0  ;;  %v9195_v23 = vpop.f32.mrf.mxu1 }
 0x3ad   :  { %v3769_v35 = vadd.f32 %v9195_v23, %v3598_v38 }
 0x3ae   :  { %v12007_v56 = vpop.f32.mrf.mxu0  ;;  %v12009_v57 = vpop.f32.mrf.mxu1 }
 0x3b0   :  { %v9203_v0 = vpop.f32.mrf.mxu0  ;;  %v12011_v12 = vpop.f32.mrf.mxu1 }
 0x3b1   :  { %v12013_v34 = vadd.f32 %v9203_v0, %v3757_v63 }
 0x3b2   :  { %v12015_v4 = vpop.f32.mrf.mxu0  ;;  %v12017_v43 = vpop.f32.mrf.mxu1 }
 0x3b4   :  { %v9206_v19 = vpop.f32.mrf.mxu0  ;;  %v12019_v17 = vpop.f32.mrf.mxu1 }
 0x3b5   :  { %v12021_v24 = vadd.f32 %v9206_v19, %v3760_v44 }
 0x3b6   :  { %v12023_v40 = vpop.f32.mrf.mxu0  ;;  %v12025_v22 = vpop.f32.mrf.mxu1 }
 0x3b8   :  { %v9207_v11 = vpop.f32.mrf.mxu0  ;;  %v12027_v42 = vpop.f32.mrf.mxu1 }
 0x3b9   :  { %v3918_v5 = vadd.f32 %v9207_v11, %v3761_v52 }
 0x3ba   :  { %v12029_v31 = vpop.f32.mrf.mxu0  ;;  %v12031_v63 = vpop.f32.mrf.mxu1 }
 0x3bc   :  { %v9210_v54 = vpop.f32.mrf.mxu0  ;;  %v9227_v32 = vpop.f32.mrf.mxu1 }
 0x3bd   :  { %v12033_v41 = vadd.f32 %v9210_v54, %v3764_v47  ;;  %v4075_v7 = vadd.f32 %v9227_v32, %v3918_v5 }
 0x3be   :  { %v12035_v51 = vpop.f32.mrf.mxu0  ;;  %v12037_v44 = vpop.f32.mrf.mxu1 }
 0x3bf   :  { %14044 = vst [vmem:[#allocation38_spill] sm:$0xff] %v12033_v41 }
 0x3c0   :  { %v12039_v13 = vpop.f32.mrf.mxu0  ;;  %v12041_v55 = vpop.f32.mrf.mxu1 }
 0x3c1   :  { %14045 = vst [vmem:[#allocation27_spill] sm:$0xff] %v12041_v55 }
 0x3c2   :  { %v12043_v38 = vpop.f32.mrf.mxu0  ;;  %v12045_v52 = vpop.f32.mrf.mxu1 }
 0x3c3   :  { %14046 = vst [vmem:[#allocation28_spill] sm:$0xff] %v12045_v52 }
 0x3c4   :  { %v9214_v23 = vpop.f32.mrf.mxu0  ;;  %v12047_v0 = vpop.f32.mrf.mxu1 }
 0x3c5   :  { %14047 = vst [vmem:[#allocation29_spill] sm:$0xff] %v12047_v0  ;;  %v12049_v19 = vadd.f32 %v9214_v23, %v3768_v39 }
 0x3c6   :  { %v12051_v47 = vpop.f32.mrf.mxu0  ;;  %v12053_v11 = vpop.f32.mrf.mxu1 }
 0x3c7   :  { %14048 = vst [vmem:[#allocation34_spill] sm:$0xff] %v12049_v19  ;;  %14049 = vst [vmem:[#allocation35_spill] sm:$0xff] %v12051_v47 }
 0x3c8   :  { %14050 = vst [vmem:[#allocation40_spill] sm:$0xff] %v12053_v11  ;;  %v9215_v5 = vpop.f32.mrf.mxu0  ;;  %v12055_v54 = vpop.f32.mrf.mxu1 }
 0x3c9   :  { %14051 = vst [vmem:[#allocation41_spill] sm:$0xff] %v12055_v54  ;;  %v3926_v32 = vadd.f32 %v9215_v5, %v3769_v35 }
 0x3ca   :  { %v12057_v48 = vpop.f32.mrf.mxu0  ;;  %v12059_v27 = vpop.f32.mrf.mxu1 }
 0x3cb   :  { %14052 = vst [vmem:[#allocation39_spill] sm:$0xff] %v12057_v48  ;;  %14053 = vst [vmem:[#allocation42_spill] sm:$0xff] %v12059_v27 }
 0x3cc   :  { %v9242_v18 = vpop.f32.mrf.mxu0  ;;  %v9235_v28 = vpop.f32.mrf.mxu1 }
 0x3cd   :  { %v4083_v49 = vadd.f32 %v9235_v28, %v3926_v32 }
 0x3ce   :  { %v4138_v52 = vpop.f32.mrf.mxu0  ;;  %v12061_v55 = vpop.f32.mrf.mxu1 }
 0x3cf   :  { %14054 = vst [vmem:[#allocation18_spill] sm:$0xff] %v12061_v55 }
 0x3d0   :  { %v9243_v39 = vpop.f32.mrf.mxu0  ;;  %v9262_v23 = vpop.f32.mrf.mxu1 }
 0x3d2   :  { %v12063_v19 = vpop.f32.mrf.mxu0  ;;  %v4271_v47 = vpop.f32.mrf.mxu1 }
 0x3d4   :  { %v12065_v11 = vpop.f32.mrf.mxu0  ;;  %v12067_v0 = vpop.f32.mrf.mxu1 }
 0x3d5   :  { %14055 = vst [vmem:[#allocation20_spill] sm:$0xff] %v12065_v11  ;;  %14056 = vst [vmem:[#allocation19_spill] sm:$0xff] %v12067_v0 }
 0x3d6   :  { %v12069_v35 = vpop.f32.mrf.mxu0  ;;  %v12071_v5 = vpop.f32.mrf.mxu1 }
 0x3d7   :  { %14057 = vst [vmem:[#allocation30_spill] sm:$0xff] %v12069_v35  ;;  %14058 = vst [vmem:[#allocation5_spill] sm:$0xff] %v12071_v5  ;;  %v3383_v35 = vadd.f32 %v11932_v15, %v11930_v16  ;;  %v3756_v5 = vadd.f32 %v11965_v33, %v11959_v26  ;;  %v14064_v33 = vld [vmem:[#allocation31_spill] sm:$0xff] }
 0x3d8   :  { %v9247_v27 = vpop.f32.mrf.mxu0  ;;  %v12073_v48 = vpop.f32.mrf.mxu1 }
 0x3d9   :  { %v12075_v28 = vadd.f32 %v9247_v27, %v4075_v7  ;;  %v3754_v27 = vadd.f32 %v11969_v61, %v11963_v36  ;;  %v3584_v7 = vadd.f32 %v11967_v62, %v3383_v35  ;;  %v3415_v61 = vadd.f32 %v11946_v58, %v11941_v59  ;;  %v9762_v58 = vld [vmem:[%s13807_s3] sm:$0xf] }
 0x3da   :  { %v12077_v32 = vpop.f32.mrf.mxu0  ;;  %v12079_v55 = vpop.f32.mrf.mxu1 }
 0x3db   :  { %14059 = vst [vmem:[#allocation26_spill] sm:$0xff] %v12075_v28  ;;  %14060 = vst [vmem:[#allocation32_spill] sm:$0xff] %v12079_v55  ;;  %v3913_v28 = vadd.f32 %v12005_v46, %v3756_v5  ;;  %v3911_v16 = vadd.f32 %v12007_v56, %v3754_v27  ;;  %v3755_v36 = vadd.f32 %v11971_v60, %v3584_v7  ;;  %v14065_v7 = vld [vmem:[#allocation38_spill] sm:$0xff] }
 0x3dc   :  { %v12081_v54 = vpop.f32.mrf.mxu0  ;;  %v12083_v41 = vpop.f32.mrf.mxu1  ;;  %v3431_v46 = vadd.f32 %v11961_v30, %v11956_v29  ;;  %v3758_v60 = vadd.f32 %v11977_v6, %v11973_v37  ;;  %v3592_v35 = vadd.f32 %v11991_v1, %v3415_v61  ;;  %v4071_v30 = vadd.f32 %v12019_v17, %v12013_v34 }
 0x3dd   :  { %14061 = vst [vmem:[#allocation33_spill] sm:$0xff] %v12083_v41  ;;  %v3399_v41 = vadd.f32 %v11939_v3, %v11937_v9  ;;  %v4070_v62 = vadd.f32 %v12011_v12, %v3913_v28  ;;  %v3912_v56 = vadd.f32 %v12015_v4, %v3755_v36  ;;  %v3762_v37 = vadd.f32 %v11993_v20, %v11986_v45 }
 0x3de   :  { %v12085_v11 = vpop.f32.mrf.mxu0  ;;  %v12099_v55 = vpop.f32.mrf.mxu1  ;;  %v3596_v29 = vadd.f32 %v12001_v10, %v3431_v46  ;;  %v3765_v6 = vadd.f32 %v11995_v53, %v11989_v50  ;;  %v4204_v17 = vadd.f32 %v9243_v39, %v4071_v30  ;;  %v3763_v50 = vadd.f32 %v11997_v14, %v3592_v35  ;;  %v14078_v30 = vld [vmem:[#allocation34_spill] sm:$0xff] }
 0x3df   :  { %14062 = vst [vmem:[#allocation36_spill] sm:$0xff] %v12085_v11  ;;  %v3588_v15 = vadd.f32 %v11975_v2, %v3399_v41  ;;  %v4068_v2 = vadd.f32 %v12017_v43, %v3911_v16  ;;  %v4203_v41 = vadd.f32 %v9242_v18, %v4070_v62  ;;  %v4069_v10 = vadd.f32 %v12025_v22, %v3912_v56  ;;  %v14070_v62 = vld [vmem:[#allocation28_spill] sm:$0xff]  ;;  %v14074_v56 = vld [vmem:[#allocation5_spill] sm:$0xff] }
 0x3e0   :  { %v12091_v0 = vpop.f32.mrf.mxu0  ;;  %v12112_v9 = vpop.f32.mrf.mxu1  ;;  %v3766_v20 = vadd.f32 %v12003_v21, %v11999_v25  ;;  %v3919_v53 = vadd.f32 %v12035_v51, %v3762_v37  ;;  %v3767_v22 = vadd.f32 %v12009_v57, %v3596_v29  ;;  %v3920_v25 = vadd.f32 %v12043_v38, %v3763_v50 }
 0x3e1   :  { %14063 = vst [vmem:[#allocation21_spill] sm:$0xff] %v12091_v0  ;;  %v4501_v0 = vsub.s32 2, %v14064_v33  ;;  %v3759_v12 = vadd.f32 %v11984_v8, %v3588_v15  ;;  %v4201_v18 = vadd.f32 %v4138_v52, %v4068_v2  ;;  %v3915_v8 = vadd.f32 %v12023_v40, %v3758_v60  ;;  %v14067_v15 = vld [vmem:[#allocation19_spill] sm:$0xff] }
 0x3e2   :  { %v12101_v11 = vpop.f32.mrf.mxu0  ;;  %v12140_v43 = vpop.f32.mrf.mxu1  ;;  %v4336_v34 = vadd.f32 %v9262_v23, %v4203_v41  ;;  %v3922_v40 = vadd.f32 %v12039_v13, %v3765_v6  ;;  %v4202_v39 = vadd.f32 %v12063_v19, %v4069_v10  ;;  %v14066_v13 = vld [vmem:[#allocation27_spill] sm:$0xff]  ;;  %v4337_v57 = vadd.f32 %v14067_v15, %v4204_v17 }
 0x3e3   :  { %v12127_v5 = vrot.slane %v9762_v58, %v4501_v0  ;;  %v3916_v1 = vadd.f32 %v12029_v31, %v3759_v12  ;;  %v4334_v52 = vadd.f32 %v4271_v47, %v4201_v18  ;;  %v4072_v27 = vadd.f32 %v12031_v63, %v3915_v8  ;;  %v14068_v47 = vld [vmem:[#allocation9_spill] sm:$0xff]  ;;  %v14072_v63 = vld [vmem:[#allocation35_spill] sm:$0xff]  ;;  %v14077_v58 = vld [vmem:[#allocation40_spill] sm:$0xff] }
 0x3e4   :  { %v12105_v26 = vpop.f32.mrf.mxu0  ;;  %v9271_v21 = vpop.f32.mrf.mxu1  ;;  %v4078_v16 = vadd.f32 %v14066_v13, %v14065_v7  ;;  %v4076_v61 = vadd.f32 %v14070_v62, %v3919_v53  ;;  %v3923_v46 = vadd.f32 %v14072_v63, %v3766_v20  ;;  %v4335_v41 = vadd.f32 %v14074_v56, %v4202_v39  ;;  %v14075_v12 = vld [vmem:[#allocation11_spill] sm:$0xff]  ;;  %v14079_v18 = vld [vmem:[#allocation41_spill] sm:$0xff]  ;;  %v14088_v13 = vld [vmem:[#allocation42_spill] sm:$0xff] }
 0x3e5   :  { %v4073_v14 = vadd.f32 %v12037_v44, %v3916_v1  ;;  %v14073_v44 = vld [vmem:[#allocation20_spill] sm:$0xff]  ;;  %v4077_v29 = vadd.f32 %v14077_v58, %v3920_v25  ;;  %v4082_v37 = vadd.f32 %v14079_v18, %v14078_v30  ;;  %v14080_v6 = vld [vmem:[#allocation39_spill] sm:$0xff]  ;;  %v14081_v1 = vld [vmem:[#allocation30_spill] sm:$0xff] }
 0x3e6   :  { %v12114_v3 = vpop.f32.mrf.mxu0  ;;  %v3924_v8 = vadd.f32 %v14080_v6, %v3767_v22  ;;  %v4205_v10 = vadd.f32 %v14081_v1, %v4072_v27  ;;  %v14082_v20 = vld [vmem:[#allocation13_spill] sm:$0xff]  ;;  %v14084_v39 = vld [vmem:[#allocation36_spill] sm:$0xff]  ;;  %v4080_v15 = vadd.f32 %v14088_v13, %v3923_v46 }
 0x3e8   :  { %v9255_v59 = vpop.f32.mrf.mxu0  ;;  %v14085_v27 = vld [vmem:[#allocation21_spill] sm:$0xff] }
 0x3e9   :  { %v12132_v4 = vadd.f32 %v9255_v59, %v4083_v49  ;;  %v9763_v49 = vld [vmem:[%s13808_s4] sm:$0xf] }
 0x3ea   :  { %v12142_v28 = vpop.f32.mrf.mxu0  ;;  %v12148_v45 = vrot.slane %v9763_v49, %v4501_v0  ;;  %v4074_v0 = vadd.f32 %v12027_v42, %v12021_v24  ;;  %v14071_v24 = vld [vmem:[#allocation29_spill] sm:$0xff]  ;;  %v4206_v49 = vadd.f32 %v12077_v32, %v4073_v14 }
 0x3eb   :  { %v4079_v42 = vadd.f32 %v14071_v24, %v3922_v40  ;;  %v4210_v24 = vadd.f32 %v12101_v11, %v4077_v29  ;;  %v14093_v29 = vld [vmem:[#allocation23_spill] sm:$0xff] }
 0x3ec   :  { %v9282_v31 = vpop.f32.mrf.mxu0  ;;  %v4207_v2 = vadd.f32 %v14073_v44, %v4074_v0 }
 0x3ed   :  { %v4469_v23 = vadd.f32 %v9282_v31, %v4336_v34  ;;  %v4306_v34 = vpop.f32.mrf.mxu1  ;;  %v4212_v25 = vadd.f32 %v14085_v27, %v4079_v42  ;;  %v4215_v42 = vadd.f32 %v12105_v26, %v4082_v37  ;;  %v14095_v37 = vmov 0.0  }
 0x3ee   :  { %v4404_v51 = vpop.f32.mrf.mxu0  ;;  %v4340_v31 = vadd.f32 %v12073_v48, %v4207_v2  ;;  %v14089_v48 = vld [vmem:[#allocation18_spill] sm:$0xff] }
 0x3ef   :  { %v12166_v36 = vadd.f32 %v4469_v23, %v14068_v47  ;;  %v4467_v19 = vadd.f32 %v4404_v51, %v4334_v52  ;;  %v4211_v52 = vadd.f32 %v12081_v54, %v4078_v16  ;;  %v4209_v23 = vadd.f32 %v14084_v39, %v4076_v61  ;;  %v14086_v51 = vld [vmem:[#allocation6_spill] sm:$0xff]  ;;  %v14090_v54 = vld [vmem:[#allocation32_spill] sm:$0xff]  ;;  %v9274_v47 = vpop.f32.mrf.mxu1 }
 0x3f0   :  { %v9283_v38 = vpop.f32.mrf.mxu0  ;;  %v4338_v16 = vadd.f32 %v14090_v54, %v4205_v10  ;;  %v4339_v61 = vadd.f32 %v12099_v55, %v4206_v49  ;;  %v14091_v2 = vld [vmem:[#allocation22_spill] sm:$0xff]  ;;  %v4345_v11 = vadd.f32 %v9271_v21, %v4212_v25  ;;  %v4348_v1 = vadd.f32 %v9274_v47, %v4215_v42 }
 0x3f1   :  { %14069 = vst [vmem:[#allocation38_spill] sm:$0xff] %v12166_v36  ;;  %v4505_v60 = vmul.f32 %v12127_v5, %v12166_v36  ;;  %v12176_v35 = vadd.f32 %v4467_v19, %v14075_v12  ;;  %v4470_v59 = vadd.f32 %v9283_v38, %v4337_v57  ;;  %v4081_v57 = vadd.f32 %v14089_v48, %v3924_v8  ;;  %v14100_v54 = vld [vmem:[#allocation2_spill] sm:$0xff] }
 0x3f2   :  { %v4407_v17 = vpop.f32.mrf.mxu0  ;;  %v4342_v55 = vadd.f32 %v12140_v43, %v4209_v23  ;;  %v4213_v12 = vadd.f32 %v12114_v3, %v4080_v15  ;;  %v4343_v8 = vadd.f32 %v4306_v34, %v4210_v24  ;;  %v14096_v34 = vld [vmem:[#allocation7_spill] sm:$0xff]  ;;  %v14101_v24 = vld [vmem:[#allocation37_spill] sm:$0xff] }
 0x3f3   :  { %14076 = vst [vmem:[#allocation27_spill] sm:$0xff] %v12176_v35  ;;  %v4503_v50 = vmul.f32 %v12127_v5, %v12176_v35  ;;  %v12187_v53 = vadd.f32 %v4470_v59, %v14082_v20  ;;  %v4468_v40 = vadd.f32 %v4407_v17, %v4335_v41  ;;  %v4525_v22 = vadd.f32 %v12148_v45, %v4505_v60  ;;  %v4319_v59 = vpop.f32.mrf.mxu1 }
 0x3f4   :  { %v9286_v0 = vpop.f32.mrf.mxu0  ;;  %v4344_v60 = vadd.f32 %v12112_v9, %v4211_v52  ;;  %v4346_v52 = vadd.f32 %v4319_v59, %v4213_v12  ;;  %v12245_v39 = vadd.f32 %v12142_v28, %v4081_v57  ;;  %v9727_v28 = vld [vmem:[%s13806_s5 + $0x140] sm:$0xff]   ;;  %v12294_v12 = vld [vmem:[%s13806_s5 + $0x168] sm:$0xff]  }
 0x3f5   :  { %14083 = vst [vmem:[#allocation19_spill] sm:$0xff] %v12187_v53  ;;  %v4523_v32 = vadd.f32 %v12148_v45, %v4503_v50  ;;  %v4506_v14 = vmul.f32 %v12127_v5, %v12187_v53  ;;  %v12198_v7 = vadd.f32 %v4468_v40, %v14086_v51  ;;  %v4473_v19 = vadd.f32 %v9286_v0, %v4340_v31  ;;  %v9275_v23 = vpop.f32.mrf.mxu1  ;;  %v14098_v51 = vld [vmem:[#allocation8_spill] sm:$0xff] }
 0x3f6   :  { %v4420_v62 = vpop.f32.mrf.mxu0  ;;  %v12208_v44 = vmax.f32 %v4525_v22, 0.0 }
 0x3f7   :  { %14087 = vst [vmem:[#allocation9_spill] sm:$0xff] %v12198_v7  ;;  %v12206_v63 = vmax.f32 %v4523_v32, 0.0  ;;  %v4504_v46 = vmul.f32 %v12127_v5, %v12198_v7  ;;  %v12213_v38 = vadd.f32 %v4473_v19, %v14091_v2  ;;  %v4471_v56 = vadd.f32 %v4420_v62, %v4338_v16  ;;  %v9733_v7 = vld [vmem:[%s13806_s5 + $0x170] sm:$0xff]  }
 0x3f8   :  { %v12215_v41 = vpop.f32.mrf.mxu0  ;;  %v4526_v26 = vadd.f32 %v12148_v45, %v4506_v14  ;;  %v4616_v3 = vrot.slane %v12208_v44, 7  ;;  %v4349_v19 = vadd.f32 %v9275_v23, %v12132_v4 }
 0x3f9   :  { %14092 = vst [vmem:[#allocation28_spill] sm:$0xff] %v12213_v38  ;;  %v4524_v58 = vadd.f32 %v12148_v45, %v4504_v46  ;;  %v12223_v30 = vadd.f32 %v4471_v56, %v14093_v29  ;;  %v4706_v6 = vpack.c.bf16 %v12206_v63, %v14095_v37  ;;  %v4509_v9 = vmul.f32 %v12127_v5, %v12213_v38  ;;  %v14102_v56 = vld [vmem:[#allocation10_spill] sm:$0xff] }
 0x3fa   :  { %v4423_v18 = vpop.f32.mrf.mxu0  ;;  %v4614_v21 = vrot.slane %v12206_v63, 7  ;;  %v12236_v50 = vmax.f32 %v4526_v26, 0.0  ;;  %v12263_v15 = vsel %vm108_vm2, 0.0, %v4616_v3  ;;  %v9729_v26 = vld [vmem:[%s13806_s5 + $0x150] sm:$0xff]  }
 0x3fb   :  { %14094 = vst [vmem:[#allocation29_spill] sm:$0xff] %v12223_v30  ;;  %v4472_v43 = vadd.f32 %v4423_v18, %v4339_v61  ;;  %v12231_v10 = vmax.f32 %v4524_v58, 0.0  ;;  %v4507_v17 = vmul.f32 %v12127_v5, %v12223_v30  ;;  %9300 = vmatprep.mubr.msk.bf16.mxu1 %vm1665_vm4, %v4706_v6  ;;  %v4529_v25 = vadd.f32 %v12148_v45, %v4509_v9  ;;  %v14106_v3 = vld [vmem:[#allocation4_spill] sm:$0xff] }
 0x3fc   :  { %v9290_v49 = vpop.f32.mrf.mxu0  ;;  %v12242_v31 = vsel %vm108_vm2, 0.0, %v4614_v21  ;;  %v4617_v42 = vrot.slane %v12236_v50, 7 }
 0x3fd   :  { %v12239_v20 = vadd.f32 %v4472_v43, %v14096_v34  ;;  %v4477_v40 = vadd.f32 %v9290_v49, %v4344_v60  ;;  %v4615_v22 = vrot.slane %v12231_v10, 7  ;;  %v12250_v0 = vpack.c.bf16 %v12208_v44, %v12231_v10  ;;  %v14104_v43 = vld [vmem:[#allocation15_spill] sm:$0xff] }
 0x3fe   :  { %v4436_v27 = vpop.f32.mrf.mxu0  ;;  %v4527_v32 = vadd.f32 %v12148_v45, %v4507_v17  ;;  %v4698_v16 = vpack.c.bf16 %v12242_v31, %v14100_v54  ;;  %v12296_v59 = vmax.f32 %v4529_v25, 0.0  ;;  %v14107_v17 = vld [vmem:[#allocation17_spill] sm:$0xff] }
 0x3ff   :  { %14097 = vst [vmem:[#allocation35_spill] sm:$0xff] %v12239_v20  ;;  %v4508_v14 = vmul.f32 %v12127_v5, %v12239_v20  ;;  %v12257_v13 = vadd.f32 %v4477_v40, %v14098_v51  ;;  %v12266_v48 = vsel %vm108_vm2, 0.0, %v4615_v22  ;;  %v4475_v57 = vadd.f32 %v4436_v27, %v4342_v55  ;;  %9301 = vmatmul.mubr.msk.bf16.vlgmr.msra.gmra.mxu1 %vm1665_vm4, %v12250_v0  ;;  %v4322_v51 = vpop.f32.mrf.mxu1 }
 0x400   :  { %v9291_v47 = vpop.f32.mrf.mxu0  ;;  %v12275_v62 = vpack.c.bf16 %v12263_v15, %v12266_v48  ;;  %v12277_v61 = vmax.f32 %v4527_v32, 0.0  ;;  %9337 = vmatpush3.bf16.msra.mxu1 %v14101_v24  ;;  %9320 = vmatprep.mubr.msk.bf16.mxu0 %vm1665_vm4, %v4698_v16  ;;  %v12320_v40 = vsel %vm108_vm2, 0.0, %v4617_v42 }
 0x401   :  { %14099 = vst [vmem:[#allocation20_spill] sm:$0xff] %v12257_v13  ;;  %v4528_v46 = vadd.f32 %v12148_v45, %v4508_v14  ;;  %v4513_v2 = vmul.f32 %v12127_v5, %v12257_v13  ;;  %v12285_v60 = vadd.f32 %v4475_v57, %v14102_v56  ;;  %v4478_v4 = vadd.f32 %v9291_v47, %v4345_v11  ;;  %v14109_v57 = vld [vmem:[#allocation24_spill] sm:$0xff] }
 0x402   :  { %v4439_v55 = vpop.f32.mrf.mxu0  ;;  %9321 = vmatmul.mubr.msk.bf16.vlgmr.msra.gmra.mxu0 %vm1665_vm4, %v12275_v62  ;;  %v12302_v29 = vpack.c.bf16 %v12277_v61, %v12236_v50  ;;  %v4618_v11 = vrot.slane %v12277_v61, 7  ;;  %9338 = vmatprep.subr.bf16.mxu1 %v9727_v28  ;;  %v4658_v13 = vrot.slane %v12208_v44, 1 }
 0x403   :  { %14103 = vst [vmem:[#allocation5_spill] sm:$0xff] %v12285_v60  ;;  %v4476_v58 = vadd.f32 %v4439_v55, %v4343_v8  ;;  %v12305_v18 = vmax.f32 %v4528_v46, 0.0  ;;  %v4533_v6 = vadd.f32 %v12148_v45, %v4513_v2  ;;  %v4511_v9 = vmul.f32 %v12127_v5, %v12285_v60  ;;  %9357 = vmatpush3.bf16.msra.mxu0 %v14106_v3 }
 0x404   :  { %v12311_v21 = vadd.f32 %v4478_v4, %v14104_v43  ;;  %v9294_v8 = vpop.f32.mrf.mxu0  ;;  %9304 = vmatprep.mubr.msk.bf16.mxu1 %vm1665_vm4, %v12302_v29  ;;  %v12323_v23 = vsel %vm108_vm2, 0.0, %v4618_v11  ;;  %9339 = vmatpush3.bf16.msra.mxu1 %v9727_v28  ;;  %v4620_v4 = vrot.slane %v12296_v59, 7  ;;  %v12501_v38 = vsel %vm154_vm3, %v4658_v13, 0.0 }
 0x405   :  { %v12315_v49 = vadd.f32 %v4476_v58, %v14107_v17  ;;  %v4481_v34 = vadd.f32 %v9294_v8, %v4348_v1  ;;  %v12325_v22 = vmax.f32 %v4533_v6, 0.0  ;;  %v4531_v27 = vadd.f32 %v12148_v45, %v4511_v9  ;;  %9358 = vmatprep.subr.bf16.mxu0 %v9729_v26  ;;  %9376 = vmatprep.subr.bf16.mxu1 %v12294_v12  ;;  %v12338_v1 = vld [vmem:[%s13806_s5 + $0x178] sm:$0xff]   ;;  %v14111_v58 = vld [vmem:[#allocation12_spill] sm:$0xff] }
 0x406   :  { %14105 = vst [vmem:[#allocation11_spill] sm:$0xff] %v12311_v21  ;;  %v4514_v25 = vmul.f32 %v12127_v5, %v12311_v21  ;;  %v4452_v32 = vpop.f32.mrf.mxu0  ;;  %v12332_v14 = vpack.c.bf16 %v12323_v23, %v12320_v40  ;;  %v12347_v24 = vpack.c.bf16 %v12296_v59, %v12305_v18  ;;  %v4619_v56 = vrot.slane %v12305_v18, 7 }
 0x407   :  { %14108 = vst [vmem:[#allocation40_spill] sm:$0xff] %v12315_v49  ;;  %v4512_v28 = vmul.f32 %v12127_v5, %v12315_v49  ;;  %v12343_v16 = vadd.f32 %v4481_v34, %v14109_v57  ;;  %v4479_v47 = vadd.f32 %v4452_v32, %v4346_v52  ;;  %v12349_v42 = vmax.f32 %v4531_v27, 0.0  ;;  %9359 = vmatpush3.bf16.msra.mxu0 %v9729_v26  ;;  %v14113_v27 = vld [vmem:[#allocation14_spill] sm:$0xff] }
 0x408   :  { %v4534_v46 = vadd.f32 %v12148_v45, %v4514_v25  ;;  %9324 = vmatprep.mubr.msk.bf16.mxu0 %vm1665_vm4, %v12332_v14  ;;  %v9295_v2 = vpop.f32.mrf.mxu0  ;;  %9305 = vmatmul.mubr.msk.bf16.gmra.mxu1 %vm1665_vm4, %v12347_v24  ;;  %v4347_v9 = vadd.f32 %v4322_v51, %v12245_v39  ;;  %v12368_v3 = vsel %vm108_vm2, 0.0, %v4619_v56  ;;  %v12381_v39 = vsel %vm108_vm2, 0.0, %v4620_v4  ;;  %v14115_v56 = vld [vmem:[#allocation26_spill] sm:$0xff]  ;;  %v14116_v4 = vld [vmem:[#allocation33_spill] sm:$0xff] }
 0x409   :  { %14110 = vst [vmem:[#allocation34_spill] sm:$0xff] %v12343_v16  ;;  %v4532_v55 = vadd.f32 %v12148_v45, %v4512_v28  ;;  %v4517_v52 = vmul.f32 %v12127_v5, %v12343_v16  ;;  %v12360_v11 = vadd.f32 %v4479_v47, %v14111_v58  ;;  %v4482_v6 = vadd.f32 %v9295_v2, %v4349_v19 }
 0x40a   :  { %v12365_v43 = vmax.f32 %v4534_v46, 0.0  ;;  %v4455_v8 = vpop.f32.mrf.mxu0  ;;  %v4710_v26 = vpack.c.bf16 %v12349_v42, %v14095_v37  ;;  %9396 = vmatprep.subr.bf16.mxu0 %v12338_v1  ;;  %v12386_v51 = vpack.c.bf16 %v12381_v39, %v12368_v3  ;;  %v4621_v28 = vrot.slane %v12349_v42, 7 }
 0x40b   :  { %14112 = vst [vmem:[#allocation41_spill] sm:$0xff] %v12360_v11  ;;  %v12373_v17 = vmax.f32 %v4532_v55, 0.0  ;;  %v4515_v34 = vmul.f32 %v12127_v5, %v12360_v11  ;;  %v12378_v19 = vadd.f32 %v4482_v6, %v14113_v27  ;;  %v4537_v25 = vadd.f32 %v12148_v45, %v4517_v52  ;;  %v14117_v52 = vld [vmem:[#allocation16_spill] sm:$0xff] }
 0x40c   :  { %v4480_v32 = vadd.f32 %v4455_v8, %v4347_v9  ;;  %9308 = vmatprep.mubr.msk.bf16.mxu1 %vm1665_vm4, %v4710_v26  ;;  %v4623_v2 = vrot.slane %v12325_v22, 7  ;;  %v4341_v55 = vadd.f32 %v14116_v4, %v14115_v56  ;;  %9325 = vmatmul.mubr.msk.bf16.gmra.mxu0 %vm1665_vm4, %v12386_v51  ;;  %v12406_v6 = vsel %vm108_vm2, 0.0, %v4621_v28 }
 0x40d   :  { %14114 = vst [vmem:[#allocation39_spill] sm:$0xff] %v12378_v19  ;;  %v4535_v57 = vadd.f32 %v12148_v45, %v4515_v34  ;;  %v4518_v47 = vmul.f32 %v12127_v5, %v12378_v19  ;;  %v12395_v46 = vpack.c.bf16 %v12325_v22, %v12373_v17  ;;  %v4622_v9 = vrot.slane %v12373_v17, 7 }
 0x40e   :  { %v12401_v58 = vadd.f32 %v4480_v32, %v14117_v52  ;;  %v4702_v34 = vpack.c.bf16 %v12406_v6, %v14100_v54  ;;  %v4624_v27 = vrot.slane %v12365_v43, 7  ;;  %v4474_v32 = vadd.f32 %v12215_v41, %v4341_v55 }
 0x40f   :  { %v12409_v8 = vmax.f32 %v4535_v57, 0.0  ;;  %v4538_v26 = vadd.f32 %v12148_v45, %v4518_v47  ;;  %v12416_v56 = vmax.f32 %v4537_v25, 0.0  ;;  %v12421_v28 = vsel %vm108_vm2, 0.0, %v4622_v9 }
 0x410   :  { %14118 = vst [vmem:[#allocation30_spill] sm:$0xff] %v12401_v58  ;;  %v4516_v4 = vmul.f32 %v12127_v5, %v12401_v58  ;;  %9328 = vmatprep.mubr.msk.bf16.mxu0 %vm1665_vm4, %v4702_v34  ;;  %9309 = vmatmul.mubr.msk.bf16.gmra.mxu1 %vm1665_vm4, %v12395_v46  ;;  %v12427_v57 = vsel %vm108_vm2, 0.0, %v4623_v2  ;;  %v4656_v25 = vrot.slane %v12206_v63, 1  ;;  %v12443_v2 = vsel %vm108_vm2, 0.0, %v4624_v27 }
 0x411   :  { %v12431_v47 = vpack.c.bf16 %v12409_v8, %v12365_v43  ;;  %v4625_v41 = vrot.slane %v12409_v8, 7  ;;  %v12438_v52 = vpack.c.bf16 %v12427_v57, %v12421_v28  ;;  %v4627_v16 = vrot.slane %v12416_v56, 7 }
 0x412   :  { %v4536_v55 = vadd.f32 %v12148_v45, %v4516_v4  ;;  %v14119_v4 = vld [vmem:[#allocation25_spill] sm:$0xff]  ;;  %v12458_v19 = vsel %vm154_vm3, %v4656_v25, 0.0  ;;  %v4660_v21 = vrot.slane %v12277_v61, 1  ;;  %v5153_v35 = vpack.c.bf16 %v12368_v3, %v12323_v23 }
 0x413   :  { %9312 = vmatprep.mubr.msk.bf16.mxu1 %vm1665_vm4, %v12431_v47  ;;  %v12446_v9 = vsel %vm108_vm2, 0.0, %v4625_v41  ;;  %v12455_v11 = vadd.f32 %v4474_v32, %v14119_v4  ;;  %v4657_v32 = vrot.slane %v12231_v10, 1  ;;  %v12481_v60 = vsel %vm108_vm2, 0.0, %v4627_v16 }
 0x414   :  { %v12448_v34 = vmax.f32 %v4536_v55, 0.0  ;;  %v12452_v58 = vpack.c.bf16 %v12446_v9, %v12443_v2  ;;  %9329 = vmatmul.mubr.msk.bf16.gmra.mxu0 %vm1665_vm4, %v12438_v52  ;;  %v14121_v55 = vld [vmem:[#allocation3_spill] sm:$0xff]  ;;  %v5151_v16 = vpack.c.bf16 %v12266_v48, %v12242_v31  ;;  %v9731_v31 = vld [vmem:[%s13806_s5 + $0x160] sm:$0xff]   ;;  %v4661_v48 = vrot.slane %v12305_v18, 1 }
 0x415   :  { %14120 = vst [vmem:[#allocation13_spill] sm:$0xff] %v12455_v11  ;;  %v4980_v25 = vpack.c.bf16 %v12458_v19, %v14121_v55  ;;  %v4510_v49 = vmul.f32 %v12127_v5, %v12455_v11  ;;  %v12492_v5 = vsel %vm154_vm3, %v4657_v32, 0.0  ;;  %v12498_v11 = vsel %vm154_vm3, %v4660_v21, 0.0 }
 0x416   :  { %v12465_v27 = vpack.c.bf16 %v12416_v56, %v12448_v34  ;;  %v4626_v41 = vrot.slane %v12448_v34, 7  ;;  %9332 = vmatprep.mubr.msk.bf16.mxu0 %vm1665_vm4, %v12452_v58  ;;  %v12509_v32 = vpack.c.bf16 %v12501_v38, %v12492_v5  ;;  %v4664_v3 = vrot.slane %v12373_v17, 1 }
 0x417   :  { %v4530_v30 = vadd.f32 %v12148_v45, %v4510_v49  ;;  %v4663_v49 = vrot.slane %v12349_v42, 1  ;;  %v5155_v36 = vpack.c.bf16 %v12421_v28, %v12406_v6  ;;  %v4669_v6 = vrot.slane %v12416_v56, 1 }
 0x418   :  { %v12474_v4 = vsel %vm108_vm2, 0.0, %v4626_v41  ;;  %9313 = vmatmul.mubr.msk.bf16.gmra.mxu1 %vm1665_vm4, %v12465_v27  ;;  %v4659_v41 = vrot.slane %v12236_v50, 1 }
 0x419   :  { %9340 = vmatprep.mubr.msk.bf16.mxu1 %vm1665_vm4, %v4980_v25  ;;  %v12488_v20 = vpack.c.bf16 %v12481_v60, %v12474_v4  ;;  %v12503_v25 = vmax.f32 %v4538_v26, 0.0  ;;  %v12523_v21 = vmax.f32 %v4530_v30, 0.0  ;;  %v4662_v26 = vrot.slane %v12296_v59, 1 }
 0x41a   :  { %v12513_v45 = vsel %vm154_vm3, %v4659_v41, 0.0  ;;  %v5152_v30 = vpack.c.bf16 %v12320_v40, %v12263_v15  ;;  %v12548_v41 = vsel %vm154_vm3, %v4663_v49, 0.0  ;;  %v4666_v49 = vrot.slane %v12365_v43, 1 }
 0x41b   :  { %v12520_v13 = vpack.c.bf16 %v12498_v11, %v12513_v45  ;;  %v5139_v53 = vrot.slane %v12523_v21, 7  ;;  %v12553_v15 = vsel %vm154_vm3, %v4662_v26, 0.0  ;;  %v4984_v23 = vpack.c.bf16 %v12548_v41, %v14121_v55 }
 0x41c   :  { %9333 = vmatmul.mubr.msk.bf16.gmra.mxu0 %vm1665_vm4, %v12488_v20 }
 0x41d   :  { %9360 = vmatprep.mubr.msk.bf16.mxu0 %vm1665_vm4, %v5151_v16  ;;  %v12537_v16 = vsel %vm154_vm3, %v4661_v48, 0.0  ;;  %v9736_v48 = vld [vmem:[%s13806_s5 + $0x198] sm:$0xff]  }
 0x41e   :  { %v12558_v40 = vpack.c.bf16 %v12553_v15, %v12537_v16 }
 0x420   :  { %9341 = vmatmul.mubr.msk.bf16.vlgmr.msra.gmra.mxu1 %vm1665_vm4, %v12509_v32 }
 0x421   :  { %9344 = vmatprep.mubr.msk.bf16.mxu1 %vm1665_vm4, %v12520_v13  ;;  %9377 = vmatpush3.bf16.msra.mxu1 %v12294_v12  ;;  %v9734_v12 = vld [vmem:[%s13806_s5 + $0x188] sm:$0xff]  }
 0x422   :  { %9378 = vmatprep.subr.bf16.mxu1 %v9731_v31 }
 0x424   :  { %9361 = vmatmul.mubr.msk.bf16.vlgmr.msra.gmra.mxu0 %vm1665_vm4, %v5152_v30  ;;  %v4692_v30 = vsel %vm154_vm3, %v4664_v3, 0.0  ;;  %v4668_v3 = vrot.slane %v12448_v34, 1 }
 0x425   :  { %9379 = vmatpush3.bf16.msra.mxu1 %v9731_v31  ;;  %9364 = vmatprep.mubr.msk.bf16.mxu0 %vm1665_vm4, %v5153_v35  ;;  %v12570_v35 = vsel %vm108_vm2, 0.0, %v5139_v53  ;;  %v4667_v31 = vrot.slane %v12409_v8, 1 }
 0x426   :  { %9397 = vmatpush3.bf16.msra.mxu0 %v12338_v1  ;;  %9416 = vmatprep.subr.bf16.mxu1 %v9734_v12  ;;  %v4665_v1 = vrot.slane %v12325_v22, 1  ;;  %v5154_v26 = vpack.c.bf16 %v12570_v35, %v12381_v39  ;;  %v4696_v28 = vsel %vm154_vm3, %v4668_v3, 0.0 }
 0x427   :  { %9398 = vmatprep.subr.bf16.mxu0 %v9733_v7  ;;  %v12582_v53 = vsel %vm154_vm3, %v4667_v31, 0.0  ;;  %v5157_v31 = vpack.c.bf16 %v12474_v4, %v12446_v9  ;;  %v5465_v9 = vpack.c.bf16 %v12492_v5, %v12458_v19  ;;  %v5309_v4 = vpack.c.bf16 %v12236_v50, %v12208_v44  ;;  %v9737_v44 = vld [vmem:[%s13806_s5 + $0x190] sm:$0xff]   ;;  %v9738_v50 = vld [vmem:[%s13806_s5 + $0x1a8] sm:$0xff]  }
 0x428   :  { %9345 = vmatmul.mubr.msk.bf16.gmra.mxu1 %vm1665_vm4, %v12558_v40  ;;  %v5312_v19 = vpack.c.bf16 %v12373_v17, %v12349_v42  ;;  %v5314_v42 = vpack.c.bf16 %v12448_v34, %v12409_v8  ;;  %v9739_v8 = vld [vmem:[%s13806_s5 + $0x1a0] sm:$0xff]  }
 0x429   :  { %9348 = vmatprep.mubr.msk.bf16.mxu1 %vm1665_vm4, %v4984_v23  ;;  %v4693_v23 = vsel %vm154_vm3, %v4665_v1, 0.0  ;;  %v5140_v1 = vrot.slane %v12503_v25, 7 }
 0x42a   :  { %9399 = vmatpush3.bf16.msra.mxu0 %v9733_v7  ;;  %v12587_v33 = vpack.c.bf16 %v4693_v23, %v4692_v30  ;;  %v4694_v7 = vsel %vm154_vm3, %v4666_v49, 0.0  ;;  %v4697_v49 = vsel %vm154_vm3, %v4669_v6, 0.0 }
 0x42b   :  { %9436 = vmatprep.subr.bf16.mxu0 %v9736_v48  ;;  %v12591_v39 = vpack.c.bf16 %v12582_v53, %v4694_v7  ;;  %v5470_v17 = vpack.c.bf16 %v4694_v7, %v4693_v23 }
 0x42c   :  { %9365 = vmatmul.mubr.msk.bf16.gmra.mxu0 %vm1665_vm4, %v5154_v26  ;;  %v12608_v26 = vpack.c.bf16 %v4697_v49, %v4696_v28 }
 0x42d   :  { %9368 = vmatprep.mubr.msk.bf16.mxu0 %vm1665_vm4, %v5155_v36  ;;  %14122 = vst [vmem:[#allocation36_spill] sm:$0xff] %v12591_v39  ;;  %v5156_v36 = vpack.c.bf16 %v12443_v2, %v12427_v57  ;;  %v12615_v57 = vsel %vm108_vm2, 0.0, %v5140_v1 }
 0x42e   :  { %v5158_v2 = vpack.c.bf16 %v12615_v57, %v12481_v60  ;;  %v5466_v60 = vpack.c.bf16 %v12513_v45, %v12501_v38  ;;  %v5311_v38 = vpack.c.bf16 %v12523_v21, %v12296_v59  ;;  %v5469_v45 = vpack.c.bf16 %v4692_v30, %v12548_v41 }
 0x42f   :  { %v5313_v59 = vpack.c.bf16 %v12365_v43, %v12325_v22  ;;  %v14123_v41 = vpack.c.bf16 %v12503_v25, %v12416_v56 }
 0x430   :  { %9349 = vmatmul.mubr.msk.bf16.gmra.mxu1 %vm1665_vm4, %v12587_v33 }
 0x431   :  { %9352 = vmatprep.mubr.msk.bf16.mxu1 %vm1665_vm4, %v12591_v39  ;;  %v5308_v39 = vpack.c.bf16 %v12231_v10, %v12206_v63  ;;  %v9735_v63 = vld [vmem:[%s13806_s5 + $0x180] sm:$0xff]   ;;  %v5310_v10 = vpack.c.bf16 %v12305_v18, %v12277_v61  ;;  %v5467_v61 = vpack.c.bf16 %v12537_v16, %v12498_v11  ;;  %v5145_v18 = vrot.slane %v12523_v21, 1 }
 0x432   :  { %v5471_v16 = vpack.c.bf16 %v4696_v28, %v12582_v53 }
 0x433   :  { %v5149_v11 = vsel %vm154_vm3, %v5145_v18, 0.0 }
 0x434   :  { %9369 = vmatmul.mubr.msk.bf16.gmra.mxu0 %vm1665_vm4, %v5156_v36  ;;  %v5468_v5 = vpack.c.bf16 %v5149_v11, %v12553_v15 }
 0x435   :  { %9372 = vmatprep.mubr.msk.bf16.mxu0 %vm1665_vm4, %v5157_v31 }
 0x438   :  { %9353 = vmatmul.mubr.msk.bf16.gmra.mxu1 %vm1665_vm4, %v12608_v26 }
 0x439   :  { %9380 = vmatprep.mubr.msk.bf16.mxu1 %vm1665_vm4, %v5308_v39 }
 0x43c   :  { %9373 = vmatmul.mubr.msk.bf16.gmra.mxu0 %vm1665_vm4, %v5158_v2 }
 0x43d   :  { %9400 = vmatprep.mubr.msk.bf16.mxu0 %vm1665_vm4, %v5465_v9 }
 0x440   :  { %9381 = vmatmul.mubr.msk.bf16.vlgmr.msra.gmra.mxu1 %vm1665_vm4, %v5309_v4 }
 0x441   :  { %9384 = vmatprep.mubr.msk.bf16.mxu1 %vm1665_vm4, %v5310_v10  ;;  %9417 = vmatpush3.bf16.msra.mxu1 %v9734_v12  ;;  %v5146_v12 = vrot.slane %v12503_v25, 1 }
 0x442   :  { %9418 = vmatprep.subr.bf16.mxu1 %v9735_v63 }
 0x443   :  { %v5150_v22 = vsel %vm154_vm3, %v5146_v12, 0.0 }
 0x444   :  { %9401 = vmatmul.mubr.msk.bf16.vlgmr.msra.gmra.mxu0 %vm1665_vm4, %v5466_v60  ;;  %v5472_v43 = vpack.c.bf16 %v5150_v22, %v4697_v49 }
 0x445   :  { %9419 = vmatpush3.bf16.msra.mxu1 %v9735_v63  ;;  %9404 = vmatprep.mubr.msk.bf16.mxu0 %vm1665_vm4, %v5467_v61  ;;  %v12753_v61 = vld [vmem:[%s13806_s5 + $0x1d8] sm:$0xff]  }
 0x446   :  { %9437 = vmatpush3.bf16.msra.mxu0 %v9736_v48  ;;  %9456 = vmatprep.subr.bf16.mxu1 %v9738_v50  ;;  %v9741_v48 = vld [vmem:[%s13806_s5 + $0x1c0] sm:$0xff]   ;;  %14125 = vst [vmem:[#allocation21_spill] sm:$0xff] %v12753_v61 }
 0x447   :  { %9438 = vmatprep.subr.bf16.mxu0 %v9737_v44 }
 0x448   :  { %9385 = vmatmul.mubr.msk.bf16.gmra.mxu1 %vm1665_vm4, %v5311_v38 }
 0x449   :  { %9388 = vmatprep.mubr.msk.bf16.mxu1 %vm1665_vm4, %v5312_v19 }
 0x44a   :  { %9439 = vmatpush3.bf16.msra.mxu0 %v9737_v44 }
 0x44c   :  { %9405 = vmatmul.mubr.msk.bf16.gmra.mxu0 %vm1665_vm4, %v5468_v5 }
 0x44d   :  { %9408 = vmatprep.mubr.msk.bf16.mxu0 %vm1665_vm4, %v5469_v45 }
 0x450   :  { %9389 = vmatmul.mubr.msk.bf16.gmra.mxu1 %vm1665_vm4, %v5313_v59 }
 0x451   :  { %9392 = vmatprep.mubr.msk.bf16.mxu1 %vm1665_vm4, %v5314_v42 }
 0x454   :  { %9409 = vmatmul.mubr.msk.bf16.gmra.mxu0 %vm1665_vm4, %v5470_v17 }
 0x455   :  { %9412 = vmatprep.mubr.msk.bf16.mxu0 %vm1665_vm4, %v5471_v16 }
 0x458   :  { %9393 = vmatmul.mubr.msk.bf16.gmra.mxu1 %vm1665_vm4, %v14123_v41 }
 0x459   :  { %9420 = vmatprep.mubr.msk.bf16.mxu1 %vm1665_vm4, %v12275_v62  ;;  %v5755_v62 = vpack.c.bf16 %v14095_v37, %v12523_v21 }
 0x45c   :  { %9413 = vmatmul.mubr.msk.bf16.gmra.mxu0 %vm1665_vm4, %v5472_v43 }
 0x45d   :  { %9440 = vmatprep.mubr.msk.bf16.mxu0 %vm1665_vm4, %v12250_v0  ;;  %v5622_v0 = vpack.c.bf16 %v14100_v54, %v12570_v35 }
 0x460   :  { %9421 = vmatmul.mubr.msk.bf16.vlgmr.msra.gmra.mxu1 %vm1665_vm4, %v12332_v14  ;;  %v5756_v14 = vpack.c.bf16 %v14095_v37, %v12503_v25 }
 0x461   :  { %9424 = vmatprep.mubr.msk.bf16.mxu1 %vm1665_vm4, %v12386_v51  ;;  %9457 = vmatpush3.bf16.msra.mxu1 %v9738_v50  ;;  %v5889_v51 = vpack.c.bf16 %v14121_v55, %v5150_v22  ;;  %v9743_v50 = vld [vmem:[%s13806_s5 + $0x1b0] sm:$0xff]  }
 0x462   :  { %9458 = vmatprep.subr.bf16.mxu1 %v9739_v8 }
 0x464   :  { %9441 = vmatmul.mubr.msk.bf16.vlgmr.msra.gmra.mxu0 %vm1665_vm4, %v12302_v29  ;;  %v5623_v29 = vpack.c.bf16 %v14100_v54, %v12615_v57 }
 0x465   :  { %9459 = vmatpush3.bf16.msra.mxu1 %v9739_v8  ;;  %9444 = vmatprep.mubr.msk.bf16.mxu0 %vm1665_vm4, %v12347_v24  ;;  %v14124_v24 = vld [vmem:[#allocation36_spill] sm:$0xff] }
 0x468   :  { %9425 = vmatmul.mubr.msk.bf16.gmra.mxu1 %vm1665_vm4, %v5622_v0 }
 0x469   :  { %9428 = vmatprep.mubr.msk.bf16.mxu1 %vm1665_vm4, %v12438_v52 }
 0x46c   :  { %9445 = vmatmul.mubr.msk.bf16.gmra.mxu0 %vm1665_vm4, %v5755_v62 }
 0x46d   :  { %9448 = vmatprep.mubr.msk.bf16.mxu0 %vm1665_vm4, %v12395_v46  ;;  %v9740_v46 = vld [vmem:[%s13806_s5 + $0x1c8] sm:$0xff]  }
 0x46e   :  { %9476 = vmatprep.subr.bf16.mxu0 %v9740_v46 }
 0x46f   :  { %9477 = vmatpush3.bf16.msra.mxu0 %v9740_v46 }
 0x470   :  { %9429 = vmatmul.mubr.msk.bf16.gmra.mxu1 %vm1665_vm4, %v12452_v58  ;;  %9478 = vmatprep.subr.bf16.mxu0 %v9741_v48 }
 0x471   :  { %9432 = vmatprep.mubr.msk.bf16.mxu1 %vm1665_vm4, %v12488_v20  ;;  %v5888_v20 = vpack.c.bf16 %v14121_v55, %v5149_v11 }
 0x473   :  { %9479 = vmatpush3.bf16.msra.mxu0 %v9741_v48 }
 0x474   :  { %9449 = vmatmul.mubr.msk.bf16.gmra.mxu0 %vm1665_vm4, %v12431_v47  ;;  %9516 = vmatprep.subr.bf16.mxu0 %v12753_v61 }
 0x475   :  { %9452 = vmatprep.mubr.msk.bf16.mxu0 %vm1665_vm4, %v12465_v27 }
 0x478   :  { %9433 = vmatmul.mubr.msk.bf16.gmra.mxu1 %vm1665_vm4, %v5623_v29 }
 0x479   :  { %9460 = vmatprep.mubr.msk.bf16.mxu1 %vm1665_vm4, %v12509_v32 }
 0x47c   :  { %9453 = vmatmul.mubr.msk.bf16.gmra.mxu0 %vm1665_vm4, %v5756_v14 }
 0x480   :  { %9461 = vmatmul.mubr.msk.bf16.vlgmr.msra.gmra.mxu1 %vm1665_vm4, %v12520_v13 }
 0x481   :  { %9464 = vmatprep.mubr.msk.bf16.mxu1 %vm1665_vm4, %v12558_v40 }
 0x488   :  { %9465 = vmatmul.mubr.msk.bf16.gmra.mxu1 %vm1665_vm4, %v5888_v20 }
 0x489   :  { %9468 = vmatprep.mubr.msk.bf16.mxu1 %vm1665_vm4, %v12587_v33 }
 0x490   :  { %9469 = vmatmul.mubr.msk.bf16.gmra.mxu1 %vm1665_vm4, %v14124_v24 }
 0x491   :  { %9472 = vmatprep.mubr.msk.bf16.mxu1 %vm1665_vm4, %v12608_v26  ;;  %v9742_v26 = vld [vmem:[%s13806_s5 + $0x1b8] sm:$0xff]  }
 0x492   :  { %9496 = vmatprep.subr.bf16.mxu1 %v9742_v26 }
 0x493   :  { %9497 = vmatpush3.bf16.msra.mxu1 %v9742_v26 }
 0x494   :  { %9498 = vmatprep.subr.bf16.mxu1 %v9743_v50 }
 0x497   :  { %9499 = vmatpush3.bf16.msra.mxu1 %v9743_v50 }
 0x498   :  { %9473 = vmatmul.mubr.msk.bf16.gmra.mxu1 %vm1665_vm4, %v5889_v51 }
 0x4bf   :  { %v9302_v58 = vpop.f32.mrf.mxu1 }
 0x4c1   :  { %v4784_v56 = vpop.f32.mrf.mxu1 }
 0x4c2   :  { %v9322_v47 = vpop.f32.mrf.mxu0 }
 0x4c3   :  { %v4926_v33 = vadd.f32 %v9322_v47, %v9302_v58  ;;  %v9303_v52 = vpop.f32.mrf.mxu1 }
 0x4c4   :  { %v4917_v34 = vpop.f32.mrf.mxu0 }
 0x4c5   :  { %v4918_v27 = vadd.f32 %v4917_v34, %v4784_v56  ;;  %v12731_v25 = vpop.f32.mrf.mxu1 }
 0x4c6   :  { %v9323_v32 = vpop.f32.mrf.mxu0 }
 0x4c7   :  { %v4929_v13 = vadd.f32 %v9323_v32, %v9303_v52 }
 0x4c8   :  { %v9306_v21 = vpop.f32.mrf.mxu1  ;;  %v12733_v15 = vpop.f32.mrf.mxu0 }
 0x4ca   :  { %v4800_v40 = vpop.f32.mrf.mxu1 }
 0x4cc   :  { %v9307_v35 = vpop.f32.mrf.mxu1  ;;  %v9326_v30 = vpop.f32.mrf.mxu0 }
 0x4cd   :  { %v4942_v53 = vadd.f32 %v9326_v30, %v9306_v21  ;;  %v12787_v21 = vld [vmem:[%s13806_s5 + $0x1e8] sm:$0xff]  }
 0x4ce   :  { %v12738_v23 = vpop.f32.mrf.mxu1  ;;  %v4933_v7 = vpop.f32.mrf.mxu0  ;;  %14126 = vst [vmem:[#allocation6_spill] sm:$0xff] %v12787_v21  ;;  %9536 = vmatprep.subr.bf16.mxu1 %v12787_v21 }
 0x4cf   :  { %v4934_v39 = vadd.f32 %v4933_v7, %v4800_v40 }
 0x4d0   :  { %v9310_v3 = vpop.f32.mrf.mxu1  ;;  %v9327_v6 = vpop.f32.mrf.mxu0 }
 0x4d1   :  { %v4945_v36 = vadd.f32 %v9327_v6, %v9307_v35 }
 0x4d2   :  { %v4816_v28 = vpop.f32.mrf.mxu1  ;;  %v12740_v31 = vpop.f32.mrf.mxu0 }
 0x4d4   :  { %v9311_v1 = vpop.f32.mrf.mxu1  ;;  %v9330_v49 = vpop.f32.mrf.mxu0 }
 0x4d5   :  { %v4958_v57 = vadd.f32 %v9330_v49, %v9310_v3 }
 0x4d6   :  { %v12745_v2 = vpop.f32.mrf.mxu1  ;;  %v4949_v9 = vpop.f32.mrf.mxu0 }
 0x4d7   :  { %v4950_v4 = vadd.f32 %v4949_v9, %v4816_v28 }
 0x4d8   :  { %v9314_v63 = vpop.f32.mrf.mxu1  ;;  %v9331_v10 = vpop.f32.mrf.mxu0 }
 0x4d9   :  { %v4961_v60 = vadd.f32 %v9331_v10, %v9311_v1 }
 0x4da   :  { %v4832_v44 = vpop.f32.mrf.mxu1  ;;  %v12755_v18 = vpop.f32.mrf.mxu0 }
 0x4dc   :  { %v9315_v38 = vpop.f32.mrf.mxu1  ;;  %v9334_v19 = vpop.f32.mrf.mxu0 }
 0x4dd   :  { %v4974_v11 = vadd.f32 %v9334_v19, %v9314_v63 }
 0x4de   :  { %v12758_v5 = vpop.f32.mrf.mxu1  ;;  %v4965_v45 = vpop.f32.mrf.mxu0 }
 0x4df   :  { %v4966_v59 = vadd.f32 %v4965_v45, %v4832_v44 }
 0x4e0   :  { %v9342_v42 = vpop.f32.mrf.mxu1  ;;  %v9335_v17 = vpop.f32.mrf.mxu0 }
 0x4e1   :  { %v12760_v16 = vadd.f32 %v9342_v42, %v4926_v33  ;;  %v4977_v12 = vadd.f32 %v9335_v17, %v9315_v38 }
 0x4e2   :  { %v5058_v41 = vpop.f32.mrf.mxu1  ;;  %v12762_v22 = vpop.f32.mrf.mxu0 }
 0x4e3   :  { %v12764_v43 = vadd.f32 %v5058_v41, %v4918_v27 }
 0x4e4   :  { %v9343_v8 = vpop.f32.mrf.mxu1  ;;  %v12766_v0 = vpop.f32.mrf.mxu0 }
 0x4e5   :  { %v12768_v62 = vadd.f32 %v9343_v8, %v4929_v13 }
 0x4e6   :  { %v12770_v29 = vpop.f32.mrf.mxu1  ;;  %v12772_v14 = vpop.f32.mrf.mxu0 }
 0x4e8   :  { %v9346_v20 = vpop.f32.mrf.mxu1  ;;  %v12774_v24 = vpop.f32.mrf.mxu0 }
 0x4e9   :  { %v5127_v51 = vadd.f32 %v9346_v20, %v4942_v53 }
 0x4ea   :  { %v5074_v46 = vpop.f32.mrf.mxu1  ;;  %v12776_v58 = vpop.f32.mrf.mxu0 }
 0x4eb   :  { %v12778_v56 = vadd.f32 %v5074_v46, %v4934_v39 }
 0x4ec   :  { %v9347_v47 = vpop.f32.mrf.mxu1  ;;  %v9366_v33 = vpop.f32.mrf.mxu0 }
 0x4ed   :  { %v5128_v52 = vadd.f32 %v9347_v47, %v4945_v36  ;;  %v5298_v34 = vadd.f32 %v9366_v33, %v5127_v51 }
 0x4ee   :  { %v12780_v27 = vpop.f32.mrf.mxu1  ;;  %v12782_v32 = vpop.f32.mrf.mxu0 }
 0x4f0   :  { %v9350_v13 = vpop.f32.mrf.mxu1  ;;  %v9367_v40 = vpop.f32.mrf.mxu0 }
 0x4f1   :  { %v5131_v48 = vadd.f32 %v9350_v13, %v4958_v57  ;;  %v5299_v35 = vadd.f32 %v9367_v40, %v5128_v52 }
 0x4f2   :  { %v5090_v30 = vpop.f32.mrf.mxu1  ;;  %v12790_v53 = vpop.f32.mrf.mxu0 }
 0x4f3   :  { %v12792_v7 = vadd.f32 %v5090_v30, %v4950_v4 }
 0x4f4   :  { %v9351_v39 = vpop.f32.mrf.mxu1  ;;  %v9370_v3 = vpop.f32.mrf.mxu0 }
 0x4f5   :  { %v12794_v6 = vadd.f32 %v9351_v39, %v4961_v60  ;;  %v5302_v36 = vadd.f32 %v9370_v3, %v5131_v48 }
 0x4f6   :  { %v12796_v28 = vpop.f32.mrf.mxu1  ;;  %v12798_v1 = vpop.f32.mrf.mxu0 }
 0x4f8   :  { %v9354_v49 = vpop.f32.mrf.mxu1  ;;  %v12800_v26 = vpop.f32.mrf.mxu0 }
 0x4f9   :  { %v5135_v57 = vadd.f32 %v9354_v49, %v4974_v11 }
 0x4fa   :  { %v5106_v9 = vpop.f32.mrf.mxu1  ;;  %v12802_v63 = vpop.f32.mrf.mxu0 }
 0x4fb   :  { %v12804_v10 = vadd.f32 %v5106_v9, %v4966_v59 }
 0x4fc   :  { %v9355_v4 = vpop.f32.mrf.mxu1  ;;  %v9374_v44 = vpop.f32.mrf.mxu0 }
 0x4fd   :  { %v5136_v50 = vadd.f32 %v9355_v4, %v4977_v12  ;;  %v5306_v38 = vadd.f32 %v9374_v44, %v5135_v57 }
 0x4fe   :  { %v12806_v60 = vpop.f32.mrf.mxu1  ;;  %v12808_v19 = vpop.f32.mrf.mxu0 }
 0x500   :  { %v12810_v45 = vpop.f32.mrf.mxu1  ;;  %v9375_v42 = vpop.f32.mrf.mxu0 }
 0x501   :  { %v5307_v17 = vadd.f32 %v9375_v42, %v5136_v50 }
 0x502   :  { %v12812_v41 = vpop.f32.mrf.mxu1  ;;  %v12814_v11 = vpop.f32.mrf.mxu0 }
 0x504   :  { %v12816_v8 = vpop.f32.mrf.mxu1  ;;  %v12818_v59 = vpop.f32.mrf.mxu0 }
 0x506   :  { %v12820_v20 = vpop.f32.mrf.mxu1  ;;  %v12822_v12 = vpop.f32.mrf.mxu0 }
 0x508   :  { %v9386_v51 = vpop.f32.mrf.mxu1  ;;  %v12824_v46 = vpop.f32.mrf.mxu0 }
 0x509   :  { %v12826_v47 = vadd.f32 %v9386_v51, %v5298_v34 }
 0x50a   :  { %v12828_v33 = vpop.f32.mrf.mxu1  ;;  %v12830_v52 = vpop.f32.mrf.mxu0 }
 0x50c   :  { %v9387_v13 = vpop.f32.mrf.mxu1  ;;  %v12832_v40 = vpop.f32.mrf.mxu0 }
 0x50d   :  { %v5456_v48 = vadd.f32 %v9387_v13, %v5299_v35 }
 0x50e   :  { %v12834_v30 = vpop.f32.mrf.mxu1  ;;  %v12836_v39 = vpop.f32.mrf.mxu0 }
 0x510   :  { %v9390_v3 = vpop.f32.mrf.mxu1  ;;  %v9407_v49 = vpop.f32.mrf.mxu0 }
 0x511   :  { %v12838_v57 = vadd.f32 %v9390_v3, %v5302_v36  ;;  %v5613_v9 = vadd.f32 %v9407_v49, %v5456_v48 }
 0x512   :  { %v12840_v4 = vpop.f32.mrf.mxu1  ;;  %v12842_v34 = vpop.f32.mrf.mxu0 }
 0x513   :  { %14127 = vst [vmem:[#allocation42_spill] sm:$0xff] %v12838_v57  ;;  %14128 = vst [vmem:[#allocation18_spill] sm:$0xff] %v12842_v34 }
 0x514   :  { %v12844_v44 = vpop.f32.mrf.mxu1  ;;  %v12846_v50 = vpop.f32.mrf.mxu0 }
 0x515   :  { %14129 = vst [vmem:[#allocation32_spill] sm:$0xff] %v12846_v50 }
 0x516   :  { %v12848_v42 = vpop.f32.mrf.mxu1  ;;  %v12850_v35 = vpop.f32.mrf.mxu0 }
 0x517   :  { %14130 = vst [vmem:[#allocation22_spill] sm:$0xff] %v12848_v42  ;;  %14131 = vst [vmem:[#allocation23_spill] sm:$0xff] %v12850_v35 }
 0x518   :  { %v9394_v51 = vpop.f32.mrf.mxu1  ;;  %v12852_v13 = vpop.f32.mrf.mxu0 }
 0x519   :  { %14132 = vst [vmem:[#allocation7_spill] sm:$0xff] %v12852_v13  ;;  %v12854_v55 = vadd.f32 %v9394_v51, %v5306_v38 }
 0x51a   :  { %v12856_v36 = vpop.f32.mrf.mxu1  ;;  %v12858_v48 = vpop.f32.mrf.mxu0 }
 0x51b   :  { %14133 = vst [vmem:[#allocation8_spill] sm:$0xff] %v12854_v55  ;;  %14134 = vst [vmem:[#allocation37_spill] sm:$0xff] %v12856_v36 }
 0x51c   :  { %14135 = vst [vmem:[#allocation10_spill] sm:$0xff] %v12858_v48  ;;  %v9395_v3 = vpop.f32.mrf.mxu1  ;;  %v12860_v49 = vpop.f32.mrf.mxu0 }
 0x51d   :  { %14136 = vst [vmem:[#allocation15_spill] sm:$0xff] %v12860_v49  ;;  %v5464_v21 = vadd.f32 %v9395_v3, %v5307_v17 }
 0x51e   :  { %v12862_v61 = vpop.f32.mrf.mxu1  ;;  %v12864_v54 = vpop.f32.mrf.mxu0 }
 0x51f   :  { %14137 = vst [vmem:[#allocation4_spill] sm:$0xff] %v12862_v61  ;;  %14138 = vst [vmem:[#allocation17_spill] sm:$0xff] %v12864_v54 }
 0x520   :  { %v9422_v37 = vpop.f32.mrf.mxu1  ;;  %v9415_v42 = vpop.f32.mrf.mxu0 }
 0x521   :  { %v5621_v35 = vadd.f32 %v9415_v42, %v5464_v21 }
 0x522   :  { %v5676_v50 = vpop.f32.mrf.mxu1  ;;  %v12866_v57 = vpop.f32.mrf.mxu0 }
 0x523   :  { %14139 = vst [vmem:[#allocation24_spill] sm:$0xff] %v12866_v57 }
 0x524   :  { %v9423_v38 = vpop.f32.mrf.mxu1  ;;  %v9442_v51 = vpop.f32.mrf.mxu0 }
 0x526   :  { %v12868_v55 = vpop.f32.mrf.mxu1  ;;  %v12870_v13 = vpop.f32.mrf.mxu0 }
 0x528   :  { %v12872_v48 = vpop.f32.mrf.mxu1  ;;  %v12874_v49 = vpop.f32.mrf.mxu0 }
 0x529   :  { %14140 = vst [vmem:[#allocation12_spill] sm:$0xff] %v12872_v48  ;;  %v4921_v48 = vadd.f32 %v12733_v15, %v12731_v25  ;;  %v5295_v25 = vadd.f32 %v12774_v24, %v12768_v62  ;;  %v4969_v62 = vadd.f32 %v12762_v22, %v12758_v5 }
 0x52a   :  { %v12876_v17 = vpop.f32.mrf.mxu1  ;;  %v12878_v3 = vpop.f32.mrf.mxu0 }
 0x52b   :  { %14141 = vst [vmem:[#allocation14_spill] sm:$0xff] %v12876_v17  ;;  %14142 = vst [vmem:[#allocation26_spill] sm:$0xff] %v12878_v3  ;;  %v5294_v17 = vadd.f32 %v12766_v0, %v12760_v16  ;;  %v14147_v16 = vld [vmem:[#allocation31_spill] sm:$0xff]  ;;  %v5134_v5 = vadd.f32 %v12806_v60, %v4969_v62 }
 0x52c   :  { %v9427_v54 = vpop.f32.mrf.mxu1  ;;  %v12880_v61 = vpop.f32.mrf.mxu0  ;;  %v6023_v0 = vsub.s32 3, %v14147_v16  ;;  %v14149_v16 = vld [vmem:[#allocation42_spill] sm:$0xff] }
 0x52d   :  { %14143 = vst [vmem:[#allocation33_spill] sm:$0xff] %v12880_v61  ;;  %v12882_v21 = vadd.f32 %v9427_v54, %v5613_v9  ;;  %v5292_v54 = vadd.f32 %v12772_v14, %v12764_v43  ;;  %v5122_v9 = vadd.f32 %v12770_v29, %v4921_v48  ;;  %v5452_v48 = vadd.f32 %v12816_v8, %v5295_v25 }
 0x52e   :  { %v12884_v42 = vpop.f32.mrf.mxu1  ;;  %v12888_v36 = vpop.f32.mrf.mxu0 }
 0x52f   :  { %14144 = vst [vmem:[#allocation16_spill] sm:$0xff] %v12882_v21  ;;  %14145 = vst [vmem:[#allocation25_spill] sm:$0xff] %v12888_v36  ;;  %v5451_v21 = vadd.f32 %v12810_v45, %v5294_v17  ;;  %v5449_v15 = vadd.f32 %v12812_v41, %v5292_v54  ;;  %v5293_v29 = vadd.f32 %v12776_v58, %v5122_v9  ;;  %v9764_v58 = vld [vmem:[%s13807_s3] sm:$0xf] }
 0x530   :  { %v12886_v57 = vpop.f32.mrf.mxu1  ;;  %v12902_v61 = vpop.f32.mrf.mxu0  ;;  %v12931_v8 = vrot.slane %v9764_v58, %v6023_v0  ;;  %v14157_v58 = vld [vmem:[#allocation7_spill] sm:$0xff] }
 0x531   :  { %v5608_v45 = vadd.f32 %v12818_v59, %v5451_v21  ;;  %v5450_v41 = vadd.f32 %v12820_v20, %v5293_v29  ;;  %v5296_v59 = vadd.f32 %v12782_v32, %v12778_v56  ;;  %v5300_v20 = vadd.f32 %v12798_v1, %v12792_v7  ;;  %v9765_v7 = vld [vmem:[%s13808_s4] sm:$0xf] }
 0x532   :  { %v12890_v34 = vpop.f32.mrf.mxu1  ;;  %v5303_v56 = vadd.f32 %v12800_v26, %v12794_v6  ;;  %v12954_v1 = vrot.slane %v9765_v7, %v6023_v0  ;;  %v5304_v26 = vadd.f32 %v12808_v19, %v12804_v10  ;;  %v14150_v10 = vld [vmem:[#allocation32_spill] sm:$0xff] }
 0x533   :  { %14146 = vst [vmem:[#allocation36_spill] sm:$0xff] %v12890_v34  ;;  %v4937_v34 = vadd.f32 %v12740_v31, %v12738_v23  ;;  %v12918_v23 = vpop.f32.mrf.mxu0  ;;  %v4953_v31 = vadd.f32 %v12755_v18, %v12745_v2  ;;  %v5453_v32 = vadd.f32 %v12828_v33, %v5296_v59  ;;  %v5607_v60 = vadd.f32 %v12830_v52, %v5450_v41 }
 0x534   :  { %v12896_v3 = vpop.f32.mrf.mxu1  ;;  %v5305_v33 = vadd.f32 %v12814_v11, %v5134_v5  ;;  %v5460_v9 = vadd.f32 %v12844_v44, %v5303_v56  ;;  %v5616_v19 = vadd.f32 %v14150_v10, %v14149_v16  ;;  %v14151_v11 = vld [vmem:[#allocation22_spill] sm:$0xff]  ;;  %v14161_v56 = vld [vmem:[#allocation15_spill] sm:$0xff] }
 0x535   :  { %v5126_v43 = vadd.f32 %v12780_v27, %v4937_v34  ;;  %v5606_v27 = vadd.f32 %v12822_v12, %v5449_v15  ;;  %v5741_v34 = vadd.f32 %v9422_v37, %v5608_v45  ;;  %v5130_v18 = vadd.f32 %v12796_v28, %v4953_v31  ;;  %v12941_v17 = vpop.f32.mrf.mxu0 }
 0x536   :  { %v12906_v36 = vpop.f32.mrf.mxu1  ;;  %v5609_v37 = vadd.f32 %v12824_v46, %v5452_v48  ;;  %v5457_v46 = vadd.f32 %v12840_v4, %v5300_v20  ;;  %v5740_v52 = vadd.f32 %v12868_v55, %v5607_v60  ;;  %v14153_v55 = vld [vmem:[#allocation37_spill] sm:$0xff]  ;;  %v14154_v48 = vld [vmem:[#allocation4_spill] sm:$0xff]  ;;  %v5617_v59 = vadd.f32 %v14157_v58, %v5460_v9  ;;  %v14159_v20 = vld [vmem:[#allocation10_spill] sm:$0xff] }
 0x537   :  { %v5297_v2 = vadd.f32 %v12790_v53, %v5126_v43  ;;  %v5739_v12 = vadd.f32 %v5676_v50, %v5606_v27  ;;  %v5874_v50 = vadd.f32 %v9442_v51, %v5741_v34  ;;  %v5301_v6 = vadd.f32 %v12802_v63, %v5130_v18  ;;  %v5841_v4 = vpop.f32.mrf.mxu0  ;;  %v14148_v63 = vld [vmem:[#allocation18_spill] sm:$0xff]  ;;  %v14164_v9 = vld [vmem:[#allocation33_spill] sm:$0xff] }
 0x538   :  { %v12913_v14 = vpop.f32.mrf.mxu1  ;;  %v5461_v45 = vadd.f32 %v14153_v55, %v5304_v26  ;;  %v5462_v31 = vadd.f32 %v14154_v48, %v5305_v33  ;;  %v14156_v27 = vld [vmem:[#allocation14_spill] sm:$0xff]  ;;  %v14162_v26 = vld [vmem:[#allocation17_spill] sm:$0xff] }
 0x539   :  { %v5454_v53 = vadd.f32 %v12834_v30, %v5297_v2  ;;  %v5612_v30 = vadd.f32 %v12832_v40, %v12826_v47  ;;  %v5872_v25 = vadd.f32 %v12870_v13, %v5739_v12  ;;  %v5458_v0 = vadd.f32 %v14151_v11, %v5301_v6  ;;  %v14152_v47 = vld [vmem:[#allocation23_spill] sm:$0xff]  ;;  %v14158_v2 = vld [vmem:[#allocation26_spill] sm:$0xff]  ;;  %v9451_v5 = vpop.f32.mrf.mxu0  ;;  %v14160_v12 = vld [vmem:[#allocation8_spill] sm:$0xff] }
 0x53a   :  { %v12924_v24 = vpop.f32.mrf.mxu1  ;;  %v5614_v40 = vadd.f32 %v14152_v47, %v5457_v46  ;;  %v5873_v18 = vadd.f32 %v14158_v2, %v5740_v52  ;;  %v5749_v46 = vadd.f32 %v12886_v57, %v5616_v19  ;;  %v5618_v33 = vadd.f32 %v14162_v26, %v5461_v45  ;;  %v14165_v52 = vld [vmem:[#allocation25_spill] sm:$0xff] }
 0x53b   :  { %v5611_v15 = vadd.f32 %v14148_v63, %v5454_v53  ;;  %v5844_v16 = vpop.f32.mrf.mxu0 }
 0x53c   :  { %v9435_v22 = vpop.f32.mrf.mxu1 }
 0x53d   :  { %v12943_v21 = vadd.f32 %v9435_v22, %v5621_v35  ;;  %v5742_v35 = vadd.f32 %v9423_v38, %v5609_v37  ;;  %v5610_v38 = vadd.f32 %v12836_v39, %v5453_v32  ;;  %v14155_v39 = vld [vmem:[#allocation12_spill] sm:$0xff]  ;;  %v5615_v37 = vadd.f32 %v14159_v20, %v5458_v0 }
 0x53e   :  { %v12949_v28 = vpop.f32.mrf.mxu1  ;;  %v5745_v62 = vadd.f32 %v14155_v39, %v5612_v30  ;;  %v5620_v32 = vadd.f32 %v14161_v56, %v14160_v12  ;;  %v5744_v53 = vadd.f32 %v12884_v42, %v5611_v15  ;;  %v14163_v30 = vld [vmem:[#allocation24_spill] sm:$0xff] }
 0x53f   :  { %v5875_v44 = vadd.f32 %v12874_v49, %v5742_v35  ;;  %v5743_v41 = vadd.f32 %v14156_v27, %v5610_v38  ;;  %v14166_v38 = vld [vmem:[#allocation16_spill] sm:$0xff]  ;;  %v5748_v27 = vadd.f32 %v12906_v36, %v5615_v37 }
 0x540   :  { %v9462_v54 = vpop.f32.mrf.mxu1  ;;  %v5879_v63 = vadd.f32 %v12902_v61, %v14166_v38  ;;  %v14167_v15 = vld [vmem:[#allocation36_spill] sm:$0xff]  ;;  %v5877_v11 = vadd.f32 %v12918_v23, %v5744_v53 }
 0x541   :  { %v6007_v51 = vadd.f32 %v9462_v54, %v5874_v50  ;;  %v12992_v54 = vadd.f32 %v14163_v30, %v5462_v31  ;;  %v5747_v57 = vadd.f32 %v14167_v15, %v5614_v40  ;;  %v14168_v31 = vmov 0.0   ;;  %v9745_v53 = vld [vmem:[%s13806_s5 + $0x1d0] sm:$0xff]  }
 0x542   :  { %v5942_v43 = vpop.f32.mrf.mxu1 }
 0x543   :  { %v6027_v13 = vmul.f32 %v12931_v8, %v6007_v51  ;;  %v6005_v29 = vadd.f32 %v5942_v43, %v5872_v25  ;;  %v5878_v25 = vadd.f32 %v14164_v9, %v5745_v62  ;;  %v5876_v51 = vadd.f32 %v14165_v52, %v5743_v41  ;;  %v9454_v41 = vpop.f32.mrf.mxu0 }
 0x544   :  { %v9463_v34 = vpop.f32.mrf.mxu1  ;;  %v5880_v62 = vadd.f32 %v5841_v4, %v5747_v57 }
 0x545   :  { %v6025_v22 = vmul.f32 %v12931_v8, %v6005_v29  ;;  %v6008_v49 = vadd.f32 %v9463_v34, %v5875_v44  ;;  %v6047_v7 = vadd.f32 %v12954_v1, %v6027_v13  ;;  %v5882_v13 = vadd.f32 %v12941_v17, %v5749_v46 }
 0x546   :  { %v5945_v60 = vpop.f32.mrf.mxu1  ;;  %v5750_v29 = vadd.f32 %v12896_v3, %v5617_v59  ;;  %v5753_v34 = vadd.f32 %v12913_v14, %v5620_v32  ;;  %v5751_v14 = vadd.f32 %v12924_v24, %v5618_v33 }
 0x547   :  { %v6045_v50 = vadd.f32 %v12954_v1, %v6025_v22  ;;  %v6028_v35 = vmul.f32 %v12931_v8, %v6008_v49  ;;  %v6006_v6 = vadd.f32 %v5945_v60, %v5873_v18  ;;  %v13003_v0 = vmax.f32 %v6047_v7, 0.0  ;;  %v14169_v49 = vld [vmem:[#allocation2_spill] sm:$0xff]  ;;  %v5857_v60 = vpop.f32.mrf.mxu0 }
 0x548   :  { %v9466_v42 = vpop.f32.mrf.mxu1  ;;  %v5883_v37 = vadd.f32 %v9451_v5, %v5750_v29  ;;  %v5881_v7 = vadd.f32 %v5844_v16, %v5748_v27  ;;  %v5886_v24 = vadd.f32 %v9454_v41, %v5753_v34  ;;  %v13098_v27 = vld [vmem:[%s13806_s5 + $0x208] sm:$0xff]  }
 0x549   :  { %v12999_v10 = vmax.f32 %v6045_v50, 0.0  ;;  %v6048_v19 = vadd.f32 %v12954_v1, %v6028_v35  ;;  %v6026_v43 = vmul.f32 %v12931_v8, %v6006_v6  ;;  %v6011_v47 = vadd.f32 %v9466_v42, %v5878_v25  ;;  %v9747_v42 = vld [vmem:[%s13806_s5 + $0x1e0] sm:$0xff]  }
 0x54a   :  { %v5958_v44 = vpop.f32.mrf.mxu1  ;;  %v6138_v58 = vrot.slane %v13003_v0, 7 }
 0x54b   :  { %v13008_v61 = vmax.f32 %v6048_v19, 0.0  ;;  %v6009_v40 = vadd.f32 %v5958_v44, %v5876_v51  ;;  %v6046_v55 = vadd.f32 %v12954_v1, %v6026_v43  ;;  %v6031_v45 = vmul.f32 %v12931_v8, %v6011_v47  ;;  %v14170_v51 = vld [vmem:[#allocation21_spill] sm:$0xff]  ;;  %v9455_v47 = vpop.f32.mrf.mxu0 }
 0x54c   :  { %v9467_v48 = vpop.f32.mrf.mxu1  ;;  %v6228_v23 = vpack.c.bf16 %v12999_v10, %v14168_v31  ;;  %v6136_v39 = vrot.slane %v12999_v10, 7  ;;  %v13045_v35 = vsel %vm108_vm2, 0.0, %v6138_v58  ;;  %v5752_v43 = vadd.f32 %v12949_v28, %v12992_v54  ;;  %v14171_v54 = vld [vmem:[#allocation6_spill] sm:$0xff] }
 0x54d   :  { %v6029_v17 = vmul.f32 %v12931_v8, %v6009_v40  ;;  %v13021_v59 = vmax.f32 %v6046_v55, 0.0  ;;  %v6051_v36 = vadd.f32 %v12954_v1, %v6031_v45  ;;  %v6139_v33 = vrot.slane %v13008_v61, 7 }
 0x54e   :  { %9480 = vmatprep.mubr.msk.bf16.mxu0 %vm1665_vm4, %v6228_v23  ;;  %v5961_v2 = vpop.f32.mrf.mxu1  ;;  %v13025_v18 = vsel %vm108_vm2, 0.0, %v6136_v39  ;;  %v6012_v25 = vadd.f32 %v9467_v48, %v5879_v63  ;;  %v13073_v63 = vld [vmem:[%s13806_s5 + $0x1f8] sm:$0xff]  }
 0x54f   :  { %v6049_v4 = vadd.f32 %v12954_v1, %v6029_v17  ;;  %v6010_v22 = vadd.f32 %v5961_v2, %v5877_v11  ;;  %v6220_v20 = vpack.c.bf16 %v13025_v18, %v14169_v49  ;;  %v6137_v12 = vrot.slane %v13021_v59, 7 }
 0x550   :  { %v13035_v56 = vpack.c.bf16 %v13003_v0, %v13021_v59  ;;  %v9470_v32 = vpop.f32.mrf.mxu1  ;;  %v13057_v9 = vmax.f32 %v6051_v36, 0.0  ;;  %v5884_v11 = vadd.f32 %v5857_v60, %v5751_v14  ;;  %v13086_v45 = vsel %vm108_vm2, 0.0, %v6139_v33  ;;  %v5860_v36 = vpop.f32.mrf.mxu0 }
 0x551   :  { %v13040_v46 = vmax.f32 %v6049_v4, 0.0  ;;  %v6030_v50 = vmul.f32 %v12931_v8, %v6010_v22  ;;  %v6015_v5 = vadd.f32 %v9470_v32, %v5882_v13  ;;  %9500 = vmatprep.mubr.msk.bf16.mxu1 %vm1665_vm4, %v6220_v20  ;;  %v13048_v6 = vsel %vm108_vm2, 0.0, %v6137_v12 }
 0x552   :  { %9481 = vmatmul.mubr.msk.bf16.vlgmr.msra.gmra.mxu0 %vm1665_vm4, %v13035_v56  ;;  %v5974_v26 = vpop.f32.mrf.mxu1  ;;  %v13055_v30 = vpack.c.bf16 %v13045_v35, %v13048_v6  ;;  %v6032_v48 = vmul.f32 %v12931_v8, %v6012_v25  ;;  %v6142_v41 = vrot.slane %v13057_v9, 7  ;;  %v5887_v14 = vadd.f32 %v9455_v47, %v12943_v21 }
 0x553   :  { %v6050_v52 = vadd.f32 %v12954_v1, %v6030_v50  ;;  %9517 = vmatpush3.bf16.msra.mxu0 %v14170_v51  ;;  %v6035_v38 = vmul.f32 %v12931_v8, %v6015_v5  ;;  %v6013_v15 = vadd.f32 %v5974_v26, %v5880_v62  ;;  %v13067_v16 = vpack.c.bf16 %v13040_v46, %v13008_v61 }
 0x554   :  { %v9471_v57 = vpop.f32.mrf.mxu1  ;;  %v6140_v19 = vrot.slane %v13040_v46, 7  ;;  %9518 = vmatprep.subr.bf16.mxu0 %v9745_v53  ;;  %9501 = vmatmul.mubr.msk.bf16.vlgmr.msra.gmra.mxu1 %vm1665_vm4, %v13055_v30  ;;  %v6052_v26 = vadd.f32 %v12954_v1, %v6032_v48 }
 0x555   :  { %v13077_v44 = vmax.f32 %v6050_v52, 0.0  ;;  %v6016_v13 = vadd.f32 %v9471_v57, %v5883_v37  ;;  %v6055_v29 = vadd.f32 %v12954_v1, %v6035_v38  ;;  %v6033_v40 = vmul.f32 %v12931_v8, %v6013_v15  ;;  %9484 = vmatprep.mubr.msk.bf16.mxu0 %vm1665_vm4, %v13067_v16  ;;  %9537 = vmatpush3.bf16.msra.mxu1 %v14171_v54 }
 0x556   :  { %v5977_v55 = vpop.f32.mrf.mxu1  ;;  %v13089_v28 = vsel %vm108_vm2, 0.0, %v6140_v19  ;;  %9538 = vmatprep.subr.bf16.mxu1 %v9747_v42  ;;  %v13140_v15 = vsel %vm108_vm2, 0.0, %v6142_v41 }
 0x557   :  { %v6141_v23 = vrot.slane %v13077_v44, 7  ;;  %v6036_v39 = vmul.f32 %v12931_v8, %v6016_v13  ;;  %v6014_v62 = vadd.f32 %v5977_v55, %v5881_v7  ;;  %9519 = vmatpush3.bf16.msra.mxu0 %v9745_v53  ;;  %v6053_v17 = vadd.f32 %v12954_v1, %v6033_v40 }
 0x558   :  { %v9474_v34 = vpop.f32.mrf.mxu1  ;;  %v13104_v58 = vpack.c.bf16 %v13089_v28, %v13086_v45  ;;  %9556 = vmatprep.subr.bf16.mxu0 %v13073_v63  ;;  %v13113_v37 = vpack.c.bf16 %v13057_v9, %v13077_v44  ;;  %v13116_v12 = vmax.f32 %v6055_v29, 0.0 }
 0x559   :  { %v6056_v4 = vadd.f32 %v12954_v1, %v6036_v39  ;;  %v6034_v22 = vmul.f32 %v12931_v8, %v6014_v62  ;;  %v6019_v20 = vadd.f32 %v9474_v34, %v5886_v24  ;;  %v13118_v32 = vmax.f32 %v6053_v17, 0.0  ;;  %9539 = vmatpush3.bf16.msra.mxu1 %v9747_v42 }
 0x55a   :  { %9504 = vmatprep.mubr.msk.bf16.mxu1 %vm1665_vm4, %v13104_v58  ;;  %v5990_v53 = vpop.f32.mrf.mxu1  ;;  %v13123_v7 = vsel %vm108_vm2, 0.0, %v6141_v23  ;;  %9485 = vmatmul.mubr.msk.bf16.gmra.mxu0 %vm1665_vm4, %v13113_v37  ;;  %v5885_v24 = vadd.f32 %v5860_v36, %v5752_v43  ;;  %v6145_v57 = vrot.slane %v13116_v12, 7  ;;  %v13164_v39 = vmax.f32 %v6052_v26, 0.0 }
 0x55b   :  { %v13125_v60 = vmax.f32 %v6056_v4, 0.0  ;;  %v6054_v50 = vadd.f32 %v12954_v1, %v6034_v22  ;;  %v6039_v5 = vmul.f32 %v12931_v8, %v6019_v20  ;;  %v6017_v21 = vadd.f32 %v5990_v53, %v5884_v11  ;;  %9576 = vmatprep.subr.bf16.mxu1 %v13098_v27 }
 0x55c   :  { %v9475_v33 = vpop.f32.mrf.mxu1  ;;  %v6232_v25 = vpack.c.bf16 %v13118_v32, %v14168_v31  ;;  %v6143_v52 = vrot.slane %v13118_v32, 7  ;;  %v13145_v19 = vpack.c.bf16 %v13140_v15, %v13123_v7  ;;  %v6178_v17 = vrot.slane %v12999_v10, 1 }
 0x55d   :  { %v13136_v51 = vmax.f32 %v6054_v50, 0.0  ;;  %v6037_v42 = vmul.f32 %v12931_v8, %v6017_v21  ;;  %v6020_v38 = vadd.f32 %v9475_v33, %v5887_v14  ;;  %v6146_v47 = vrot.slane %v13125_v60, 7 }
 0x55e   :  { %9488 = vmatprep.mubr.msk.bf16.mxu0 %vm1665_vm4, %v6232_v25  ;;  %v5993_v11 = vpop.f32.mrf.mxu1  ;;  %v13149_v43 = vsel %vm108_vm2, 0.0, %v6143_v52  ;;  %v6059_v29 = vadd.f32 %v12954_v1, %v6039_v5  ;;  %9505 = vmatmul.mubr.msk.bf16.gmra.mxu1 %vm1665_vm4, %v13145_v19  ;;  %v13176_v4 = vsel %vm108_vm2, 0.0, %v6145_v57  ;;  %v6180_v50 = vrot.slane %v13003_v0, 1 }
 0x55f   :  { %v6144_v13 = vrot.slane %v13136_v51, 7  ;;  %v6057_v40 = vadd.f32 %v12954_v1, %v6037_v42  ;;  %v6040_v55 = vmul.f32 %v12931_v8, %v6020_v38  ;;  %v6018_v54 = vadd.f32 %v5993_v11, %v5885_v24 }
 0x560   :  { %v6224_v48 = vpack.c.bf16 %v13149_v43, %v14169_v49  ;;  %v13162_v23 = vpack.c.bf16 %v13116_v12, %v13136_v51  ;;  %v13179_v22 = vsel %vm108_vm2, 0.0, %v6146_v47  ;;  %v13181_v20 = vmax.f32 %v6059_v29, 0.0 }
 0x561   :  { %v13166_v62 = vmax.f32 %v6057_v40, 0.0  ;;  %v13169_v41 = vsel %vm108_vm2, 0.0, %v6144_v13  ;;  %v6060_v34 = vadd.f32 %v12954_v1, %v6040_v55  ;;  %v6038_v36 = vmul.f32 %v12931_v8, %v6018_v54 }
 0x562   :  { %14172 = vst [vmem:[#allocation31_spill] sm:$0xff] %v13162_v23  ;;  %9508 = vmatprep.mubr.msk.bf16.mxu1 %vm1665_vm4, %v6224_v48  ;;  %9489 = vmatmul.mubr.msk.bf16.gmra.mxu0 %vm1665_vm4, %v13162_v23  ;;  %v13196_v21 = vpack.c.bf16 %v13176_v4, %v13169_v41  ;;  %v6661_v24 = vrot.slane %v13164_v39, 7  ;;  %v6181_v33 = vrot.slane %v13008_v61, 1  ;;  %v6182_v25 = vrot.slane %v13040_v46, 1 }
 0x563   :  { %v13187_v14 = vpack.c.bf16 %v13166_v62, %v13125_v60  ;;  %v6147_v53 = vrot.slane %v13166_v62, 7  ;;  %v6058_v5 = vadd.f32 %v12954_v1, %v6038_v36  ;;  %v13206_v52 = vmax.f32 %v6060_v34, 0.0 }
 0x564   :  { %v6149_v38 = vrot.slane %v13181_v20, 7  ;;  %v13216_v57 = vsel %vm154_vm3, %v6178_v17, 0.0  ;;  %v13219_v11 = vsel %vm154_vm3, %v6181_v33, 0.0  ;;  %v13222_v47 = vsel %vm154_vm3, %v6182_v25, 0.0 }
 0x565   :  { %14173 = vst [vmem:[#allocation18_spill] sm:$0xff] %v13187_v14  ;;  %9492 = vmatprep.mubr.msk.bf16.mxu0 %vm1665_vm4, %v13187_v14  ;;  %v13202_v26 = vsel %vm108_vm2, 0.0, %v6147_v53  ;;  %v13208_v42 = vmax.f32 %v6058_v5, 0.0  ;;  %v13225_v13 = vsel %vm154_vm3, %v6180_v50, 0.0  ;;  %v13236_v55 = vpack.c.bf16 %v13222_v47, %v13219_v11  ;;  %v14177_v53 = vld [vmem:[#allocation3_spill] sm:$0xff] }
 0x566   :  { %v13212_v1 = vpack.c.bf16 %v13202_v26, %v13179_v22  ;;  %9509 = vmatmul.mubr.msk.bf16.gmra.mxu1 %vm1665_vm4, %v13196_v21  ;;  %v6179_v54 = vrot.slane %v13021_v59, 1  ;;  %v6187_v48 = vrot.slane %v13116_v12, 1  ;;  %v13245_v34 = vsel %vm108_vm2, 0.0, %v6661_v24 }
 0x567   :  { %v6148_v29 = vrot.slane %v13208_v42, 7  ;;  %v13232_v40 = vpack.c.bf16 %v13181_v20, %v13208_v42  ;;  %14176 = vst [vmem:[#allocation22_spill] sm:$0xff] %v13236_v55  ;;  %v6662_v36 = vrot.slane %v13206_v52, 7  ;;  %v6502_v50 = vpack.c.bf16 %v13216_v57, %v14177_v53 }
 0x568   :  { %14174 = vst [vmem:[#allocation42_spill] sm:$0xff] %v13212_v1  ;;  %9512 = vmatprep.mubr.msk.bf16.mxu1 %vm1665_vm4, %v13212_v1  ;;  %v6676_v33 = vpack.c.bf16 %v13245_v34, %v13140_v15  ;;  %v13258_v25 = vsel %vm108_vm2, 0.0, %v6149_v38  ;;  %v6188_v24 = vrot.slane %v13125_v60, 1  ;;  %v6184_v17 = vrot.slane %v13057_v9, 1 }
 0x569   :  { %14175 = vst [vmem:[#allocation32_spill] sm:$0xff] %v13232_v40  ;;  %v13251_v5 = vsel %vm108_vm2, 0.0, %v6148_v29  ;;  %v6667_v3 = vrot.slane %v13164_v39, 1  ;;  %v6189_v15 = vrot.slane %v13166_v62, 1  ;;  %v13270_v8 = vsel %vm154_vm3, %v6179_v54, 0.0 }
 0x56a   :  { %9493 = vmatmul.mubr.msk.bf16.gmra.mxu0 %vm1665_vm4, %v13232_v40  ;;  %v13266_v29 = vpack.c.bf16 %v13258_v25, %v13251_v5  ;;  %v6191_v38 = vrot.slane %v13181_v20, 1  ;;  %v13274_v2 = vsel %vm154_vm3, %v6187_v48, 0.0  ;;  %v13277_v40 = vsel %vm154_vm3, %v6188_v24, 0.0 }
 0x56b   :  { %9520 = vmatprep.mubr.msk.bf16.mxu0 %vm1665_vm4, %v6502_v50  ;;  %v6668_v14 = vrot.slane %v13206_v52, 1  ;;  %v13281_v50 = vsel %vm154_vm3, %v6189_v15, 0.0  ;;  %v13286_v23 = vsel %vm108_vm2, 0.0, %v6662_v36  ;;  %v6673_v54 = vpack.c.bf16 %v13048_v6, %v13025_v18  ;;  %v9749_v6 = vld [vmem:[%s13806_s5 + $0x1f0] sm:$0xff]  }
 0x56c   :  { %14178 = vst [vmem:[#allocation23_spill] sm:$0xff] %v13266_v29  ;;  %14179 = vst [vmem:[#allocation37_spill] sm:$0xff] %v13286_v23  ;;  %v13292_v48 = vpack.c.bf16 %v13281_v50, %v13277_v40  ;;  %v6680_v24 = vpack.c.bf16 %v13286_v23, %v13258_v25  ;;  %v13299_v15 = vsel %vm154_vm3, %v6184_v17, 0.0  ;;  %v13304_v1 = vsel %vm154_vm3, %v6667_v3, 0.0  ;;  %v9752_v23 = vld [vmem:[%s13806_s5 + $0x218] sm:$0xff]  }
 0x56d   :  { %v13308_v18 = vpack.c.bf16 %v13225_v13, %v13270_v8  ;;  %v6183_v36 = vrot.slane %v13077_v44, 1  ;;  %v13320_v3 = vsel %vm154_vm3, %v6191_v38, 0.0  ;;  %v6675_v25 = vpack.c.bf16 %v13123_v7, %v13089_v28 }
 0x56e   :  { %9513 = vmatmul.mubr.msk.bf16.gmra.mxu1 %vm1665_vm4, %v13266_v29  ;;  %v6185_v29 = vrot.slane %v13118_v32, 1  ;;  %v6677_v28 = vpack.c.bf16 %v13169_v41, %v13149_v43  ;;  %v6190_v7 = vrot.slane %v13208_v42, 1  ;;  %v6679_v43 = vpack.c.bf16 %v13251_v5, %v13202_v26 }
 0x56f   :  { %14180 = vst [vmem:[#allocation4_spill] sm:$0xff] %v13308_v18  ;;  %9540 = vmatprep.mubr.msk.bf16.mxu1 %vm1665_vm4, %v6673_v54  ;;  %v13325_v54 = vsel %vm154_vm3, %v6668_v14, 0.0  ;;  %v6211_v38 = vsel %vm154_vm3, %v6183_v36, 0.0  ;;  %v9751_v14 = vld [vmem:[%s13806_s5 + $0x200] sm:$0xff]   ;;  %v6186_v36 = vrot.slane %v13136_v51, 1  ;;  %v14182_v41 = vpack.c.bf16 %v13179_v22, %v13176_v4  ;;  %v9753_v4 = vld [vmem:[%s13806_s5 + $0x210] sm:$0xff]  }
 0x570   :  { %v6213_v17 = vsel %vm154_vm3, %v6185_v29, 0.0  ;;  %v6830_v29 = vpack.c.bf16 %v13021_v59, %v12999_v10  ;;  %v6987_v26 = vpack.c.bf16 %v13270_v8, %v13216_v57  ;;  %v6832_v22 = vpack.c.bf16 %v13077_v44, %v13040_v46  ;;  %v9755_v59 = vld [vmem:[%s13806_s5 + $0x220] sm:$0xff]   ;;  %v9756_v8 = vld [vmem:[%s13806_s5 + $0x238] sm:$0xff]  }
 0x571   :  { %v14183_v10 = vpack.c.bf16 %v13008_v61, %v13003_v0  ;;  %v6989_v57 = vpack.c.bf16 %v6211_v38, %v13222_v47  ;;  %v14184_v46 = vpack.c.bf16 %v13219_v11, %v13225_v13  ;;  %v6834_v0 = vpack.c.bf16 %v13136_v51, %v13118_v32 }
 0x572   :  { %9521 = vmatmul.mubr.msk.bf16.vlgmr.msra.gmra.mxu0 %vm1665_vm4, %v13308_v18  ;;  %v6506_v18 = vpack.c.bf16 %v6213_v17, %v14177_v53  ;;  %v14185_v61 = vpack.c.bf16 %v13164_v39, %v13057_v9  ;;  %v6836_v32 = vpack.c.bf16 %v13208_v42, %v13166_v62  ;;  %v14187_v51 = vpack.c.bf16 %v13125_v60, %v13116_v12  ;;  %v14194_v60 = vld [vmem:[#allocation18_spill] sm:$0xff] }
 0x573   :  { %9524 = vmatprep.mubr.msk.bf16.mxu0 %vm1665_vm4, %v13236_v55  ;;  %9557 = vmatpush3.bf16.msra.mxu0 %v13073_v63  ;;  %v14181_v55 = vpack.c.bf16 %v13086_v45, %v13045_v35  ;;  %v13351_v63 = vpack.c.bf16 %v13299_v15, %v6211_v38  ;;  %v9754_v35 = vld [vmem:[%s13806_s5 + $0x228] sm:$0xff]   ;;  %v6214_v45 = vsel %vm154_vm3, %v6186_v36, 0.0  ;;  %v14188_v11 = vpack.c.bf16 %v13277_v40, %v13274_v2  ;;  %v14196_v62 = vld [vmem:[#allocation37_spill] sm:$0xff]  ;;  %v14198_v42 = vld [vmem:[#allocation22_spill] sm:$0xff] }
 0x574   :  { %9558 = vmatprep.subr.bf16.mxu0 %v9749_v6  ;;  %v6991_v44 = vpack.c.bf16 %v6214_v45, %v6213_v17  ;;  %v14189_v47 = vpack.c.bf16 %v13206_v52, %v13181_v20  ;;  %v14190_v12 = vpack.c.bf16 %v13325_v54, %v13320_v3  ;;  %v7410_v13 = vpack.c.bf16 %v14177_v53, %v13304_v1 }
 0x576   :  { %9541 = vmatmul.mubr.msk.bf16.vlgmr.msra.gmra.mxu1 %vm1665_vm4, %v14181_v55  ;;  %v6218_v55 = vsel %vm154_vm3, %v6190_v7, 0.0  ;;  %v14197_v20 = vld [vmem:[#allocation4_spill] sm:$0xff] }
 0x577   :  { %9559 = vmatpush3.bf16.msra.mxu0 %v9749_v6  ;;  %9544 = vmatprep.mubr.msk.bf16.mxu1 %vm1665_vm4, %v6675_v25  ;;  %v6993_v9 = vpack.c.bf16 %v6218_v55, %v13281_v50 }
 0x578   :  { %9577 = vmatpush3.bf16.msra.mxu1 %v13098_v27  ;;  %9596 = vmatprep.subr.bf16.mxu0 %v9752_v23  ;;  %v13368_v27 = vpack.c.bf16 %v13274_v2, %v6214_v45  ;;  %v9757_v2 = vld [vmem:[%s13806_s5 + $0x230] sm:$0xff]  }
 0x579   :  { %9578 = vmatprep.subr.bf16.mxu1 %v9751_v14 }
 0x57a   :  { %9525 = vmatmul.mubr.msk.bf16.gmra.mxu0 %vm1665_vm4, %v13351_v63 }
 0x57b   :  { %9528 = vmatprep.mubr.msk.bf16.mxu0 %vm1665_vm4, %v6506_v18 }
 0x57c   :  { %9579 = vmatpush3.bf16.msra.mxu1 %v9751_v14 }
 0x57d   :  { %9616 = vmatprep.subr.bf16.mxu1 %v9754_v35 }
 0x57e   :  { %9545 = vmatmul.mubr.msk.bf16.gmra.mxu1 %vm1665_vm4, %v6676_v33  ;;  %v13384_v33 = vpack.c.bf16 %v13320_v3, %v6218_v55 }
 0x57f   :  { %9548 = vmatprep.mubr.msk.bf16.mxu1 %vm1665_vm4, %v6677_v28 }
 0x582   :  { %9529 = vmatmul.mubr.msk.bf16.gmra.mxu0 %vm1665_vm4, %v13368_v27 }
 0x583   :  { %9532 = vmatprep.mubr.msk.bf16.mxu0 %vm1665_vm4, %v13292_v48 }
 0x586   :  { %9549 = vmatmul.mubr.msk.bf16.gmra.mxu1 %vm1665_vm4, %v14182_v41 }
 0x587   :  { %9552 = vmatprep.mubr.msk.bf16.mxu1 %vm1665_vm4, %v6679_v43 }
 0x58a   :  { %9533 = vmatmul.mubr.msk.bf16.gmra.mxu0 %vm1665_vm4, %v13384_v33 }
 0x58b   :  { %9560 = vmatprep.mubr.msk.bf16.mxu0 %vm1665_vm4, %v6830_v29 }
 0x58e   :  { %9553 = vmatmul.mubr.msk.bf16.gmra.mxu1 %vm1665_vm4, %v6680_v24 }
 0x58f   :  { %9580 = vmatprep.mubr.msk.bf16.mxu1 %vm1665_vm4, %v6987_v26 }
 0x592   :  { %9561 = vmatmul.mubr.msk.bf16.vlgmr.msra.gmra.mxu0 %vm1665_vm4, %v14183_v10 }
 0x593   :  { %9564 = vmatprep.mubr.msk.bf16.mxu0 %vm1665_vm4, %v6832_v22  ;;  %9597 = vmatpush3.bf16.msra.mxu0 %v9752_v23  ;;  %v14186_v23 = vpack.c.bf16 %v13304_v1, %v13299_v15  ;;  %v9759_v1 = vld [vmem:[%s13810_s6] sm:$0xff]  }
 0x594   :  { %9598 = vmatprep.subr.bf16.mxu0 %v9753_v4 }
 0x596   :  { %9581 = vmatmul.mubr.msk.bf16.vlgmr.msra.gmra.mxu1 %vm1665_vm4, %v14184_v46 }
 0x597   :  { %9599 = vmatpush3.bf16.msra.mxu0 %v9753_v4  ;;  %9584 = vmatprep.mubr.msk.bf16.mxu1 %vm1665_vm4, %v6989_v57 }
 0x598   :  { %9617 = vmatpush3.bf16.msra.mxu1 %v9754_v35  ;;  %9636 = vmatprep.subr.bf16.mxu0 %v9756_v8 }
 0x599   :  { %9618 = vmatprep.subr.bf16.mxu1 %v9755_v59 }
 0x59a   :  { %9565 = vmatmul.mubr.msk.bf16.gmra.mxu0 %vm1665_vm4, %v14185_v61 }
 0x59b   :  { %9568 = vmatprep.mubr.msk.bf16.mxu0 %vm1665_vm4, %v6834_v0 }
 0x59c   :  { %9619 = vmatpush3.bf16.msra.mxu1 %v9755_v59 }
 0x59e   :  { %9585 = vmatmul.mubr.msk.bf16.gmra.mxu1 %vm1665_vm4, %v14186_v23 }
 0x59f   :  { %9588 = vmatprep.mubr.msk.bf16.mxu1 %vm1665_vm4, %v6991_v44 }
 0x5a2   :  { %9569 = vmatmul.mubr.msk.bf16.gmra.mxu0 %vm1665_vm4, %v14187_v51 }
 0x5a3   :  { %9572 = vmatprep.mubr.msk.bf16.mxu0 %vm1665_vm4, %v6836_v32 }
 0x5a6   :  { %9589 = vmatmul.mubr.msk.bf16.gmra.mxu1 %vm1665_vm4, %v14188_v11 }
 0x5a7   :  { %9592 = vmatprep.mubr.msk.bf16.mxu1 %vm1665_vm4, %v6993_v9 }
 0x5aa   :  { %9573 = vmatmul.mubr.msk.bf16.gmra.mxu0 %vm1665_vm4, %v14189_v47 }
 0x5ab   :  { %9600 = vmatprep.mubr.msk.bf16.mxu0 %vm1665_vm4, %v13055_v30  ;;  %v7277_v30 = vpack.c.bf16 %v14168_v31, %v13164_v39  ;;  %v7145_v39 = vpack.c.bf16 %v14169_v49, %v14196_v62 }
 0x5ae   :  { %9593 = vmatmul.mubr.msk.bf16.gmra.mxu1 %vm1665_vm4, %v14190_v12 }
 0x5af   :  { %9620 = vmatprep.mubr.msk.bf16.mxu1 %vm1665_vm4, %v13035_v56  ;;  %v7144_v56 = vpack.c.bf16 %v14169_v49, %v13245_v34  ;;  %v9758_v49 = vld [vmem:[%s13810_s6 + $0x8] sm:$0xff]  }
 0x5b0   :  { %9656 = vmatprep.subr.bf16.mxu1 %v9758_v49 }
 0x5b2   :  { %9601 = vmatmul.mubr.msk.bf16.vlgmr.msra.gmra.mxu0 %vm1665_vm4, %v13104_v58  ;;  %v14191_v58 = vld [vmem:[#allocation31_spill] sm:$0xff] }
 0x5b3   :  { %9604 = vmatprep.mubr.msk.bf16.mxu0 %vm1665_vm4, %v13145_v19  ;;  %9637 = vmatpush3.bf16.msra.mxu0 %v9756_v8  ;;  %v14195_v19 = vld [vmem:[#allocation32_spill] sm:$0xff] }
 0x5b4   :  { %9638 = vmatprep.subr.bf16.mxu0 %v9757_v2 }
 0x5b6   :  { %9621 = vmatmul.mubr.msk.bf16.vlgmr.msra.gmra.mxu1 %vm1665_vm4, %v13067_v16  ;;  %v14192_v16 = vld [vmem:[#allocation42_spill] sm:$0xff] }
 0x5b7   :  { %9639 = vmatpush3.bf16.msra.mxu0 %v9757_v2  ;;  %9624 = vmatprep.mubr.msk.bf16.mxu1 %vm1665_vm4, %v13113_v37  ;;  %v14193_v37 = vld [vmem:[#allocation23_spill] sm:$0xff] }
 0x5b8   :  { %9657 = vmatpush3.bf16.msra.mxu1 %v9758_v49 }
 0x5b9   :  { %9658 = vmatprep.subr.bf16.mxu1 %v9759_v1 }
 0x5ba   :  { %9605 = vmatmul.mubr.msk.bf16.gmra.mxu0 %vm1665_vm4, %v7144_v56 }
 0x5bb   :  { %9608 = vmatprep.mubr.msk.bf16.mxu0 %vm1665_vm4, %v13196_v21  ;;  %v7278_v21 = vpack.c.bf16 %v14168_v31, %v13206_v52  ;;  %v7411_v31 = vpack.c.bf16 %v14177_v53, %v13325_v54 }
 0x5bc   :  { %9659 = vmatpush3.bf16.msra.mxu1 %v9759_v1 }
 0x5be   :  { %9625 = vmatmul.mubr.msk.bf16.gmra.mxu1 %vm1665_vm4, %v7277_v30 }
 0x5bf   :  { %9628 = vmatprep.mubr.msk.bf16.mxu1 %vm1665_vm4, %v14191_v58 }
 0x5c2   :  { %9609 = vmatmul.mubr.msk.bf16.gmra.mxu0 %vm1665_vm4, %v14192_v16 }
 0x5c3   :  { %9612 = vmatprep.mubr.msk.bf16.mxu0 %vm1665_vm4, %v14193_v37 }
 0x5c6   :  { %9629 = vmatmul.mubr.msk.bf16.gmra.mxu1 %vm1665_vm4, %v14194_v60 }
 0x5c7   :  { %9632 = vmatprep.mubr.msk.bf16.mxu1 %vm1665_vm4, %v14195_v19 }
 0x5ca   :  { %9613 = vmatmul.mubr.msk.bf16.gmra.mxu0 %vm1665_vm4, %v7145_v39 }
 0x5cb   :  { %9640 = vmatprep.mubr.msk.bf16.mxu0 %vm1665_vm4, %v14197_v20 }
 0x5ce   :  { %9633 = vmatmul.mubr.msk.bf16.gmra.mxu1 %vm1665_vm4, %v7278_v21 }
 0x5d2   :  { %9641 = vmatmul.mubr.msk.bf16.vlgmr.msra.gmra.mxu0 %vm1665_vm4, %v14198_v42 }
 0x5d3   :  { %9644 = vmatprep.mubr.msk.bf16.mxu0 %vm1665_vm4, %v13351_v63 }
 0x5da   :  { %9645 = vmatmul.mubr.msk.bf16.gmra.mxu0 %vm1665_vm4, %v7410_v13 }
 0x5db   :  { %9648 = vmatprep.mubr.msk.bf16.mxu0 %vm1665_vm4, %v13368_v27 }
 0x5e2   :  { %9649 = vmatmul.mubr.msk.bf16.gmra.mxu0 %vm1665_vm4, %v13292_v48 }
 0x5e3   :  { %9652 = vmatprep.mubr.msk.bf16.mxu0 %vm1665_vm4, %v13384_v33 }
 0x5ea   :  { %9653 = vmatmul.mubr.msk.bf16.gmra.mxu0 %vm1665_vm4, %v7411_v31 }
 0x612   :  { %v9482_v52 = vpop.f32.mrf.mxu0 }
 0x614   :  { %v6306_v40 = vpop.f32.mrf.mxu0  ;;  %v9502_v34 = vpop.f32.mrf.mxu1 }
 0x615   :  { %v6448_v5 = vadd.f32 %v9502_v34, %v9482_v52 }
 0x616   :  { %v9483_v50 = vpop.f32.mrf.mxu0  ;;  %v6439_v53 = vpop.f32.mrf.mxu1 }
 0x617   :  { %v6440_v48 = vadd.f32 %v6439_v53, %v6306_v40 }
 0x618   :  { %v6309_v24 = vpop.f32.mrf.mxu0  ;;  %v9503_v15 = vpop.f32.mrf.mxu1 }
 0x619   :  { %v6451_v18 = vadd.f32 %v9503_v15, %v9483_v50 }
 0x61a   :  { %v9486_v6 = vpop.f32.mrf.mxu0  ;;  %v6442_v17 = vpop.f32.mrf.mxu1 }
 0x61b   :  { %v6443_v25 = vadd.f32 %v6442_v17, %v6309_v24 }
 0x61c   :  { %v6322_v3 = vpop.f32.mrf.mxu0 }
 0x61e   :  { %v9487_v54 = vpop.f32.mrf.mxu0  ;;  %v9506_v38 = vpop.f32.mrf.mxu1 }
 0x61f   :  { %v6464_v14 = vadd.f32 %v9506_v38, %v9486_v6 }
 0x620   :  { %v6325_v63 = vpop.f32.mrf.mxu0  ;;  %v6455_v36 = vpop.f32.mrf.mxu1 }
 0x621   :  { %v6456_v35 = vadd.f32 %v6455_v36, %v6322_v3 }
 0x622   :  { %v9490_v45 = vpop.f32.mrf.mxu0  ;;  %v9507_v28 = vpop.f32.mrf.mxu1 }
 0x623   :  { %v6467_v27 = vadd.f32 %v9507_v28, %v9487_v54 }
 0x624   :  { %v6338_v7 = vpop.f32.mrf.mxu0  ;;  %v6458_v55 = vpop.f32.mrf.mxu1 }
 0x625   :  { %v6459_v43 = vadd.f32 %v6458_v55, %v6325_v63 }
 0x626   :  { %v9491_v41 = vpop.f32.mrf.mxu0  ;;  %v9510_v33 = vpop.f32.mrf.mxu1 }
 0x627   :  { %v6480_v29 = vadd.f32 %v9510_v33, %v9490_v45 }
 0x628   :  { %v6341_v26 = vpop.f32.mrf.mxu0  ;;  %v6471_v4 = vpop.f32.mrf.mxu1 }
 0x629   :  { %v6472_v22 = vadd.f32 %v6471_v4, %v6338_v7 }
 0x62a   :  { %v9494_v10 = vpop.f32.mrf.mxu0  ;;  %v9511_v59 = vpop.f32.mrf.mxu1 }
 0x62b   :  { %v6483_v8 = vadd.f32 %v9511_v59, %v9491_v41 }
 0x62c   :  { %v6354_v57 = vpop.f32.mrf.mxu0  ;;  %v6474_v46 = vpop.f32.mrf.mxu1 }
 0x62d   :  { %v6475_v0 = vadd.f32 %v6474_v46, %v6341_v26 }
 0x62e   :  { %v9495_v61 = vpop.f32.mrf.mxu0  ;;  %v9514_v44 = vpop.f32.mrf.mxu1 }
 0x62f   :  { %v6496_v23 = vadd.f32 %v9514_v44, %v9494_v10 }
 0x630   :  { %v6357_v32 = vpop.f32.mrf.mxu0  ;;  %v6487_v51 = vpop.f32.mrf.mxu1 }
 0x631   :  { %v6488_v9 = vadd.f32 %v6487_v51, %v6354_v57 }
 0x632   :  { %v9522_v11 = vpop.f32.mrf.mxu0  ;;  %v9515_v47 = vpop.f32.mrf.mxu1 }
 0x633   :  { %v13513_v12 = vadd.f32 %v9522_v11, %v6448_v5  ;;  %v6499_v2 = vadd.f32 %v9515_v47, %v9495_v61 }
 0x634   :  { %v6580_v56 = vpop.f32.mrf.mxu0  ;;  %v6490_v30 = vpop.f32.mrf.mxu1 }
 0x635   :  { %v13515_v58 = vadd.f32 %v6580_v56, %v6440_v48  ;;  %v6491_v16 = vadd.f32 %v6490_v30, %v6357_v32 }
 0x636   :  { %v9523_v37 = vpop.f32.mrf.mxu0  ;;  %v13517_v60 = vpop.f32.mrf.mxu1 }
 0x637   :  { %v13519_v19 = vadd.f32 %v9523_v37, %v6451_v18 }
 0x638   :  { %v6583_v62 = vpop.f32.mrf.mxu0  ;;  %v13521_v39 = vpop.f32.mrf.mxu1 }
 0x639   :  { %v13523_v20 = vadd.f32 %v6583_v62, %v6443_v25 }
 0x63a   :  { %v9526_v21 = vpop.f32.mrf.mxu0  ;;  %v13525_v42 = vpop.f32.mrf.mxu1 }
 0x63b   :  { %v13527_v13 = vadd.f32 %v9526_v21, %v6464_v14 }
 0x63c   :  { %v6596_v31 = vpop.f32.mrf.mxu0  ;;  %v13529_v49 = vpop.f32.mrf.mxu1 }
 0x63d   :  { %v13531_v52 = vadd.f32 %v6596_v31, %v6456_v35 }
 0x63e   :  { %v9527_v1 = vpop.f32.mrf.mxu0  ;;  %v13533_v40 = vpop.f32.mrf.mxu1 }
 0x63f   :  { %v13535_v34 = vadd.f32 %v9527_v1, %v6467_v27 }
 0x640   :  { %v6599_v5 = vpop.f32.mrf.mxu0  ;;  %v13537_v50 = vpop.f32.mrf.mxu1 }
 0x641   :  { %v13539_v53 = vadd.f32 %v6599_v5, %v6459_v43 }
 0x642   :  { %v9530_v48 = vpop.f32.mrf.mxu0  ;;  %v13541_v24 = vpop.f32.mrf.mxu1 }
 0x643   :  { %v13543_v15 = vadd.f32 %v9530_v48, %v6480_v29 }
 0x644   :  { %v6612_v18 = vpop.f32.mrf.mxu0  ;;  %v13545_v6 = vpop.f32.mrf.mxu1 }
 0x645   :  { %v13547_v17 = vadd.f32 %v6612_v18, %v6472_v22 }
 0x646   :  { %v9531_v25 = vpop.f32.mrf.mxu0  ;;  %v13549_v3 = vpop.f32.mrf.mxu1 }
 0x647   :  { %v13551_v54 = vadd.f32 %v9531_v25, %v6483_v8 }
 0x648   :  { %v6615_v38 = vpop.f32.mrf.mxu0  ;;  %v13553_v14 = vpop.f32.mrf.mxu1 }
 0x649   :  { %v13555_v63 = vadd.f32 %v6615_v38, %v6475_v0 }
 0x64a   :  { %v9534_v36 = vpop.f32.mrf.mxu0  ;;  %v13557_v35 = vpop.f32.mrf.mxu1 }
 0x64b   :  { %v13559_v45 = vadd.f32 %v9534_v36, %v6496_v23 }
 0x64c   :  { %v6628_v28 = vpop.f32.mrf.mxu0  ;;  %v13561_v27 = vpop.f32.mrf.mxu1 }
 0x64d   :  { %14199 = vst [vmem:[#allocation12_spill] sm:$0xff] %v13559_v45  ;;  %v13563_v7 = vadd.f32 %v6628_v28, %v6488_v9 }
 0x64e   :  { %v9535_v55 = vpop.f32.mrf.mxu0  ;;  %v13565_v43 = vpop.f32.mrf.mxu1 }
 0x64f   :  { %14200 = vst [vmem:[#allocation14_spill] sm:$0xff] %v13563_v7  ;;  %14201 = vst [vmem:[#allocation7_spill] sm:$0xff] %v13565_v43  ;;  %v13567_v41 = vadd.f32 %v9535_v55, %v6499_v2  ;;  %v6816_v43 = vadd.f32 %v13517_v60, %v13513_v12 }
 0x650   :  { %v6631_v33 = vpop.f32.mrf.mxu0  ;;  %v13569_v29 = vpop.f32.mrf.mxu1 }
 0x651   :  { %14202 = vst [vmem:[#allocation26_spill] sm:$0xff] %v13567_v41  ;;  %14203 = vst [vmem:[#allocation10_spill] sm:$0xff] %v13569_v29  ;;  %v13571_v26 = vadd.f32 %v6631_v33, %v6491_v16 }
 0x652   :  { %v9562_v4 = vpop.f32.mrf.mxu0  ;;  %v13573_v22 = vpop.f32.mrf.mxu1 }
 0x653   :  { %14204 = vst [vmem:[#allocation8_spill] sm:$0xff] %v13571_v26  ;;  %14205 = vst [vmem:[#allocation15_spill] sm:$0xff] %v13573_v22 }
 0x654   :  { %v6908_v10 = vpop.f32.mrf.mxu0  ;;  %v13575_v59 = vpop.f32.mrf.mxu1 }
 0x655   :  { %14206 = vst [vmem:[#allocation17_spill] sm:$0xff] %v13575_v59 }
 0x656   :  { %v9563_v8 = vpop.f32.mrf.mxu0  ;;  %v9582_v57 = vpop.f32.mrf.mxu1 }
 0x658   :  { %v6911_v46 = vpop.f32.mrf.mxu0  ;;  %v7065_v0 = vpop.f32.mrf.mxu1 }
 0x65a   :  { %v13577_v61 = vpop.f32.mrf.mxu0  ;;  %v9583_v44 = vpop.f32.mrf.mxu1 }
 0x65c   :  { %v13579_v23 = vpop.f32.mrf.mxu0  ;;  %v13581_v32 = vpop.f32.mrf.mxu1 }
 0x65e   :  { %v13583_v51 = vpop.f32.mrf.mxu0  ;;  %v13585_v9 = vpop.f32.mrf.mxu1 }
 0x660   :  { %v13587_v11 = vpop.f32.mrf.mxu0  ;;  %v13589_v47 = vpop.f32.mrf.mxu1 }
 0x662   :  { %v13591_v2 = vpop.f32.mrf.mxu0  ;;  %v13593_v56 = vpop.f32.mrf.mxu1 }
 0x664   :  { %v13595_v30 = vpop.f32.mrf.mxu0  ;;  %v13597_v16 = vpop.f32.mrf.mxu1 }
 0x666   :  { %v13599_v37 = vpop.f32.mrf.mxu0  ;;  %v13601_v62 = vpop.f32.mrf.mxu1 }
 0x667   :  { %14207 = vst [vmem:[#allocation24_spill] sm:$0xff] %v13599_v37  ;;  %14208 = vst [vmem:[#allocation33_spill] sm:$0xff] %v13601_v62  ;;  %v6814_v62 = vadd.f32 %v13521_v39, %v13515_v58  ;;  %v6820_v58 = vadd.f32 %v13533_v40, %v13527_v13 }
 0x668   :  { %v13603_v21 = vpop.f32.mrf.mxu0  ;;  %v13605_v31 = vpop.f32.mrf.mxu1 }
 0x669   :  { %14209 = vst [vmem:[#allocation25_spill] sm:$0xff] %v13603_v21  ;;  %14210 = vst [vmem:[#allocation16_spill] sm:$0xff] %v13605_v31 }
 0x66a   :  { %v13607_v1 = vpop.f32.mrf.mxu0  ;;  %v13609_v5 = vpop.f32.mrf.mxu1 }
 0x66b   :  { %14211 = vst [vmem:[#allocation36_spill] sm:$0xff] %v13607_v1  ;;  %14212 = vst [vmem:[#allocation2_spill] sm:$0xff] %v13609_v5 }
 0x66c   :  { %v13611_v48 = vpop.f32.mrf.mxu0  ;;  %v13613_v18 = vpop.f32.mrf.mxu1 }
 0x66d   :  { %14213 = vst [vmem:[#allocation21_spill] sm:$0xff] %v13611_v48  ;;  %14214 = vst [vmem:[#allocation6_spill] sm:$0xff] %v13613_v18 }
 0x66e   :  { %v13615_v25 = vpop.f32.mrf.mxu0  ;;  %v13617_v38 = vpop.f32.mrf.mxu1 }
 0x66f   :  { %14215 = vst [vmem:[#allocation3_spill] sm:$0xff] %v13615_v25  ;;  %14216 = vst [vmem:[#allocation31_spill] sm:$0xff] %v13617_v38 }
 0x670   :  { %v13619_v36 = vpop.f32.mrf.mxu0  ;;  %v13621_v28 = vpop.f32.mrf.mxu1 }
 0x671   :  { %14217 = vst [vmem:[#allocation42_spill] sm:$0xff] %v13619_v36  ;;  %14218 = vst [vmem:[#allocation23_spill] sm:$0xff] %v13621_v28 }
 0x672   :  { %v9602_v55 = vpop.f32.mrf.mxu0  ;;  %v13623_v33 = vpop.f32.mrf.mxu1 }
 0x673   :  { %14219 = vst [vmem:[#allocation18_spill] sm:$0xff] %v13623_v33 }
 0x674   :  { %v7198_v59 = vpop.f32.mrf.mxu0  ;;  %v13625_v26 = vpop.f32.mrf.mxu1 }
 0x675   :  { %14220 = vst [vmem:[#allocation32_spill] sm:$0xff] %v13625_v26 }
 0x676   :  { %v9603_v1 = vpop.f32.mrf.mxu0  ;;  %v9622_v22 = vpop.f32.mrf.mxu1 }
 0x678   :  { %v7201_v41 = vpop.f32.mrf.mxu0  ;;  %v7331_v48 = vpop.f32.mrf.mxu1 }
 0x67a   :  { %v9606_v5 = vpop.f32.mrf.mxu0  ;;  %v9623_v18 = vpop.f32.mrf.mxu1 }
 0x67c   :  { %v7214_v31 = vpop.f32.mrf.mxu0  ;;  %v7334_v25 = vpop.f32.mrf.mxu1 }
 0x67e   :  { %v9607_v29 = vpop.f32.mrf.mxu0  ;;  %v13627_v38 = vpop.f32.mrf.mxu1 }
 0x67f   :  { %14221 = vst [vmem:[#allocation37_spill] sm:$0xff] %v13627_v38 }
 0x680   :  { %v13629_v36 = vpop.f32.mrf.mxu0  ;;  %v13633_v7 = vpop.f32.mrf.mxu1 }
 0x681   :  { %14222 = vst [vmem:[#allocation4_spill] sm:$0xff] %v13629_v36  ;;  %14224 = vst [vmem:[#allocation43_spill] sm:$0xff] %v13633_v7  ;;  %v6817_v36 = vadd.f32 %v13525_v42, %v13519_v19 }
 0x682   :  { %v13631_v28 = vpop.f32.mrf.mxu0  ;;  %v13641_v45 = vpop.f32.mrf.mxu1 }
 0x683   :  { %14223 = vst [vmem:[#allocation22_spill] sm:$0xff] %v13631_v28  ;;  %v6973_v28 = vadd.f32 %v9562_v4, %v6816_v43  ;;  %v6974_v7 = vadd.f32 %v9563_v8, %v6817_v36  ;;  %v6818_v4 = vadd.f32 %v13537_v50, %v13531_v52  ;;  %v6821_v8 = vadd.f32 %v13541_v24, %v13535_v34 }
 0x684   :  { %v13635_v33 = vpop.f32.mrf.mxu0  ;;  %v13653_v37 = vpop.f32.mrf.mxu1 }
 0x685   :  { %14225 = vst [vmem:[#allocation44_spill] sm:$0xff] %v13635_v33  ;;  %v6815_v33 = vadd.f32 %v13529_v49, %v13523_v20  ;;  %v7130_v60 = vadd.f32 %v9582_v57, %v6973_v28  ;;  %v7131_v42 = vadd.f32 %v9583_v44, %v6974_v7  ;;  %v6977_v20 = vadd.f32 %v13577_v61, %v6820_v58  ;;  %v14233_v58 = vld [vmem:[#allocation27_spill] sm:$0xff] }
 0x686   :  { %v13637_v26 = vpop.f32.mrf.mxu0  ;;  %v13664_v49 = vpop.f32.mrf.mxu1  ;;  %v6819_v7 = vadd.f32 %v13545_v6, %v13539_v53  ;;  %v6978_v52 = vadd.f32 %v13583_v51, %v6821_v8  ;;  %v6824_v53 = vadd.f32 %v13549_v3, %v13543_v15  ;;  %v6822_v6 = vadd.f32 %v13553_v14, %v13547_v17  ;;  %v14228_v14 = vld [vmem:[#allocation38_spill] sm:$0xff]  ;;  %v14236_v8 = vld [vmem:[#allocation25_spill] sm:$0xff] }
 0x687   :  { %14226 = vst [vmem:[#allocation45_spill] sm:$0xff] %v13637_v26  ;;  %v6971_v26 = vadd.f32 %v6908_v10, %v6814_v62  ;;  %v7263_v43 = vadd.f32 %v9602_v55, %v7130_v60  ;;  %v7264_v40 = vadd.f32 %v9603_v1, %v7131_v42  ;;  %v7134_v61 = vadd.f32 %v13585_v9, %v6977_v20  ;;  %v14234_v42 = vld [vmem:[#allocation9_spill] sm:$0xff] }
 0x688   :  { %v13643_v21 = vpop.f32.mrf.mxu0  ;;  %v6976_v44 = vadd.f32 %v13587_v11, %v6819_v7  ;;  %v13677_v62 = vpop.f32.mrf.mxu1  ;;  %v7135_v51 = vadd.f32 %v13593_v56, %v6978_v52  ;;  %v6825_v1 = vadd.f32 %v13557_v35, %v13551_v54  ;;  %v6823_v56 = vadd.f32 %v13561_v27, %v13555_v63  ;;  %v14231_v35 = vld [vmem:[#allocation37_spill] sm:$0xff]  ;;  %v14237_v27 = vld [vmem:[#allocation43_spill] sm:$0xff] }
 0x689   :  { %14227 = vst [vmem:[#allocation46_spill] sm:$0xff] %v13643_v21  ;;  %v6972_v21 = vadd.f32 %v6911_v46, %v6815_v33  ;;  %v7128_v19 = vadd.f32 %v7065_v0, %v6971_v26  ;;  %v6975_v26 = vadd.f32 %v13579_v23, %v6818_v4  ;;  %v7396_v50 = vadd.f32 %v9622_v22, %v7263_v43  ;;  %v14230_v33 = vld [vmem:[#allocation24_spill] sm:$0xff]  ;;  %v14235_v4 = vld [vmem:[#allocation33_spill] sm:$0xff]  ;;  %v14239_v52 = vld [vmem:[#allocation7_spill] sm:$0xff] }
 0x68a   :  { %v13649_v38 = vpop.f32.mrf.mxu0  ;;  %v7267_v22 = vadd.f32 %v9606_v5, %v7134_v61  ;;  %v9631_v3 = vpop.f32.mrf.mxu1  ;;  %v7268_v17 = vadd.f32 %v9607_v29, %v7135_v51  ;;  %v14229_v5 = vld [vmem:[#allocation19_spill] sm:$0xff]  ;;  %v6982_v54 = vadd.f32 %v14230_v33, %v6825_v1  ;;  %v14241_v61 = vld [vmem:[#allocation10_spill] sm:$0xff]  ;;  %v14253_v33 = vld [vmem:[#allocation8_spill] sm:$0xff] }
 0x68b   :  { %v7129_v57 = vadd.f32 %v13581_v32, %v6972_v21  ;;  %v7261_v13 = vadd.f32 %v7198_v59, %v7128_v19  ;;  %v7397_v59 = vadd.f32 %v9623_v18, %v7264_v40  ;;  %v7132_v23 = vadd.f32 %v13589_v47, %v6975_v26 }
 0x68c   :  { %v13655_v12 = vpop.f32.mrf.mxu0  ;;  %v7133_v18 = vadd.f32 %v13597_v16, %v6976_v44  ;;  %v14232_v16 = vld [vmem:[#allocation4_spill] sm:$0xff]  ;;  %v7401_v40 = vadd.f32 %v13641_v45, %v7268_v17  ;;  %v14245_v45 = vld [vmem:[#allocation26_spill] sm:$0xff] }
 0x68d   :  { %v7262_v0 = vadd.f32 %v7201_v41, %v7129_v57  ;;  %v7394_v24 = vadd.f32 %v7331_v48, %v7261_v13  ;;  %v6981_v48 = vadd.f32 %v13591_v2, %v6824_v53  ;;  %v7265_v15 = vadd.f32 %v7214_v31, %v7132_v23  ;;  %v7366_v13 = vpop.f32.mrf.mxu1 }
 0x68e   :  { %v13659_v39 = vpop.f32.mrf.mxu0  ;;  %v7400_v2 = vadd.f32 %v14231_v35, %v7267_v22  ;;  %v7266_v31 = vadd.f32 %v14232_v16, %v7133_v18  ;;  %v6980_v57 = vadd.f32 %v14236_v8, %v6823_v56  ;;  %v14256_v16 = vld [vmem:[#allocation3_spill] sm:$0xff] }
 0x68f   :  { %v7395_v9 = vadd.f32 %v7334_v25, %v7262_v0  ;;  %v6979_v25 = vadd.f32 %v13595_v30, %v6822_v6  ;;  %v7138_v20 = vadd.f32 %v14235_v4, %v6981_v48  ;;  %v7398_v30 = vadd.f32 %v14237_v27, %v7265_v15  ;;  %v14240_v0 = vld [vmem:[#allocation14_spill] sm:$0xff]  ;;  %v14249_v15 = vld [vmem:[#allocation44_spill] sm:$0xff]  ;;  %v9634_v17 = vpop.f32.mrf.mxu1  ;;  %v14259_v8 = vld [vmem:[#allocation35_spill] sm:$0xff] }
 0x690   :  { %v13666_v10 = vpop.f32.mrf.mxu0  ;;  %v6826_v44 = vadd.f32 %v14241_v61, %v14240_v0  ;;  %v14244_v6 = vld [vmem:[#allocation2_spill] sm:$0xff]  ;;  %v7399_v22 = vadd.f32 %v13653_v37, %v7266_v31  ;;  %v14251_v37 = vld [vmem:[#allocation28_spill] sm:$0xff] }
 0x691   :  { %v7139_v23 = vadd.f32 %v14244_v6, %v6982_v54  ;;  %v14248_v48 = vld [vmem:[#allocation6_spill] sm:$0xff]  ;;  %v14254_v54 = vld [vmem:[#allocation17_spill] sm:$0xff] }
 0x692   :  { %v9642_v46 = vpop.f32.mrf.mxu0  ;;  %v7137_v18 = vadd.f32 %v14248_v48, %v6980_v57  ;;  %v6827_v35 = vadd.f32 %v14254_v54, %v14253_v33 }
 0x693   :  { %v7529_v32 = vadd.f32 %v9642_v46, %v7396_v50  ;;  %v14238_v46 = vld [vmem:[#allocation12_spill] sm:$0xff] }
 0x694   :  { %v7464_v34 = vpop.f32.mrf.mxu0  ;;  %v6828_v50 = vadd.f32 %v14239_v52, %v14238_v46 }
 0x695   :  { %v7527_v11 = vadd.f32 %v7464_v34, %v7394_v24  ;;  %v7545_v47 = vadd.f32 %v7529_v32, %v14228_v14  ;;  %v14242_v34 = vld [vmem:[#allocation16_spill] sm:$0xff] }
 0x696   :  { %v9643_v41 = vpop.f32.mrf.mxu0  ;;  %v7136_v24 = vadd.f32 %v14242_v34, %v6979_v25 }
 0x697   :  { %v7530_v21 = vadd.f32 %v9643_v41, %v7397_v59  ;;  %v7543_v19 = vadd.f32 %v7527_v11, %v14233_v58  ;;  %v14243_v59 = vld [vmem:[#allocation22_spill] sm:$0xff] }
 0x698   :  { %v7467_v36 = vpop.f32.mrf.mxu0  ;;  %v7271_v32 = vadd.f32 %v14243_v59, %v7138_v20 }
 0x699   :  { %v7546_v28 = vadd.f32 %v7530_v21, %v14229_v5  ;;  %v7528_v55 = vadd.f32 %v7467_v36, %v7395_v9  ;;  %v14246_v9 = vld [vmem:[#allocation15_spill] sm:$0xff]  ;;  %v14247_v21 = vld [vmem:[#allocation36_spill] sm:$0xff]  ;;  %v7269_v36 = vadd.f32 %v14249_v15, %v7136_v24  ;;  %v14263_v24 = vld [vmem:[#allocation18_spill] sm:$0xff] }
 0x69a   :  { %v9646_v60 = vpop.f32.mrf.mxu0  ;;  %v6829_v11 = vadd.f32 %v14246_v9, %v14245_v45  ;;  %v6985_v1 = vadd.f32 %v14247_v21, %v6828_v50  ;;  %v7404_v58 = vadd.f32 %v13664_v49, %v7271_v32  ;;  %v14262_v49 = vld [vmem:[#allocation23_spill] sm:$0xff]  ;;  %v14265_v45 = vld [vmem:[#allocation20_spill] sm:$0xff] }
 0x69b   :  { %v7560_v29 = vpack.c.bf16 %v7546_v28, %v7545_v47  ;;  %v7544_v43 = vadd.f32 %v7528_v55, %v14234_v42  ;;  %v7533_v26 = vadd.f32 %v9646_v60, %v7400_v2  ;;  %v14250_v47 = vld [vmem:[#allocation45_spill] sm:$0xff]  ;;  %v14257_v42 = vld [vmem:[#allocation46_spill] sm:$0xff]  ;;  %v7402_v46 = vadd.f32 %v13677_v62, %v7269_v36  ;;  %v14266_v9 = vld [vmem:[#allocation11_spill] sm:$0xff] }
 0x69c   :  { %v7480_v63 = vpop.f32.mrf.mxu0  ;;  %v7272_v5 = vadd.f32 %v14250_v47, %v7139_v23  ;;  %v14252_v55 = vld [vmem:[#allocation13_spill] sm:$0xff]  ;;  %v6986_v31 = vadd.f32 %v14256_v16, %v6829_v11  ;;  %v14264_v23 = vld [vmem:[#allocation32_spill] sm:$0xff] }
 0x69d   :  { %v7559_v7 = vpack.c.bf16 %v7544_v43, %v7543_v19  ;;  %v7531_v41 = vadd.f32 %v7480_v63, %v7398_v30  ;;  %v7549_v28 = vadd.f32 %v7533_v26, %v14251_v37  ;;  %v14255_v2 = vld [vmem:[#allocation21_spill] sm:$0xff]  ;;  %v7270_v43 = vadd.f32 %v14257_v42, %v7137_v18  ;;  %v14260_v63 = vld [vmem:[#allocation31_spill] sm:$0xff]  ;;  %v14261_v30 = vld [vmem:[#allocation42_spill] sm:$0xff] }
 0x69e   :  { %v9647_v53 = vpop.f32.mrf.mxu0  ;;  %v6983_v60 = vadd.f32 %v14255_v2, %v6826_v44  ;;  %v7142_v27 = vadd.f32 %v14260_v63, %v6985_v1  ;;  %v7405_v52 = vadd.f32 %v9631_v3, %v7272_v5  ;;  %v7143_v59 = vadd.f32 %v14263_v24, %v6986_v31  ;;  %v14267_v18 = vld [vmem:[#allocation5_spill] sm:$0xff]  ;;  %v14270_v2 = vld [vmem:[#allocation39_spill] sm:$0xff]  ;;  %v14272_v42 = vld [vmem:[#allocation30_spill] sm:$0xff] }
 0x69f   :  { %v7534_v51 = vadd.f32 %v9647_v53, %v7401_v40  ;;  %9660 = vmatprep.mubr.msk.bf16.mxu1 %vm1665_vm4, %v7559_v7  ;;  %v6984_v40 = vadd.f32 %v14261_v30, %v6827_v35  ;;  %v7379_v7 = vpop.f32.mrf.mxu1  ;;  %v7403_v32 = vadd.f32 %v7366_v13, %v7270_v43  ;;  %v14271_v31 = vld [vmem:[#allocation41_spill] sm:$0xff] }
 0x6a0   :  { %v7483_v14 = vpop.f32.mrf.mxu0  ;;  %9661 = vmatmul.mubr.msk.bf16.vlgmr.msra.gmra.mxu1 %vm1665_vm4, %v7560_v29  ;;  %v14258_v29 = vld [vmem:[#allocation29_spill] sm:$0xff]  ;;  %v7140_v61 = vadd.f32 %v14262_v49, %v6983_v60  ;;  %v7275_v44 = vadd.f32 %v13649_v38, %v7142_v27 }
 0x6a1   :  { %v7550_v56 = vadd.f32 %v7534_v51, %v14252_v55  ;;  %v7532_v25 = vadd.f32 %v7483_v14, %v7399_v22  ;;  %v7547_v4 = vadd.f32 %v7531_v41, %v14258_v29  ;;  %v7141_v22 = vadd.f32 %v14264_v23, %v6984_v40  ;;  %v9635_v62 = vpop.f32.mrf.mxu1  ;;  %v14268_v14 = vld [vmem:[#allocation40_spill] sm:$0xff] }
 0x6a2   :  { %v9650_v19 = vpop.f32.mrf.mxu0  ;;  %v7273_v41 = vadd.f32 %v13655_v12, %v7140_v61  ;;  %v7276_v51 = vadd.f32 %v13659_v39, %v7143_v59  ;;  %v7408_v13 = vadd.f32 %v9634_v17, %v7275_v44 }
 0x6a3   :  { %v7562_v20 = vpack.c.bf16 %v7550_v56, %v7549_v28  ;;  %v7548_v57 = vadd.f32 %v7532_v25, %v14259_v8  ;;  %v7537_v0 = vadd.f32 %v9650_v19, %v7404_v58  ;;  %v7274_v48 = vadd.f32 %v13666_v10, %v7141_v22  ;;  %v7382_v47 = vpop.f32.mrf.mxu1  ;;  %v14269_v10 = vld [vmem:[#allocation34_spill] sm:$0xff] }
 0x6a4   :  { %v7496_v26 = vpop.f32.mrf.mxu0  ;;  %v7406_v37 = vadd.f32 %v7379_v7, %v7273_v41  ;;  %v7409_v28 = vadd.f32 %v9635_v62, %v7276_v51 }
 0x6a5   :  { %v7561_v50 = vpack.c.bf16 %v7548_v57, %v7547_v4  ;;  %v7535_v53 = vadd.f32 %v7496_v26, %v7402_v46  ;;  %v7553_v38 = vadd.f32 %v7537_v0, %v14265_v45  ;;  %v7407_v25 = vadd.f32 %v7382_v47, %v7274_v48  ;;  %v8312_v4 = vld [vmem:[%s13811_s7] ss:$0 sm:$0xff] }
 0x6a6   :  { %v9651_v34 = vpop.f32.mrf.mxu0 }
 0x6a7   :  { %v7538_v6 = vadd.f32 %v9651_v34, %v7405_v52  ;;  %9664 = vmatprep.mubr.msk.bf16.mxu1 %vm1665_vm4, %v7561_v50  ;;  %v7551_v15 = vadd.f32 %v7535_v53, %v14267_v18 }
 0x6a8   :  { %v7499_v3 = vpop.f32.mrf.mxu0  ;;  %9665 = vmatmul.mubr.msk.bf16.gmra.mxu1 %vm1665_vm4, %v7562_v20 }
 0x6a9   :  { %v7554_v11 = vadd.f32 %v7538_v6, %v14266_v9  ;;  %v7536_v21 = vadd.f32 %v7499_v3, %v7403_v32 }
 0x6aa   :  { %v9654_v1 = vpop.f32.mrf.mxu0 }
 0x6ab   :  { %v7564_v36 = vpack.c.bf16 %v7554_v11, %v7553_v38  ;;  %v7552_v12 = vadd.f32 %v7536_v21, %v14268_v14  ;;  %v7541_v39 = vadd.f32 %v9654_v1, %v7408_v13 }
 0x6ac   :  { %v7512_v5 = vpop.f32.mrf.mxu0 }
 0x6ad   :  { %v7563_v55 = vpack.c.bf16 %v7552_v12, %v7551_v15  ;;  %v7539_v33 = vadd.f32 %v7512_v5, %v7406_v37  ;;  %v7557_v35 = vadd.f32 %v7541_v39, %v14269_v10 }
 0x6ae   :  { %v9655_v56 = vpop.f32.mrf.mxu0 }
 0x6af   :  { %v7542_v54 = vadd.f32 %v9655_v56, %v7409_v28  ;;  %9668 = vmatprep.mubr.msk.bf16.mxu1 %vm1665_vm4, %v7563_v55  ;;  %v7555_v58 = vadd.f32 %v7539_v33, %v14271_v31 }
 0x6b0   :  { %v7515_v17 = vpop.f32.mrf.mxu0  ;;  %9669 = vmatmul.mubr.msk.bf16.gmra.mxu1 %vm1665_vm4, %v7564_v36 }
 0x6b1   :  { %v7558_v60 = vadd.f32 %v7542_v54, %v14270_v2  ;;  %v7540_v16 = vadd.f32 %v7515_v17, %v7407_v25 }
 0x6b3   :  { %v7566_v19 = vpack.c.bf16 %v7558_v60, %v7557_v35  ;;  %v7556_v43 = vadd.f32 %v7540_v16, %v14272_v42 }
 0x6b5   :  { %v7565_v29 = vpack.c.bf16 %v7556_v43, %v7555_v58 }
 0x6b7   :  { %9672 = vmatprep.mubr.msk.bf16.mxu1 %vm1665_vm4, %v7565_v29 }
 0x6b8   :  { %9673 = vmatmul.mubr.msk.bf16.gmra.mxu1 %vm1665_vm4, %v7566_v19 }
 0x760   :  { %v9662_v20 = vpop.f32.mrf.mxu1 }
 0x761   :  { %v7657_v8 = vadd.f32 %v9662_v20, %v8312_v4 }
 0x762   :  { %v7648_v57 = vpop.f32.mrf.mxu1 }
 0x763   :  { %7713 = vst [vmem:[%s13812_s8 + $0x10] sm:$0xff] %v7657_v8  ;;  %v7649_v63 = vadd.f32 %v8312_v4, %v7648_v57 }
 0x764   :  { %v9663_v27 = vpop.f32.mrf.mxu1 }
 0x765   :  { %7711 = vst [vmem:[%s13812_s8] sm:$0xff] %v7649_v63  ;;  %v7660_v30 = vadd.f32 %v9663_v27, %v8312_v4 }
 0x766   :  { %v7651_v40 = vpop.f32.mrf.mxu1 }
 0x767   :  { %7714 = vst [vmem:[%s13812_s8 + $0x18] sm:$0xff] %v7660_v30  ;;  %v7652_v7 = vadd.f32 %v8312_v4, %v7651_v40 }
 0x768   :  { %v9666_v26 = vpop.f32.mrf.mxu1 }
 0x769   :  { %7712 = vst [vmem:[%s13812_s8 + $0x8] sm:$0xff] %v7652_v7  ;;  %v7673_v46 = vadd.f32 %v9666_v26, %v8312_v4 }
 0x76a   :  { %v7664_v52 = vpop.f32.mrf.mxu1 }
 0x76b   :  { %7717 = vst [vmem:[%s13812_s8 + $0x30] sm:$0xff] %v7673_v46  ;;  %v7665_v50 = vadd.f32 %v8312_v4, %v7664_v52 }
 0x76c   :  { %v9667_v0 = vpop.f32.mrf.mxu1 }
 0x76d   :  { %7715 = vst [vmem:[%s13812_s8 + $0x20] sm:$0xff] %v7665_v50  ;;  %v7676_v49 = vadd.f32 %v9667_v0, %v8312_v4 }
 0x76e   :  { %v7667_v61 = vpop.f32.mrf.mxu1 }
 0x76f   :  { %7718 = vst [vmem:[%s13812_s8 + $0x38] sm:$0xff] %v7676_v49  ;;  %v7668_v44 = vadd.f32 %v8312_v4, %v7667_v61 }
 0x770   :  { %v9670_v34 = vpop.f32.mrf.mxu1 }
 0x771   :  { %7716 = vst [vmem:[%s13812_s8 + $0x28] sm:$0xff] %v7668_v44  ;;  %v7689_v24 = vadd.f32 %v9670_v34, %v8312_v4 }
 0x772   :  { %v7680_v59 = vpop.f32.mrf.mxu1 }
 0x773   :  { %7721 = vst [vmem:[%s13812_s8 + $0x50] sm:$0xff] %v7689_v24  ;;  %v7681_v32 = vadd.f32 %v8312_v4, %v7680_v59 }
 0x774   :  { %v9671_v53 = vpop.f32.mrf.mxu1 }
 0x775   :  { %7719 = vst [vmem:[%s13812_s8 + $0x40] sm:$0xff] %v7681_v32  ;;  %v7692_v6 = vadd.f32 %v9671_v53, %v8312_v4 }
 0x776   :  { %v7683_v23 = vpop.f32.mrf.mxu1 }
 0x777   :  { %7722 = vst [vmem:[%s13812_s8 + $0x58] sm:$0xff] %v7692_v6  ;;  %v7684_v22 = vadd.f32 %v8312_v4, %v7683_v23 }
 0x778   :  { %v9674_v41 = vpop.f32.mrf.mxu1 }
 0x779   :  { %7720 = vst [vmem:[%s13812_s8 + $0x48] sm:$0xff] %v7684_v22  ;;  %v7705_v62 = vadd.f32 %v9674_v41, %v8312_v4 }
 0x77a   :  { %v7696_v3 = vpop.f32.mrf.mxu1 }
 0x77b   :  { %7725 = vst [vmem:[%s13812_s8 + $0x70] sm:$0xff] %v7705_v62  ;;  %v7697_v51 = vadd.f32 %v8312_v4, %v7696_v3 }
 0x77c   :  { %v9675_v45 = vpop.f32.mrf.mxu1 }
 0x77d   :  { %7723 = vst [vmem:[%s13812_s8 + $0x60] sm:$0xff] %v7697_v51  ;;  %v7708_v38 = vadd.f32 %v9675_v45, %v8312_v4 }
 0x77e   :  { %v7699_v9 = vpop.f32.mrf.mxu1 }
 0x77f   :  { %7726 = vst [vmem:[%s13812_s8 + $0x78] sm:$0xff] %v7708_v38  ;;  %v7700_v11 = vadd.f32 %v8312_v4, %v7699_v9 }
 0x781   :  { %7724 = vst [vmem:[%s13812_s8 + $0x68] sm:$0xff] %v7700_v11 }

</bundles_post_ra>
